<compile_context>
chip_gen: v7x
topology: tpu7x:2x2x1
jax: 0.10.0
libtpu: 0.0.40
codegen_flags: <defaults>
</compile_context>

<pallas_src>
import functools

import jax
import jax.numpy as jnp
from jax.experimental import pallas as pl
from jax.experimental.pallas import tpu as pltpu

EPS = 1e-5
FEAT = 1024 + 512 + 256 + 128  # 1920, torch.cat([x_1024, x_512, x_256, x_128], 1)


# ---------------------------------------------------------------------------
# Fused kernel: grid step s = one scale.  Runs the 6-layer conv chain on the
# whole (B, Nmax) point block, max-pools per feature width, scales by the
# fuse weight w_s and accumulates into a resident f32 scratch.  Bias + ReLU
# and the single (B, 1920) output store happen on the last step.
# ---------------------------------------------------------------------------
def latent_kernel(pts_ref,
                  w1_ref, b1_ref, w2_ref, b2_ref, w3_ref, b3_ref,
                  w4_ref, b4_ref, w5_ref, b5_ref, w6_ref, b6_ref,
                  fuse_ref, out_ref, acc_ref, *, num_scales):
    s = pl.program_id(0)
    _, B, n_max, _ = pts_ref.shape

    # (1, B, Nmax, 3) -> (B*Nmax, 3); cast to bf16 for the MXU (f32 accumulate).
    x = pts_ref[0].reshape(B * n_max, 3).astype(jnp.bfloat16)

    def layer(h, w_ref, b_ref):
        y = jnp.dot(h, w_ref[0], preferred_element_type=jnp.float32) + b_ref[0]
        return jnp.maximum(y, 0.0)

    h = layer(x, w1_ref, b1_ref).astype(jnp.bfloat16)
    h = layer(h, w2_ref, b2_ref).astype(jnp.bfloat16)
    h128 = layer(h, w3_ref, b3_ref)                          # f32
    h256 = layer(h128.astype(jnp.bfloat16), w4_ref, b4_ref)  # f32
    h512 = layer(h256.astype(jnp.bfloat16), w5_ref, b5_ref)  # f32
    h1024 = layer(h512.astype(jnp.bfloat16), w6_ref, b6_ref) # f32

    # MaxPool2d((N,1)) over the point dimension.  Padded points are wrapped
    # copies of real points, so the max is exact without masking.
    m1024 = h1024.reshape(B, n_max, 1024).max(axis=1)
    m512 = h512.reshape(B, n_max, 512).max(axis=1)
    m256 = h256.reshape(B, n_max, 256).max(axis=1)
    m128 = h128.reshape(B, n_max, 128).max(axis=1)

    w_s = fuse_ref[s]  # Conv1d(3,1,1) weight for this scale (applied AFTER max)

    @pl.when(s == 0)
    def _():
        acc_ref[...] = jnp.zeros_like(acc_ref)

    acc_ref[:, 0:1024] += w_s * m1024
    acc_ref[:, 1024:1536] += w_s * m512
    acc_ref[:, 1536:1792] += w_s * m256
    acc_ref[:, 1792:1920] += w_s * m128

    @pl.when(s == num_scales - 1)
    def _():
        out_ref[...] = jnp.maximum(acc_ref[...] + fuse_ref[num_scales], 0.0)


def _pad_points_wrap(x, n_max):
    """Pad (B, n, 3) -> (B, n_max, 3) by repeating real points (max-exact)."""
    B, n, _ = x.shape
    if n == n_max:
        return x
    idx = jnp.arange(n_max) % n
    return x[:, idx, :]


def latentfeature_forward(xs, conv_params_per_scale, fuse_w):
    """xs: list of (B, N_s, 3) f32; conv_params_per_scale: per scale, list of 6
    (W_folded (cin,cout), b_folded (1,cout)); fuse_w: (1, num_scales+1)."""
    num_scales = len(xs)
    B = xs[0].shape[0]
    n_max = max(int(x.shape[1]) for x in xs)
    n_max = ((n_max + 7) // 8) * 8  # sublane-align; wrap-padding keeps max exact

    pts_all = jnp.stack([_pad_points_wrap(x, n_max) for x in xs], axis=0)  # (S,B,Nmax,3) f32

    # Stack per-scale weights per layer; weights bf16 (MXU), biases f32.
    ws, bs = [], []
    for li in range(6):
        ws.append(jnp.stack([conv_params_per_scale[s][li][0] for s in range(num_scales)],
                            axis=0).astype(jnp.bfloat16))           # (S, cin, cout)
        bs.append(jnp.stack([conv_params_per_scale[s][li][1] for s in range(num_scales)],
                            axis=0).astype(jnp.float32))             # (S, 1, cout)

    fuse_vec = fuse_w.reshape(-1).astype(jnp.float32)                 # (S+1,) = [w0..w_{S-1}, b]

    in_specs = [pl.BlockSpec((1, B, n_max, 3), lambda s: (s, 0, 0, 0))]
    args = [pts_all]
    for W, b in zip(ws, bs):
        in_specs.append(pl.BlockSpec((1,) + W.shape[1:], lambda s: (s, 0, 0)))
        in_specs.append(pl.BlockSpec((1,) + b.shape[1:], lambda s: (s, 0, 0)))
        args += [W, b]
    in_specs.append(pl.BlockSpec(memory_space=pltpu.MemorySpace.SMEM))  # fuse scalars
    args.append(fuse_vec)

    kernel = functools.partial(latent_kernel, num_scales=num_scales)

    return pl.pallas_call(
        kernel,
        out_shape=jax.ShapeDtypeStruct((B, FEAT), jnp.float32),
        grid_spec=pltpu.PrefetchScalarGridSpec(
            num_scalar_prefetch=0,
            grid=(num_scales,),
            in_specs=in_specs,
            out_specs=pl.BlockSpec((B, FEAT), lambda s: (0, 0)),
            scratch_shapes=[pltpu.VMEM((B, FEAT), jnp.float32)],
        ),
        compiler_params=pltpu.CompilerParams(dimension_semantics=("arbitrary",)),
    )(*args)


# ---------------------------------------------------------------------------
# Deterministic parameter construction (BN folded into conv weights, eval mode)
# ---------------------------------------------------------------------------
def make_convlayer_params(key):
    dims = [(3, 64), (64, 64), (64, 128), (128, 256), (256, 512), (512, 1024)]
    params = []
    for (cin, cout) in dims:
        key, kw, kb, kg, kbe, km, kv = jax.random.split(key, 7)
        W = jax.random.normal(kw, (cin, cout), jnp.float32) * 0.1
        b = jax.random.normal(kb, (cout,), jnp.float32) * 0.1
        gamma = 1.0 + 0.1 * jax.random.normal(kg, (cout,), jnp.float32)
        beta = 0.1 * jax.random.normal(kbe, (cout,), jnp.float32)
        mean = 0.1 * jax.random.normal(km, (cout,), jnp.float32)
        var = jnp.abs(1.0 + 0.1 * jax.random.normal(kv, (cout,), jnp.float32))
        scale = gamma / jnp.sqrt(var + EPS)
        Wf = W * scale[None, :]
        bf = (b - mean) * scale + beta
        params.append((Wf, bf.reshape(1, cout)))
    return params


def make_fuse_params(key):
    kw, kb, kg, kbe, km, kv = jax.random.split(key, 6)
    w = jax.random.normal(kw, (3,), jnp.float32) * 0.5       # Conv1d(3,1,1).weight
    b = jax.random.normal(kb, (1,), jnp.float32) * 0.1        # Conv1d bias
    gamma = 1.0 + 0.1 * jax.random.normal(kg, (1,), jnp.float32)
    beta = 0.1 * jax.random.normal(kbe, (1,), jnp.float32)
    mean = 0.1 * jax.random.normal(km, (1,), jnp.float32)
    var = jnp.abs(1.0 + 0.1 * jax.random.normal(kv, (1,), jnp.float32))
    scale = gamma / jnp.sqrt(var + EPS)
    wf = w * scale[0]
    bf = (b - mean) * scale + beta
    return jnp.concatenate([wf, bf]).reshape(1, 4)            # [w0, w1, w2, b]


# ---------------------------------------------------------------------------
# Pure-JAX f32 reference for validation
# ---------------------------------------------------------------------------
def convlayer_ref(pts, params):
    B, N, _ = pts.shape
    h = pts.reshape(B * N, 3)
    feats = []
    for i, (W, b) in enumerate(params):
        h = jnp.maximum(h @ W + b, 0.0)
        if i >= 2:  # 128, 256, 512, 1024 features
            feats.append(h.reshape(B, N, -1).max(axis=1))
    return jnp.concatenate(feats[::-1], axis=1)  # [1024, 512, 256, 128]


def latentfeature_ref(xs, conv_params_per_scale, fuse_w):
    outs = [convlayer_ref(x, p) for x, p in zip(xs, conv_params_per_scale)]
    w = fuse_w[0]
    y = w[0] * outs[0] + w[1] * outs[1] + w[2] * outs[2] + w[3]
    return jnp.maximum(y, 0.0)


if __name__ == "__main__":
    key = jax.random.PRNGKey(0)

    B = 2
    point_scales_list = [32, 16, 8]          # num_scales=3, each_scales_size=1

    key, k0, k1, k2 = jax.random.split(key, 4)
    xs = [jax.random.normal(kk, (B, n, 3), jnp.float32)
          for n, kk in zip(point_scales_list, [k0, k1, k2])]

    key, kp0, kp1, kp2, kpf = jax.random.split(key, 5)
    conv_params = [make_convlayer_params(kp0),
                   make_convlayer_params(kp1),
                   make_convlayer_params(kp2)]
    fuse_w = make_fuse_params(kpf)

    out = latentfeature_forward(xs, conv_params, fuse_w)
    out = jax.block_until_ready(out)

    ref = latentfeature_ref(xs, conv_params, fuse_w)
    assert out.shape == (B, FEAT), out.shape
    if not jnp.allclose(out, ref, rtol=5e-2, atol=5e-2):
        err = float(jnp.max(jnp.abs(out - ref)))
        raise AssertionError(f"Pallas output does not match JAX reference (max abs err {err})")

    print("KERNEL_OK")
</pallas_src>

<mosaic_0001>
module attributes {stable_mosaic.version = 11 : i64} {
  func.func @latent_kernel(%arg0: i32, %arg1: memref<1x2x32x3xf32, #tpu.memory_space<vmem>>, %arg2: memref<1x3x64xbf16, #tpu.memory_space<vmem>>, %arg3: memref<1x1x64xf32, #tpu.memory_space<vmem>>, %arg4: memref<1x64x64xbf16, #tpu.memory_space<vmem>>, %arg5: memref<1x1x64xf32, #tpu.memory_space<vmem>>, %arg6: memref<1x64x128xbf16, #tpu.memory_space<vmem>>, %arg7: memref<1x1x128xf32, #tpu.memory_space<vmem>>, %arg8: memref<1x128x256xbf16, #tpu.memory_space<vmem>>, %arg9: memref<1x1x256xf32, #tpu.memory_space<vmem>>, %arg10: memref<1x256x512xbf16, #tpu.memory_space<vmem>>, %arg11: memref<1x1x512xf32, #tpu.memory_space<vmem>>, %arg12: memref<1x512x1024xbf16, #tpu.memory_space<vmem>>, %arg13: memref<1x1x1024xf32, #tpu.memory_space<vmem>>, %arg14: memref<4xf32, #tpu.memory_space<smem>>, %arg15: memref<2x1920xf32, #tpu.memory_space<vmem>>, %arg16: memref<2x1920xf32, #tpu.memory_space<vmem>>) attributes {dimension_semantics = [#tpu.dimension_semantics<arbitrary>], iteration_bounds = array<i64: 3>, scalar_prefetch = 0 : i64, scratch_operands = 1 : i64, tpu.core_type = #tpu.core_type<tc>, window_params = [{transform_indices = @transform_0, window_bounds = array<i64: 1, 2, 32, 3>}, {transform_indices = @transform_1, window_bounds = array<i64: 1, 3, 64>}, {transform_indices = @transform_2, window_bounds = array<i64: 1, 1, 64>}, {transform_indices = @transform_3, window_bounds = array<i64: 1, 64, 64>}, {transform_indices = @transform_4, window_bounds = array<i64: 1, 1, 64>}, {transform_indices = @transform_5, window_bounds = array<i64: 1, 64, 128>}, {transform_indices = @transform_6, window_bounds = array<i64: 1, 1, 128>}, {transform_indices = @transform_7, window_bounds = array<i64: 1, 128, 256>}, {transform_indices = @transform_8, window_bounds = array<i64: 1, 1, 256>}, {transform_indices = @transform_9, window_bounds = array<i64: 1, 256, 512>}, {transform_indices = @transform_10, window_bounds = array<i64: 1, 1, 512>}, {transform_indices = @transform_11, window_bounds = array<i64: 1, 512, 1024>}, {transform_indices = @transform_12, window_bounds = array<i64: 1, 1, 1024>}, {transform_indices = @transform_13, window_bounds = array<i64: 4>}, {pipeline_mode = #tpu.pipeline_mode<synchronous>, transform_indices = @transform_14, window_bounds = array<i64: 2, 1920>}]} {
    %c0 = arith.constant 0 : index
    %c0_0 = arith.constant 0 : index
    %c0_1 = arith.constant 0 : index
    %c0_2 = arith.constant 0 : index
    %0 = vector.load %arg1[%c0, %c0_0, %c0_1, %c0_2] : memref<1x2x32x3xf32, #tpu.memory_space<vmem>>, vector<1x2x32x3xf32>
    %1 = vector.shape_cast %0 : vector<1x2x32x3xf32> to vector<2x32x3xf32>
    %2 = vector.shape_cast %1 : vector<2x32x3xf32> to vector<64x3xf32>
    %3 = arith.truncf %2 : vector<64x3xf32> to vector<64x3xbf16>
    %c0_3 = arith.constant 0 : index
    %c0_4 = arith.constant 0 : index
    %c0_5 = arith.constant 0 : index
    %4 = vector.load %arg2[%c0_3, %c0_4, %c0_5] : memref<1x3x64xbf16, #tpu.memory_space<vmem>>, vector<1x3x64xbf16>
    %5 = vector.shape_cast %4 : vector<1x3x64xbf16> to vector<3x64xbf16>
    %cst = arith.constant dense<0.000000e+00> : vector<64x64xf32>
    %6 = tpu.matmul %3, %5, %cst {dimension_numbers = #tpu.dot_dimension_numbers<[1], [0], [0], [1], [0, 0, 1, 1], [], []>} : vector<64x3xbf16>, vector<3x64xbf16>, vector<64x64xf32> -> vector<64x64xf32>
    %c0_6 = arith.constant 0 : index
    %c0_7 = arith.constant 0 : index
    %c0_8 = arith.constant 0 : index
    %7 = vector.load %arg3[%c0_6, %c0_7, %c0_8] : memref<1x1x64xf32, #tpu.memory_space<vmem>>, vector<1x1x64xf32>
    %8 = vector.shape_cast %7 : vector<1x1x64xf32> to vector<1x64xf32>
    %9 = vector.broadcast %8 : vector<1x64xf32> to vector<64x64xf32>
    %10 = arith.addf %6, %9 : vector<64x64xf32>
    %cst_9 = arith.constant 0.000000e+00 : f32
    %11 = vector.broadcast %cst_9 : f32 to vector<64x64xf32>
    %12 = arith.maximumf %10, %11 : vector<64x64xf32>
    %13 = arith.truncf %12 : vector<64x64xf32> to vector<64x64xbf16>
    %c0_10 = arith.constant 0 : index
    %c0_11 = arith.constant 0 : index
    %c0_12 = arith.constant 0 : index
    %14 = vector.load %arg4[%c0_10, %c0_11, %c0_12] : memref<1x64x64xbf16, #tpu.memory_space<vmem>>, vector<1x64x64xbf16>
    %15 = vector.shape_cast %14 : vector<1x64x64xbf16> to vector<64x64xbf16>
    %cst_13 = arith.constant dense<0.000000e+00> : vector<64x64xf32>
    %16 = tpu.matmul %13, %15, %cst_13 {dimension_numbers = #tpu.dot_dimension_numbers<[1], [0], [0], [1], [0, 0, 1, 1], [], []>} : vector<64x64xbf16>, vector<64x64xbf16>, vector<64x64xf32> -> vector<64x64xf32>
    %c0_14 = arith.constant 0 : index
    %c0_15 = arith.constant 0 : index
    %c0_16 = arith.constant 0 : index
    %17 = vector.load %arg5[%c0_14, %c0_15, %c0_16] : memref<1x1x64xf32, #tpu.memory_space<vmem>>, vector<1x1x64xf32>
    %18 = vector.shape_cast %17 : vector<1x1x64xf32> to vector<1x64xf32>
    %19 = vector.broadcast %18 : vector<1x64xf32> to vector<64x64xf32>
    %20 = arith.addf %16, %19 : vector<64x64xf32>
    %cst_17 = arith.constant 0.000000e+00 : f32
    %21 = vector.broadcast %cst_17 : f32 to vector<64x64xf32>
    %22 = arith.maximumf %20, %21 : vector<64x64xf32>
    %23 = arith.truncf %22 : vector<64x64xf32> to vector<64x64xbf16>
    %c0_18 = arith.constant 0 : index
    %c0_19 = arith.constant 0 : index
    %c0_20 = arith.constant 0 : index
    %24 = vector.load %arg6[%c0_18, %c0_19, %c0_20] : memref<1x64x128xbf16, #tpu.memory_space<vmem>>, vector<1x64x128xbf16>
    %25 = vector.shape_cast %24 : vector<1x64x128xbf16> to vector<64x128xbf16>
    %cst_21 = arith.constant dense<0.000000e+00> : vector<64x128xf32>
    %26 = tpu.matmul %23, %25, %cst_21 {dimension_numbers = #tpu.dot_dimension_numbers<[1], [0], [0], [1], [0, 0, 1, 1], [], []>} : vector<64x64xbf16>, vector<64x128xbf16>, vector<64x128xf32> -> vector<64x128xf32>
    %c0_22 = arith.constant 0 : index
    %c0_23 = arith.constant 0 : index
    %c0_24 = arith.constant 0 : index
    %27 = vector.load %arg7[%c0_22, %c0_23, %c0_24] : memref<1x1x128xf32, #tpu.memory_space<vmem>>, vector<1x1x128xf32>
    %28 = vector.shape_cast %27 : vector<1x1x128xf32> to vector<1x128xf32>
    %29 = vector.broadcast %28 : vector<1x128xf32> to vector<64x128xf32>
    %30 = arith.addf %26, %29 : vector<64x128xf32>
    %cst_25 = arith.constant 0.000000e+00 : f32
    %31 = vector.broadcast %cst_25 : f32 to vector<64x128xf32>
    %32 = arith.maximumf %30, %31 : vector<64x128xf32>
    %33 = arith.truncf %32 : vector<64x128xf32> to vector<64x128xbf16>
    %c0_26 = arith.constant 0 : index
    %c0_27 = arith.constant 0 : index
    %c0_28 = arith.constant 0 : index
    %34 = vector.load %arg8[%c0_26, %c0_27, %c0_28] : memref<1x128x256xbf16, #tpu.memory_space<vmem>>, vector<1x128x256xbf16>
    %35 = vector.shape_cast %34 : vector<1x128x256xbf16> to vector<128x256xbf16>
    %cst_29 = arith.constant dense<0.000000e+00> : vector<64x256xf32>
    %36 = tpu.matmul %33, %35, %cst_29 {dimension_numbers = #tpu.dot_dimension_numbers<[1], [0], [0], [1], [0, 0, 1, 1], [], []>} : vector<64x128xbf16>, vector<128x256xbf16>, vector<64x256xf32> -> vector<64x256xf32>
    %c0_30 = arith.constant 0 : index
    %c0_31 = arith.constant 0 : index
    %c0_32 = arith.constant 0 : index
    %37 = vector.load %arg9[%c0_30, %c0_31, %c0_32] : memref<1x1x256xf32, #tpu.memory_space<vmem>>, vector<1x1x256xf32>
    %38 = vector.shape_cast %37 : vector<1x1x256xf32> to vector<1x256xf32>
    %39 = vector.broadcast %38 : vector<1x256xf32> to vector<64x256xf32>
    %40 = arith.addf %36, %39 : vector<64x256xf32>
    %cst_33 = arith.constant 0.000000e+00 : f32
    %41 = vector.broadcast %cst_33 : f32 to vector<64x256xf32>
    %42 = arith.maximumf %40, %41 : vector<64x256xf32>
    %43 = arith.truncf %42 : vector<64x256xf32> to vector<64x256xbf16>
    %c0_34 = arith.constant 0 : index
    %c0_35 = arith.constant 0 : index
    %c0_36 = arith.constant 0 : index
    %44 = vector.load %arg10[%c0_34, %c0_35, %c0_36] : memref<1x256x512xbf16, #tpu.memory_space<vmem>>, vector<1x256x512xbf16>
    %45 = vector.shape_cast %44 : vector<1x256x512xbf16> to vector<256x512xbf16>
    %cst_37 = arith.constant dense<0.000000e+00> : vector<64x512xf32>
    %46 = tpu.matmul %43, %45, %cst_37 {dimension_numbers = #tpu.dot_dimension_numbers<[1], [0], [0], [1], [0, 0, 1, 1], [], []>} : vector<64x256xbf16>, vector<256x512xbf16>, vector<64x512xf32> -> vector<64x512xf32>
    %c0_38 = arith.constant 0 : index
    %c0_39 = arith.constant 0 : index
    %c0_40 = arith.constant 0 : index
    %47 = vector.load %arg11[%c0_38, %c0_39, %c0_40] : memref<1x1x512xf32, #tpu.memory_space<vmem>>, vector<1x1x512xf32>
    %48 = vector.shape_cast %47 : vector<1x1x512xf32> to vector<1x512xf32>
    %49 = vector.broadcast %48 : vector<1x512xf32> to vector<64x512xf32>
    %50 = arith.addf %46, %49 : vector<64x512xf32>
    %cst_41 = arith.constant 0.000000e+00 : f32
    %51 = vector.broadcast %cst_41 : f32 to vector<64x512xf32>
    %52 = arith.maximumf %50, %51 : vector<64x512xf32>
    %53 = arith.truncf %52 : vector<64x512xf32> to vector<64x512xbf16>
    %c0_42 = arith.constant 0 : index
    %c0_43 = arith.constant 0 : index
    %c0_44 = arith.constant 0 : index
    %54 = vector.load %arg12[%c0_42, %c0_43, %c0_44] : memref<1x512x1024xbf16, #tpu.memory_space<vmem>>, vector<1x512x1024xbf16>
    %55 = vector.shape_cast %54 : vector<1x512x1024xbf16> to vector<512x1024xbf16>
    %cst_45 = arith.constant dense<0.000000e+00> : vector<64x1024xf32>
    %56 = tpu.matmul %53, %55, %cst_45 {dimension_numbers = #tpu.dot_dimension_numbers<[1], [0], [0], [1], [0, 0, 1, 1], [], []>} : vector<64x512xbf16>, vector<512x1024xbf16>, vector<64x1024xf32> -> vector<64x1024xf32>
    %c0_46 = arith.constant 0 : index
    %c0_47 = arith.constant 0 : index
    %c0_48 = arith.constant 0 : index
    %57 = vector.load %arg13[%c0_46, %c0_47, %c0_48] : memref<1x1x1024xf32, #tpu.memory_space<vmem>>, vector<1x1x1024xf32>
    %58 = vector.shape_cast %57 : vector<1x1x1024xf32> to vector<1x1024xf32>
    %59 = vector.broadcast %58 : vector<1x1024xf32> to vector<64x1024xf32>
    %60 = arith.addf %56, %59 : vector<64x1024xf32>
    %cst_49 = arith.constant 0.000000e+00 : f32
    %61 = vector.broadcast %cst_49 : f32 to vector<64x1024xf32>
    %62 = arith.maximumf %60, %61 : vector<64x1024xf32>
    %63 = vector.shape_cast %62 : vector<64x1024xf32> to vector<2x32x1024xf32>
    %cst_50 = arith.constant dense<0xFF800000> : vector<2x1024xf32>
    %64 = vector.multi_reduction <maximumf>, %63, %cst_50 [1] : vector<2x32x1024xf32> to vector<2x1024xf32>
    %65 = vector.shape_cast %52 : vector<64x512xf32> to vector<2x32x512xf32>
    %cst_51 = arith.constant dense<0xFF800000> : vector<2x512xf32>
    %66 = vector.multi_reduction <maximumf>, %65, %cst_51 [1] : vector<2x32x512xf32> to vector<2x512xf32>
    %67 = vector.shape_cast %42 : vector<64x256xf32> to vector<2x32x256xf32>
    %cst_52 = arith.constant dense<0xFF800000> : vector<2x256xf32>
    %68 = vector.multi_reduction <maximumf>, %67, %cst_52 [1] : vector<2x32x256xf32> to vector<2x256xf32>
    %69 = vector.shape_cast %32 : vector<64x128xf32> to vector<2x32x128xf32>
    %cst_53 = arith.constant dense<0xFF800000> : vector<2x128xf32>
    %70 = vector.multi_reduction <maximumf>, %69, %cst_53 [1] : vector<2x32x128xf32> to vector<2x128xf32>
    %71 = arith.index_cast %arg0 : i32 to index
    %72 = memref.load %arg14[%71] : memref<4xf32, #tpu.memory_space<smem>>
    %c0_i32 = arith.constant 0 : i32
    %73 = arith.cmpi eq, %arg0, %c0_i32 : i32
    %74 = arith.extui %73 : i1 to i32
    %c0_i32_54 = arith.constant 0 : i32
    %75 = arith.cmpi ne, %74, %c0_i32_54 : i32
    scf.if %75 {
      %cst_69 = arith.constant 0.000000e+00 : f32
      %99 = vector.broadcast %cst_69 : f32 to vector<2x1920xf32>
      %c0_70 = arith.constant 0 : index
      %c0_71 = arith.constant 0 : index
      %100 = vector.load %arg16[%c0_70, %c0_71] : memref<2x1920xf32, #tpu.memory_space<vmem>>, vector<2x1920xf32>
      tpu.vector_store %arg16[%c0_70, %c0_71], %99 {strides = array<i32>} : memref<2x1920xf32, #tpu.memory_space<vmem>>, vector<2x1920xf32>,
    } else {
    }
    %c0_55 = arith.constant 0 : index
    %c0_56 = arith.constant 0 : index
    %76 = vector.load %arg16[%c0_55, %c0_56] : memref<2x1920xf32, #tpu.memory_space<vmem>>, vector<2x1024xf32>
    %77 = vector.broadcast %72 : f32 to vector<2x1024xf32>
    %78 = arith.mulf %77, %64 : vector<2x1024xf32>
    %79 = arith.addf %76, %78 : vector<2x1024xf32>
    %c0_57 = arith.constant 0 : index
    %c0_58 = arith.constant 0 : index
    %80 = vector.load %arg16[%c0_57, %c0_58] : memref<2x1920xf32, #tpu.memory_space<vmem>>, vector<2x1024xf32>
    tpu.vector_store %arg16[%c0_57, %c0_58], %79 {strides = array<i32>} : memref<2x1920xf32, #tpu.memory_space<vmem>>, vector<2x1024xf32>,
    %c0_59 = arith.constant 0 : index
    %c1024 = arith.constant 1024 : index
    %81 = vector.load %arg16[%c0_59, %c1024] : memref<2x1920xf32, #tpu.memory_space<vmem>>, vector<2x512xf32>
    %82 = vector.broadcast %72 : f32 to vector<2x512xf32>
    %83 = arith.mulf %82, %66 : vector<2x512xf32>
    %84 = arith.addf %81, %83 : vector<2x512xf32>
    %c0_60 = arith.constant 0 : index
    %c1024_61 = arith.constant 1024 : index
    %85 = vector.load %arg16[%c0_60, %c1024_61] : memref<2x1920xf32, #tpu.memory_space<vmem>>, vector<2x512xf32>
    tpu.vector_store %arg16[%c0_60, %c1024_61], %84 {strides = array<i32>} : memref<2x1920xf32, #tpu.memory_space<vmem>>, vector<2x512xf32>,
    %c0_62 = arith.constant 0 : index
    %c1536 = arith.constant 1536 : index
    %86 = vector.load %arg16[%c0_62, %c1536] : memref<2x1920xf32, #tpu.memory_space<vmem>>, vector<2x256xf32>
    %87 = vector.broadcast %72 : f32 to vector<2x256xf32>
    %88 = arith.mulf %87, %68 : vector<2x256xf32>
    %89 = arith.addf %86, %88 : vector<2x256xf32>
    %c0_63 = arith.constant 0 : index
    %c1536_64 = arith.constant 1536 : index
    %90 = vector.load %arg16[%c0_63, %c1536_64] : memref<2x1920xf32, #tpu.memory_space<vmem>>, vector<2x256xf32>
    tpu.vector_store %arg16[%c0_63, %c1536_64], %89 {strides = array<i32>} : memref<2x1920xf32, #tpu.memory_space<vmem>>, vector<2x256xf32>,
    %c0_65 = arith.constant 0 : index
    %c1792 = arith.constant 1792 : index
    %91 = vector.load %arg16[%c0_65, %c1792] : memref<2x1920xf32, #tpu.memory_space<vmem>>, vector<2x128xf32>
    %92 = vector.broadcast %72 : f32 to vector<2x128xf32>
    %93 = arith.mulf %92, %70 : vector<2x128xf32>
    %94 = arith.addf %91, %93 : vector<2x128xf32>
    %c0_66 = arith.constant 0 : index
    %c1792_67 = arith.constant 1792 : index
    %95 = vector.load %arg16[%c0_66, %c1792_67] : memref<2x1920xf32, #tpu.memory_space<vmem>>, vector<2x128xf32>
    tpu.vector_store %arg16[%c0_66, %c1792_67], %94 {strides = array<i32>} : memref<2x1920xf32, #tpu.memory_space<vmem>>, vector<2x128xf32>,
    %c2_i32 = arith.constant 2 : i32
    %96 = arith.cmpi eq, %arg0, %c2_i32 : i32
    %97 = arith.extui %96 : i1 to i32
    %c0_i32_68 = arith.constant 0 : i32
    %98 = arith.cmpi ne, %97, %c0_i32_68 : i32
    scf.if %98 {
      %c0_69 = arith.constant 0 : index
      %c0_70 = arith.constant 0 : index
      %99 = vector.load %arg16[%c0_69, %c0_70] : memref<2x1920xf32, #tpu.memory_space<vmem>>, vector<2x1920xf32>
      %c3 = arith.constant 3 : index
      %100 = memref.load %arg14[%c3] : memref<4xf32, #tpu.memory_space<smem>>
      %101 = vector.broadcast %100 : f32 to vector<2x1920xf32>
      %102 = arith.addf %99, %101 : vector<2x1920xf32>
      %cst_71 = arith.constant 0.000000e+00 : f32
      %103 = vector.broadcast %cst_71 : f32 to vector<2x1920xf32>
      %104 = arith.maximumf %102, %103 : vector<2x1920xf32>
      %c0_72 = arith.constant 0 : index
      %c0_73 = arith.constant 0 : index
      %105 = vector.load %arg15[%c0_72, %c0_73] : memref<2x1920xf32, #tpu.memory_space<vmem>>, vector<2x1920xf32>
      tpu.vector_store %arg15[%c0_72, %c0_73], %104 {strides = array<i32>} : memref<2x1920xf32, #tpu.memory_space<vmem>>, vector<2x1920xf32>,
    } else {
    }
    return
  }
  func.func @transform_0(%arg0: i32) -> (i32, i32, i32, i32) {
    %c0_i32 = arith.constant 0 : i32
    %c0_i32_0 = arith.constant 0 : i32
    %c0_i32_1 = arith.constant 0 : i32
    %c0_i32_2 = arith.constant 0 : i32
    return %arg0, %c0_i32, %c0_i32_0, %c0_i32_1 : i32, i32, i32, i32
  }
  func.func @transform_1(%arg0: i32) -> (i32, i32, i32) {
    %c0_i32 = arith.constant 0 : i32
    %c0_i32_0 = arith.constant 0 : i32
    %c0_i32_1 = arith.constant 0 : i32
    return %arg0, %c0_i32, %c0_i32_0 : i32, i32, i32
  }
  func.func @transform_2(%arg0: i32) -> (i32, i32, i32) {
    %c0_i32 = arith.constant 0 : i32
    %c0_i32_0 = arith.constant 0 : i32
    %c0_i32_1 = arith.constant 0 : i32
    return %arg0, %c0_i32, %c0_i32_0 : i32, i32, i32
  }
  func.func @transform_3(%arg0: i32) -> (i32, i32, i32) {
    %c0_i32 = arith.constant 0 : i32
    %c0_i32_0 = arith.constant 0 : i32
    %c0_i32_1 = arith.constant 0 : i32
    return %arg0, %c0_i32, %c0_i32_0 : i32, i32, i32
  }
  func.func @transform_4(%arg0: i32) -> (i32, i32, i32) {
    %c0_i32 = arith.constant 0 : i32
    %c0_i32_0 = arith.constant 0 : i32
    %c0_i32_1 = arith.constant 0 : i32
    return %arg0, %c0_i32, %c0_i32_0 : i32, i32, i32
  }
  func.func @transform_5(%arg0: i32) -> (i32, i32, i32) {
    %c0_i32 = arith.constant 0 : i32
    %c0_i32_0 = arith.constant 0 : i32
    %c0_i32_1 = arith.constant 0 : i32
    return %arg0, %c0_i32, %c0_i32_0 : i32, i32, i32
  }
  func.func @transform_6(%arg0: i32) -> (i32, i32, i32) {
    %c0_i32 = arith.constant 0 : i32
    %c0_i32_0 = arith.constant 0 : i32
    %c0_i32_1 = arith.constant 0 : i32
    return %arg0, %c0_i32, %c0_i32_0 : i32, i32, i32
  }
  func.func @transform_7(%arg0: i32) -> (i32, i32, i32) {
    %c0_i32 = arith.constant 0 : i32
    %c0_i32_0 = arith.constant 0 : i32
    %c0_i32_1 = arith.constant 0 : i32
    return %arg0, %c0_i32, %c0_i32_0 : i32, i32, i32
  }
  func.func @transform_8(%arg0: i32) -> (i32, i32, i32) {
    %c0_i32 = arith.constant 0 : i32
    %c0_i32_0 = arith.constant 0 : i32
    %c0_i32_1 = arith.constant 0 : i32
    return %arg0, %c0_i32, %c0_i32_0 : i32, i32, i32
  }
  func.func @transform_9(%arg0: i32) -> (i32, i32, i32) {
    %c0_i32 = arith.constant 0 : i32
    %c0_i32_0 = arith.constant 0 : i32
    %c0_i32_1 = arith.constant 0 : i32
    return %arg0, %c0_i32, %c0_i32_0 : i32, i32, i32
  }
  func.func @transform_10(%arg0: i32) -> (i32, i32, i32) {
    %c0_i32 = arith.constant 0 : i32
    %c0_i32_0 = arith.constant 0 : i32
    %c0_i32_1 = arith.constant 0 : i32
    return %arg0, %c0_i32, %c0_i32_0 : i32, i32, i32
  }
  func.func @transform_11(%arg0: i32) -> (i32, i32, i32) {
    %c0_i32 = arith.constant 0 : i32
    %c0_i32_0 = arith.constant 0 : i32
    %c0_i32_1 = arith.constant 0 : i32
    return %arg0, %c0_i32, %c0_i32_0 : i32, i32, i32
  }
  func.func @transform_12(%arg0: i32) -> (i32, i32, i32) {
    %c0_i32 = arith.constant 0 : i32
    %c0_i32_0 = arith.constant 0 : i32
    %c0_i32_1 = arith.constant 0 : i32
    return %arg0, %c0_i32, %c0_i32_0 : i32, i32, i32
  }
  func.func @transform_13(%arg0: i32) -> i32 {
    %c0_i32 = arith.constant 0 : i32
    %c0_i32_0 = arith.constant 0 : i32
    return %c0_i32 : i32
  }
  func.func @transform_14(%arg0: i32) -> (i32, i32) {
    %c0_i32 = arith.constant 0 : i32
    %c0_i32_0 = arith.constant 0 : i32
    %c0_i32_1 = arith.constant 0 : i32
    return %c0_i32, %c0_i32_0 : i32, i32
  }
}

</mosaic_0001>

<bundles_post_ra>
// kernel: tpu_custom_call.1
= control target key start
LH: loop header
LB: loop body
LE: loop exit
PB: predicated region body
PF: predicated region fallthrough
CT: control target
= control target key end

     0   :  { %s8214_s0 = inlined_call_operand.vmem [shape: f32[3,2,32,3], index: 0, kind: input, shape index: {}]   ;;  %s8215_s1 = inlined_call_operand.hbm [shape: bf16[3,3,64], index: 1, kind: input, shape index: {}]   ;;  %s8216_s2 = inlined_call_operand.hbm [shape: f32[3,1,64], index: 2, kind: input, shape index: {}]   ;;  %s8217_s3 = inlined_call_operand.hbm [shape: bf16[3,64,64], index: 3, kind: input, shape index: {}]   ;;  %s8218_s4 = inlined_call_operand.hbm [shape: f32[3,1,64], index: 4, kind: input, shape index: {}]   ;;  %s8219_s5 = inlined_call_operand.hbm [shape: bf16[3,64,128], index: 5, kind: input, shape index: {}]   ;;  %s8220_s6 = inlined_call_operand.hbm [shape: f32[3,1,128], index: 6, kind: input, shape index: {}]   ;;  %s8221_s7 = inlined_call_operand.hbm [shape: bf16[3,128,256], index: 7, kind: input, shape index: {}]   ;;  %s8222_s8 = inlined_call_operand.hbm [shape: f32[3,1,256], index: 8, kind: input, shape index: {}]   ;;  %s8223_s9 = inlined_call_operand.hbm [shape: bf16[3,256,512], index: 9, kind: input, shape index: {}]   ;;  %s8224_s10 = inlined_call_operand.hbm [shape: f32[3,1,512], index: 10, kind: input, shape index: {}]   ;;  %s8225_s11 = inlined_call_operand.hbm [shape: bf16[3,512,1024], index: 11, kind: input, shape index: {}]   ;;  %s8226_s12 = inlined_call_operand.hbm [shape: f32[3,1,1024], index: 12, kind: input, shape index: {}]   ;;  %s8227_s13 = inlined_call_operand.hbm [shape: f32[4], index: 13, kind: input, shape index: {}]   ;;  %s8228_s14 = inlined_call_operand.hbm [shape: f32[2,1920], index: 14, kind: output, shape index: {}]  }
   0x1   :  { %8247 = sst [smem:[#allocation41_spill]] %s8214_s0 }
   0x2   :  { %8248 = sst [smem:[#allocation42_spill]] %s8215_s1 }
   0x3   :  { %8249 = sst [smem:[#allocation43_spill]] %s8216_s2 }
   0x4   :  { %8250 = sst [smem:[#allocation44_spill]] %s8218_s4 }
   0x5   :  { %8251 = sst [smem:[#allocation45_spill]] %s8220_s6 }
   0x6   :  { %8252 = sst [smem:[#allocation46_spill]] %s8222_s8 }
   0x7   :  { %8253 = sst [smem:[#allocation47_spill]] %s8228_s14 }
   0x8   :  { %19 = vsyncpa [#allocation4], 0 }
   0x9   :  { %21 = vsyncpa [#allocation4 + $0x1], 0 }
   0xa   :  { %22 = vsyncpa [#allocation8], 0 }
   0xb   :  { %24 = vsyncpa [#allocation8 + $0x1], 0 }
   0xc   :  { %25 = vsyncpa [#allocation11], 0 }
   0xd   :  { %27 = vsyncpa [#allocation11 + $0x1], 0 }
   0xe   :  { %28 = vsyncpa [#allocation14], 0 }
   0xf   :  { %30 = vsyncpa [#allocation14 + $0x1], 0 }
  0x10   :  { %31 = vsyncpa [#allocation17], 0 }
  0x11   :  { %33 = vsyncpa [#allocation17 + $0x1], 0 }
  0x12   :  { %34 = vsyncpa [#allocation20], 0 }
  0x13   :  { %36 = vsyncpa [#allocation20 + $0x1], 0 }
  0x14   :  { %37 = vsyncpa [#allocation23], 0 }
  0x15   :  { %39 = vsyncpa [#allocation23 + $0x1], 0 }
  0x16   :  { %40 = vsyncpa [#allocation6], 0 }
  0x17   :  { %41 = vsyncpa [#allocation5], 0  ;;  %s6607_s29 = smov 0   ;;  %s6609_s30 = smov 0  }
  0x18   :  { %s6611_s15 = smov 0   ;;  %s6613_s16 = smov 0  }
  0x19 LB: > { %8254 = sst [smem:[#allocation35_spill]] %s6500_s15  ;;  %s6628_s17 = sadd.s32 1, %s6504_s16   ;;  %s6504_s16 = sphi %s6613_s16, %s8321_s16   ;;  %s6500_s15 = sphi %s6611_s15, %s8323_s15   ;;  %s6496_s30 = sphi %s6609_s30, %s8325_s30   ;;  %s6492_s29 = sphi %s6607_s29, %s8324_s29  }
  0x1a   : > { %8255 = sst [smem:[#allocation36_spill]] %s6628_s17  ;;  %s80_s18 = sadd.s32 1, %s6500_s15 }
  0x1b   : > { %s77_s19 = ssub.s32 %s6504_s16, %s6628_s17  ;;  %p87_p0 = scmp.ne.s32.totalorder %s6500_s15, %s6496_s30 }
  0x1c   : > { %p78_p1 = scmp.eq.s32.totalorder %s77_s19, 0  ;;  %p88_p2 = scmp.eq.s32.totalorder %s6504_s16, 0 }
  0x1d   : > { %p5861_p3 = scmp.lt.s32.totalorder %s6504_s16, 3  ;;  %s6641_s21 = sand.u32 1, %s6500_s15  }
  0x1e   : > { %s6638_s20 = scalar_select %p78_p1, %s6500_s15, %s80_s18  }
  0x1f   : > { %p89_p4 = por %p88_p2, %p87_p0  ;;  %s6644_s22 = sand.u32 1, %s6504_s16  }
  0x20   : > { %8256 = sst [smem:[#allocation37_spill]] %s6638_s20  ;;  %s6651_s24 = sshll.u32 %s6504_s16, 4 }
  0x21   : > { %p6646_p5 = pnand %p5861_p3, %p89_p4  ;;  %s483_s25 = scalar_lea.vmem [#allocation7], %s6641_s21 }
  0x22   : > { %s490_s26 = sshll.u32 %s483_s25, 4  ;;  %s8258_s2 = sld [smem:[#allocation43_spill]]  ;;  %s6660_s26 = int_to_ptr.vmem [resolvable:$true] %s490_s26 }
  0x23   : > { %s8257_s23 = scalar_select %p6646_p5, 1, 0 }
  0x24   : > { %p6667_p7 = pneg %p6646_p5 }
  0x28   : > { %s6658_s18 = scalar_lea.hbm %s8258_s2, %s6651_s24  ;;  %s6044_s28 = scalar_lea.hbm %s8258_s2, 48 }
  0x29   : > { %s6039_s20 = scalar_lea.hbm %s6658_s18, 16  ;;  %p6045_p10 = scmp.lt.u32.totalorder %s6658_s18, %s8258_s2 }
  0x2a   : > { %p6040_p6 = scmp.ne.s32.totalorder %s6658_s18, %s6039_s20  ;;  %p6046_p11 = scmp.lt.u32.totalorder %s6044_s28, %s6039_s20 }
  0x2b   : > { %p6048_p13 = scmp.lt.u32.totalorder %s6039_s20, %s6658_s18 }
  0x2c   : > { %p6042_p8 = pnand %p6667_p7, %p6040_p6  ;;  %p6047_p12 = por %p6046_p11, %p6045_p10 }
  0x2e   : > { %p6043_p9 = pneg %p6042_p8  ;;  %p6049_p0 = por %p6048_p13, %p6047_p12 }
  0x30   : > { %p6050_p1 = pnand %p6049_p0, %p6043_p9 }
  0x32   : > { %6053 = shalt.err (!%p6050_p1)
}
  0x33   : > { %s6054_s19 = scalar_lea.vmem %s6660_s26, 16  ;;  %s6506_s25 = smov [#allocation7]  }
  0x34   : > { %p6055_p2 = scmp.ne.s32.totalorder %s6660_s26, %s6054_s19  ;;  %s6059_s27 = sshll.u32 %s6506_s25, 4  ;;  %s6060_s27 = int_to_ptr.vmem [resolvable:$false] %s6059_s27 }
  0x35   : > { %s6061_s14 = scalar_lea.vmem %s6060_s27, 32  ;;  %p6062_p6 = scmp.lt.s32.totalorder %s6660_s26, %s6060_s27 }
  0x36   : > { %p6057_p3 = pnand %p6055_p2, %p6667_p7  ;;  %p6063_p8 = scmp.lt.s32.totalorder %s6061_s14, %s6054_s19 }
  0x38   : > { %p6058_p4 = pneg %p6057_p3  ;;  %p6064_p10 = por %p6063_p8, %p6062_p6 }
  0x3a   : > { %p6065_p11 = pnand %p6064_p10, %p6058_p4 }
  0x3c   : > { %6068 = shalt.err (!%p6065_p11)
}
  0x3d   : > { %s8260_s17 = scalar_lea.sflag [#allocation8], %s6644_s22  ;;  %s8261_s4 = sld [smem:[#allocation44_spill]] }
  0x3e   : > { %5829 = dma.hbm_to_vmem [thread:$0]  (!%p6646_p5), %s6658_s18, 16, %s6660_s26, %s8260_s17  }
  0x3f   : > { %s521_s19 = scalar_lea.vmem [#allocation10], %s6641_s21 }
  0x40   : > { %s528_s27 = sshll.u32 %s521_s19, 4  ;;  %s529_s27 = int_to_ptr.vmem [resolvable:$true] %s528_s27 }
  0x43   : > { %s6696_s25 = scalar_lea.hbm %s8261_s4, %s6651_s24  ;;  %s6074_s18 = scalar_lea.hbm %s8261_s4, 48 }
  0x44   : > { %s6069_s2 = scalar_lea.hbm %s6696_s25, 16  ;;  %p6075_p0 = scmp.lt.u32.totalorder %s6696_s25, %s8261_s4 }
  0x45   : > { %p6070_p9 = scmp.ne.s32.totalorder %s6696_s25, %s6069_s2  ;;  %p6076_p1 = scmp.lt.u32.totalorder %s6074_s18, %s6069_s2 }
  0x46   : > { %p6078_p3 = scmp.lt.u32.totalorder %s6069_s2, %s6696_s25 }
  0x47   : > { %p6072_p12 = pnand %p6070_p9, %p6667_p7  ;;  %p6077_p2 = por %p6076_p1, %p6075_p0 }
  0x49   : > { %p6073_p13 = pneg %p6072_p12  ;;  %p6079_p4 = por %p6078_p3, %p6077_p2 }
  0x4b   : > { %p6080_p6 = pnand %p6079_p4, %p6073_p13 }
  0x4d   : > { %6083 = shalt.err (!%p6080_p6)
}
  0x4e   : > { %s6084_s28 = scalar_lea.vmem %s529_s27, 16  ;;  %s6507_s19 = smov [#allocation10]  }
  0x4f   : > { %p6085_p8 = scmp.ne.s32.totalorder %s529_s27, %s6084_s28  ;;  %s6089_s14 = sshll.u32 %s6507_s19, 4  ;;  %s6090_s14 = int_to_ptr.vmem [resolvable:$false] %s6089_s14 }
  0x50   : > { %s6091_s0 = scalar_lea.vmem %s6090_s14, 32  ;;  %p6092_p9 = scmp.lt.s32.totalorder %s529_s27, %s6090_s14 }
  0x51   : > { %p6087_p10 = pnand %p6085_p8, %p6667_p7  ;;  %p6093_p12 = scmp.lt.s32.totalorder %s6091_s0, %s6084_s28 }
  0x53   : > { %p6088_p11 = pneg %p6087_p10  ;;  %p6094_p5 = por %p6093_p12, %p6092_p9 }
  0x55   : > { %p6095_p0 = pnand %p6094_p5, %p6088_p11 }
  0x57   : > { %6098 = shalt.err (!%p6095_p0)
}
  0x58   : > { %p8262_p1 = scmp.ne.s32.totalorder %s8257_s23, 0  ;;  %s8263_s2 = scalar_lea.sflag [#allocation11], %s6644_s22 }
  0x59   : > { %s8264_s6 = sld [smem:[#allocation45_spill]]  ;;  %s559_s14 = scalar_lea.vmem [#allocation13], %s6641_s21 }
  0x5a   : > { %5835 = dma.hbm_to_vmem [thread:$0]  (!%p8262_p1), %s6696_s25, 16, %s529_s27, %s8263_s2  }
  0x5b   : > { %s566_s20 = sshll.u32 %s559_s14, 4  ;;  %s8236_s28 = sshll.u32 %s6641_s21, 1  ;;  %s6726_s20 = int_to_ptr.vmem [resolvable:$true] %s566_s20 }
  0x5c   : > { %s8235_s19 = scalar_lea.sflag [#allocation14], %s6644_s22 }
  0x5f   : > { %s6723_s17 = scalar_lea.hbm %s8264_s6, %s6651_s24  ;;  %s6104_s24 = scalar_lea.hbm %s8264_s6, 48 }
  0x60   : > { %s6099_s0 = scalar_lea.hbm %s6723_s17, 16  ;;  %p6105_p3 = scmp.lt.u32.totalorder %s6723_s17, %s8264_s6 }
  0x61   : > { %p6100_p5 = scmp.ne.s32.totalorder %s6723_s17, %s6099_s0  ;;  %p6106_p4 = scmp.lt.u32.totalorder %s6104_s24, %s6099_s0 }
  0x62   : > { %p6108_p8 = scmp.lt.u32.totalorder %s6099_s0, %s6723_s17 }
  0x63   : > { %p6102_p13 = pnand %p6100_p5, %p6667_p7  ;;  %p6107_p6 = por %p6106_p4, %p6105_p3 }
  0x65   : > { %p6103_p2 = pneg %p6102_p13  ;;  %p6109_p10 = por %p6108_p8, %p6107_p6 }
  0x67   : > { %p6110_p11 = pnand %p6109_p10, %p6103_p2 }
  0x69   : > { %6113 = shalt.err (!%p6110_p11)
}
  0x6a   : > { %s6114_s18 = scalar_lea.vmem %s6726_s20, 16  ;;  %s6508_s14 = smov [#allocation13]  }
  0x6b   : > { %p6115_p9 = scmp.ne.s32.totalorder %s6726_s20, %s6114_s18  ;;  %s6119_s25 = sshll.u32 %s6508_s14, 4  ;;  %s6120_s25 = int_to_ptr.vmem [resolvable:$false] %s6119_s25 }
  0x6c   : > { %s6121_s27 = scalar_lea.vmem %s6120_s25, 32  ;;  %p6122_p5 = scmp.lt.s32.totalorder %s6726_s20, %s6120_s25 }
  0x6d   : > { %p6117_p12 = pnand %p6115_p9, %p6667_p7  ;;  %p6123_p13 = scmp.lt.s32.totalorder %s6121_s27, %s6114_s18 }
  0x6f   : > { %p6118_p0 = pneg %p6117_p12  ;;  %p6124_p3 = por %p6123_p13, %p6122_p5 }
  0x71   : > { %p6125_p4 = pnand %p6124_p3, %p6118_p0 }
  0x73   : > { %6128 = shalt.err (!%p6125_p4)
}
  0x74   : > { %5841 = dma.hbm_to_vmem [thread:$0]  (!%p8262_p1), %s6723_s17, 16, %s6726_s20, %s8235_s19  }
  0x75   : > { %s5180_s0 = sshll.u32 %s6504_s16, 5  ;;  %s8265_s8 = sld [smem:[#allocation46_spill]] }
  0x76   : > { %s598_s18 = scalar_lea.vmem [#allocation16], %s8236_s28  ;;  %s5199_s25 = sshll.u32 %s6641_s21, 2 }
  0x77   : > { %s606_s14 = sshll.u32 %s598_s18, 4  ;;  %s8237_s27 = scalar_lea.sflag [#allocation17], %s6644_s22  ;;  %s6763_s14 = int_to_ptr.vmem [resolvable:$true] %s606_s14 }
  0x7b   : > { %s6759_s26 = scalar_lea.hbm %s8265_s8, %s5180_s0  ;;  %s6134_s24 = scalar_lea.hbm %s8265_s8, 96 }
  0x7c   : > { %s6129_s4 = scalar_lea.hbm %s6759_s26, 32  ;;  %p6135_p10 = scmp.lt.u32.totalorder %s6759_s26, %s8265_s8 }
  0x7d   : > { %p6130_p2 = scmp.ne.s32.totalorder %s6759_s26, %s6129_s4  ;;  %p6136_p11 = scmp.lt.u32.totalorder %s6134_s24, %s6129_s4 }
  0x7e   : > { %p6138_p12 = scmp.lt.u32.totalorder %s6129_s4, %s6759_s26 }
  0x7f   : > { %p6132_p6 = pnand %p6130_p2, %p6667_p7  ;;  %p6137_p9 = por %p6136_p11, %p6135_p10 }
  0x81   : > { %p6133_p8 = pneg %p6132_p6  ;;  %p6139_p0 = por %p6138_p12, %p6137_p9 }
  0x83   : > { %p6140_p5 = pnand %p6139_p0, %p6133_p8 }
  0x85   : > { %6143 = shalt.err (!%p6140_p5)
}
  0x86   : > { %s6144_s18 = scalar_lea.vmem %s6763_s14, 32  ;;  %s6509_s17 = smov [#allocation16]  }
  0x87   : > { %p6145_p13 = scmp.ne.s32.totalorder %s6763_s14, %s6144_s18  ;;  %s6149_s20 = sshll.u32 %s6509_s17, 4  ;;  %s6150_s20 = int_to_ptr.vmem [resolvable:$false] %s6149_s20 }
  0x88   : > { %s6151_s19 = scalar_lea.vmem %s6150_s20, 64  ;;  %p6152_p2 = scmp.lt.s32.totalorder %s6763_s14, %s6150_s20 }
  0x89   : > { %p6147_p3 = pnand %p6145_p13, %p6667_p7  ;;  %p6153_p6 = scmp.lt.s32.totalorder %s6151_s19, %s6144_s18 }
  0x8b   : > { %p6148_p4 = pneg %p6147_p3  ;;  %p6154_p10 = por %p6153_p6, %p6152_p2 }
  0x8d   : > { %p6155_p11 = pnand %p6154_p10, %p6148_p4 }
  0x8f   : > { %6158 = shalt.err (!%p6155_p11)
}
  0x90   : > { %5847 = dma.hbm_to_vmem [thread:$0]  (!%p8262_p1), %s6759_s26, 32, %s6763_s14, %s8237_s27  }
  0x91   : > { %s5592_s4 = sshll.u32 %s6504_s16, 6  ;;  %s638_s18 = scalar_lea.vmem [#allocation19], %s5199_s25 }
  0x92   : > { %s6794_s17 = scalar_lea.hbm %s8224_s10, %s5592_s4  ;;  %s646_s20 = sshll.u32 %s638_s18, 4  ;;  %s647_s20 = int_to_ptr.vmem [resolvable:$true] %s646_s20 }
  0x93   : > { %s8239_s19 = scalar_lea.sflag [#allocation20], %s6644_s22  ;;  %s6159_s28 = scalar_lea.hbm %s6794_s17, 64 }
  0x94   : > { %p6160_p8 = scmp.ne.s32.totalorder %s6794_s17, %s6159_s28  ;;  %s6164_s24 = scalar_lea.hbm %s8224_s10, 192 }
  0x95   : > { %p6165_p0 = scmp.lt.u32.totalorder %s6794_s17, %s8224_s10  ;;  %p6166_p5 = scmp.lt.u32.totalorder %s6164_s24, %s6159_s28 }
  0x96   : > { %p6162_p9 = pnand %p6160_p8, %p6667_p7  ;;  %p6168_p3 = scmp.lt.u32.totalorder %s6159_s28, %s6794_s17 }
  0x97   : > { %p6167_p13 = por %p6166_p5, %p6165_p0 }
  0x98   : > { %p6163_p12 = pneg %p6162_p9 }
  0x99   : > { %p6169_p4 = por %p6168_p3, %p6167_p13 }
  0x9b   : > { %p6170_p2 = pnand %p6169_p4, %p6163_p12 }
  0x9d   : > { %6173 = shalt.err (!%p6170_p2)
}
  0x9e   : > { %s6174_s25 = scalar_lea.vmem %s647_s20, 64  ;;  %s6510_s18 = smov [#allocation19]  }
  0x9f   : > { %p6175_p6 = scmp.ne.s32.totalorder %s647_s20, %s6174_s25  ;;  %s6179_s27 = sshll.u32 %s6510_s18, 4  ;;  %s6180_s27 = int_to_ptr.vmem [resolvable:$false] %s6179_s27 }
  0xa0   : > { %s6181_s26 = scalar_lea.vmem %s6180_s27, 128  ;;  %p6182_p8 = scmp.lt.s32.totalorder %s647_s20, %s6180_s27 }
  0xa1   : > { %p6177_p10 = pnand %p6175_p6, %p6667_p7  ;;  %p6183_p9 = scmp.lt.s32.totalorder %s6181_s26, %s6174_s25 }
  0xa3   : > { %p6178_p11 = pneg %p6177_p10  ;;  %p6184_p1 = por %p6183_p9, %p6182_p8 }
  0xa5   : > { %p6185_p0 = pnand %p6184_p1, %p6178_p11 }
  0xa7   : > { %6188 = shalt.err (!%p6185_p0)
}
  0xa8   : > { %p8266_p5 = scmp.ne.s32.totalorder %s8257_s23, 0  ;;  %s6819_s28 = sadd.s32 4294967295, %s6504_s16  }
  0xa9   : > { %p93_p1 = scmp.ne.s32.totalorder %s6496_s30, %s6492_s29  ;;  %p8240_p12 = scmp.eq.s32.totalorder %s6819_s28, 0 }
  0xaa   : > { %5853 = dma.hbm_to_vmem [thread:$0]  (!%p8266_p5), %s6794_s17, 64, %s647_s20, %s8239_s19  }
  0xab   : > { %p5176_p13 = scmp.ge.s32.totalorder %s6504_s16, 1  ;;  %p432_p3 = scmp.lt.s32.totalorder %s6504_s16, 4 }
  0xac   : > { %p6828_p4 = por %p8240_p12, %p93_p1  ;;  %s8269_s1 = sld [smem:[#allocation42_spill]] }
  0xad   : > { %p6833_p6 = pnand %p5176_p13, %p432_p3  ;;  %s8270_s24 = sshll.u32 %s6641_s21, 1 }
  0xae   : > { %s8267_s27 = scalar_select %p6828_p4, 1, 0 }
  0xaf   : > { %s8268_s17 = scalar_select %p6833_p6, 1, 0 }
  0xb0   : > { %p5819_p10 = pneg %p6833_p6  ;;  %s466_s4 = scalar_lea.vmem [#allocation3], %s8270_s24 }
  0xb1   : > { %s473_s2 = sshll.u32 %s466_s4, 4  ;;  %s463_s26 = scalar_lea.sflag [#allocation4], %s6641_s21  ;;  %s474_s2 = int_to_ptr.vmem [resolvable:$true] %s473_s2 }
  0xb2   : > { %s6844_s14 = scalar_lea.hbm %s8269_s1, %s5180_s0  ;;  %p6851_p11 = pnand %p5819_p10, %p8240_p12 }
  0xb3   : > { %s6189_s19 = scalar_lea.hbm %s6844_s14, 32  ;;  %s6194_s29 = scalar_lea.hbm %s8269_s1, 96 }
  0xb4   : > { %s8271_s18 = scalar_select %p6851_p11, 1, 0 }
  0xb5   : > { %p6190_p8 = scmp.ne.s32.totalorder %s6844_s14, %s6189_s19  ;;  %p6195_p1 = scmp.lt.u32.totalorder %s6844_s14, %s8269_s1 }
  0xb6   : > { %p6196_p13 = scmp.lt.u32.totalorder %s6194_s29, %s6189_s19  ;;  %p6198_p10 = scmp.lt.u32.totalorder %s6189_s19, %s6844_s14 }
  0xb7   : > { %p6192_p9 = pnand %p6190_p8, %p6667_p7 }
  0xb8   : > { %p6197_p3 = por %p6196_p13, %p6195_p1 }
  0xb9   : > { %p6193_p0 = pneg %p6192_p9 }
  0xba   : > { %p6199_p2 = por %p6198_p10, %p6197_p3 }
  0xbc   : > { %p6200_p12 = pnand %p6199_p2, %p6193_p0 }
  0xbe   : > { %6203 = shalt.err (!%p6200_p12)
}
  0xbf   : > { %s6204_s4 = scalar_lea.vmem %s474_s2, 32  ;;  %s6511_s25 = smov [#allocation3]  }
  0xc0   : > { %p6205_p4 = scmp.ne.s32.totalorder %s474_s2, %s6204_s4  ;;  %s6209_s8 = sshll.u32 %s6511_s25, 4  ;;  %s6210_s8 = int_to_ptr.vmem [resolvable:$false] %s6209_s8 }
  0xc1   : > { %s6211_s0 = scalar_lea.vmem %s6210_s8, 64  ;;  %p6212_p6 = scmp.lt.s32.totalorder %s474_s2, %s6210_s8 }
  0xc2   : > { %p6207_p8 = pnand %p6205_p4, %p6667_p7  ;;  %p6213_p11 = scmp.lt.s32.totalorder %s6211_s0, %s6204_s4 }
  0xc4   : > { %p6208_p9 = pneg %p6207_p8  ;;  %p6214_p5 = por %p6213_p11, %p6212_p6 }
  0xc6   : > { %p6215_p1 = pnand %p6214_p5, %p6208_p9 }
  0xc8   : > { %6218 = shalt.err (!%p6215_p1)
}
  0xc9   : > { %p8272_p13 = scmp.ne.s32.totalorder %s8257_s23, 0  ;;  %s6219_s20 = scalar_lea.hbm %s8227_s13, 16 }
  0xca   : > { %p6220_p12 = scmp.ne.s32.totalorder %s8227_s13, %s6219_s20  ;;  %p8273_p4 = scmp.ne.s32.totalorder %s8271_s18, 0 }
  0xcb   : > { %5826 = dma.hbm_to_vmem [thread:$0]  (!%p8272_p13), %s6844_s14, 32, %s474_s2, %s463_s26  }
  0xcc   : > { %p6221_p2 = pneg %p8273_p4  ;;  %p6226_p5 = scmp.lt.u32.totalorder %s6219_s20, %s8227_s13 }
  0xce   : > { %p6222_p0 = pnand %p6221_p2, %p6220_p12 }
  0xd0   : > { %p6223_p3 = pneg %p6222_p0 }
  0xd2   : > { %p6228_p6 = pnand %p6226_p5, %p6223_p3 }
  0xd4   : > { %6231 = shalt.err (!%p6228_p6)
}
  0xd5   : > { %s6512_s4 = smov [#allocation24]   ;;  %s5587_s26 = sshll.u32 %s6504_s16, 9 }
  0xd6   : > { %5822 = dma.hbm_to_smem (!%p8273_p4), %s8227_s13, 16, %s6512_s4, [#allocation6]  }
  0xd7   : > { %s8274_s0 = sshll.u32 %s6641_s21, 5  ;;  %s6897_s24 = scalar_lea.hbm %s8217_s3, %s5587_s26 }
  0xd8   : > { %s501_s6 = scalar_lea.vmem [#allocation9], %s8274_s0  ;;  %s6232_s18 = scalar_lea.hbm %s6897_s24, 512 }
  0xd9   : > { %s508_s19 = sshll.u32 %s501_s6, 4  ;;  %p6233_p11 = scmp.ne.s32.totalorder %s6897_s24, %s6232_s18  ;;  %s6899_s19 = int_to_ptr.vmem [resolvable:$true] %s508_s19 }
  0xda   : > { %s6237_s4 = scalar_lea.hbm %s8217_s3, 1536  ;;  %p6238_p9 = scmp.lt.u32.totalorder %s6897_s24, %s8217_s3 }
  0xdb   : > { %p6235_p10 = pnand %p6233_p11, %p6667_p7  ;;  %p6239_p1 = scmp.lt.u32.totalorder %s6237_s4, %s6232_s18 }
  0xdc   : > { %p6241_p4 = scmp.lt.u32.totalorder %s6232_s18, %s6897_s24 }
  0xdd   : > { %p6236_p8 = pneg %p6235_p10  ;;  %p6240_p12 = por %p6239_p1, %p6238_p9 }
  0xdf   : > { %p6242_p2 = por %p6241_p4, %p6240_p12 }
  0xe1   : > { %p6243_p0 = pnand %p6242_p2, %p6236_p8 }
  0xe3   : > { %6246 = shalt.err (!%p6243_p0)
}
  0xe4   : > { %s6247_s0 = scalar_lea.vmem %s6899_s19, 512  ;;  %s6513_s6 = smov [#allocation9]  }
  0xe5   : > { %p6248_p3 = scmp.ne.s32.totalorder %s6899_s19, %s6247_s0  ;;  %s6252_s29 = sshll.u32 %s6513_s6, 4  ;;  %s6253_s29 = int_to_ptr.vmem [resolvable:$false] %s6252_s29 }
  0xe6   : > { %s6254_s20 = scalar_lea.vmem %s6253_s29, 1024  ;;  %p6255_p11 = scmp.lt.s32.totalorder %s6899_s19, %s6253_s29 }
  0xe7   : > { %p6250_p5 = pnand %p6248_p3, %p6667_p7  ;;  %p6256_p10 = scmp.lt.s32.totalorder %s6254_s20, %s6247_s0 }
  0xe9   : > { %p6251_p6 = pneg %p6250_p5  ;;  %p6257_p9 = por %p6256_p10, %p6255_p11 }
  0xeb   : > { %p6258_p1 = pnand %p6257_p9, %p6251_p6 }
  0xed   : > { %6261 = shalt.err (!%p6258_p1)
}
  0xee   : > { %s6514_s18 = smov 64   ;;  %s6515_s8 = smov 4  }
  0xef   : > { %s8275_s25 = scalar_lea.sflag [#allocation8], %s6644_s22  ;;  %s6932_s2 = scalar_lea.hbm %s8219_s5, %s5587_s26 }
  0xf0   : > { %5832 = dma.hbm_to_vmem [thread:$0]  (!%p8272_p13), %s6897_s24, 512, %s6899_s19, %s8275_s25, %s6514_s18, %s6514_s18, %s6515_s8  }
  0xf1   : > { %s8276_s0 = sshll.u32 %s6641_s21, 5  ;;  %s5190_s20 = sshll.u32 %s6641_s21, 7 }
  0xf2   : > { %s539_s6 = scalar_lea.vmem [#allocation12], %s8276_s0  ;;  %s6262_s1 = scalar_lea.hbm %s6932_s2, 512 }
  0xf3   : > { %s546_s29 = sshll.u32 %s539_s6, 4  ;;  %p6263_p8 = scmp.ne.s32.totalorder %s6932_s2, %s6262_s1  ;;  %s6937_s29 = int_to_ptr.vmem [resolvable:$true] %s546_s29 }
  0xf4   : > { %s6267_s26 = scalar_lea.hbm %s8219_s5, 1536  ;;  %p6268_p2 = scmp.lt.u32.totalorder %s6932_s2, %s8219_s5 }
  0xf5   : > { %p6265_p12 = pnand %p6263_p8, %p6667_p7  ;;  %p6269_p0 = scmp.lt.u32.totalorder %s6267_s26, %s6262_s1 }
  0xf6   : > { %p6271_p5 = scmp.lt.u32.totalorder %s6262_s1, %s6932_s2 }
  0xf7   : > { %p6266_p4 = pneg %p6265_p12  ;;  %p6270_p3 = por %p6269_p0, %p6268_p2 }
  0xf9   : > { %p6272_p6 = por %p6271_p5, %p6270_p3 }
  0xfb   : > { %p6273_p11 = pnand %p6272_p6, %p6266_p4 }
  0xfd   : > { %6276 = shalt.err (!%p6273_p11)
}
  0xfe   : > { %s6277_s14 = scalar_lea.vmem %s6937_s29, 512  ;;  %s6516_s0 = smov [#allocation12]  }
  0xff   : > { %p6278_p10 = scmp.ne.s32.totalorder %s6937_s29, %s6277_s14  ;;  %s6282_s6 = sshll.u32 %s6516_s0, 4  ;;  %s6283_s6 = int_to_ptr.vmem [resolvable:$false] %s6282_s6 }
 0x100   : > { %s6284_s19 = scalar_lea.vmem %s6283_s6, 1024  ;;  %p6285_p8 = scmp.lt.s32.totalorder %s6937_s29, %s6283_s6 }
 0x101   : > { %p6280_p9 = pnand %p6278_p10, %p6667_p7  ;;  %p6286_p12 = scmp.lt.s32.totalorder %s6284_s19, %s6277_s14 }
 0x103   : > { %p6281_p1 = pneg %p6280_p9  ;;  %p6287_p2 = por %p6286_p12, %p6285_p8 }
 0x105   : > { %p6288_p0 = pnand %p6287_p2, %p6281_p1 }
 0x107   : > { %6291 = shalt.err (!%p6288_p0)
}
 0x108   : > { %s8277_s1 = scalar_lea.sflag [#allocation11], %s6644_s22  ;;  %s5589_s24 = sshll.u32 %s6504_s16, 11 }
 0x109   : > { %5838 = dma.hbm_to_vmem [thread:$0]  (!%p8272_p13), %s6932_s2, 512, %s6937_s29, %s8277_s1, %s6514_s18, %s6514_s18, %s6515_s8  }
 0x10a   : > { %s577_s26 = scalar_lea.vmem [#allocation15], %s5190_s20  ;;  %s6971_s0 = scalar_lea.hbm %s8221_s7, %s5589_s24 }
 0x10b   : > { %s584_s25 = sshll.u32 %s577_s26, 4  ;;  %s6292_s6 = scalar_lea.hbm %s6971_s0, 2048  ;;  %s6973_s25 = int_to_ptr.vmem [resolvable:$true] %s584_s25 }
 0x10c   : > { %p6293_p4 = scmp.ne.s32.totalorder %s6971_s0, %s6292_s6  ;;  %s6297_s2 = scalar_lea.hbm %s8221_s7, 6144 }
 0x10d   : > { %p6298_p6 = scmp.lt.u32.totalorder %s6971_s0, %s8221_s7  ;;  %p6299_p11 = scmp.lt.u32.totalorder %s6297_s2, %s6292_s6 }
 0x10e   : > { %p6295_p3 = pnand %p6293_p4, %p6667_p7  ;;  %p6301_p9 = scmp.lt.u32.totalorder %s6292_s6, %s6971_s0 }
 0x10f   : > { %p6300_p10 = por %p6299_p11, %p6298_p6 }
 0x110   : > { %p6296_p5 = pneg %p6295_p3 }
 0x111   : > { %p6302_p1 = por %p6301_p9, %p6300_p10 }
 0x113   : > { %p6303_p8 = pnand %p6302_p1, %p6296_p5 }
 0x115   : > { %6306 = shalt.err (!%p6303_p8)
}
 0x116   : > { %s6307_s19 = scalar_lea.vmem %s6973_s25, 2048  ;;  %s6517_s1 = smov [#allocation15]  }
 0x117   : > { %p6308_p12 = scmp.ne.s32.totalorder %s6973_s25, %s6307_s19  ;;  %s6312_s24 = sshll.u32 %s6517_s1, 4  ;;  %s6313_s24 = int_to_ptr.vmem [resolvable:$false] %s6312_s24 }
 0x118   : > { %s6314_s26 = scalar_lea.vmem %s6313_s24, 4096  ;;  %p6315_p4 = scmp.lt.s32.totalorder %s6973_s25, %s6313_s24 }
 0x119   : > { %p6310_p2 = pnand %p6308_p12, %p6667_p7  ;;  %p6316_p3 = scmp.lt.s32.totalorder %s6314_s26, %s6307_s19 }
 0x11b   : > { %p6311_p0 = pneg %p6310_p2  ;;  %p6317_p6 = por %p6316_p3, %p6315_p4 }
 0x11d   : > { %p6318_p11 = pnand %p6317_p6, %p6311_p0 }
 0x11f   : > { %6321 = shalt.err (!%p6318_p11)
}
 0x120   : > { %s6518_s4 = smov 128   ;;  %s6519_s14 = smov 8  }
 0x121   : > { %s8278_s6 = scalar_lea.sflag [#allocation14], %s6644_s22  ;;  %s5196_s18 = sshll.u32 %s6641_s21, 9 }
 0x122   : > { %5844 = dma.hbm_to_vmem [thread:$0]  (!%p8272_p13), %s6971_s0, 2048, %s6973_s25, %s8278_s6, %s6518_s4, %s6518_s4, %s6519_s14  }
 0x123   : > { %s5591_s8 = sshll.u32 %s6504_s16, 13  ;;  %s617_s19 = scalar_lea.vmem [#allocation18], %s5196_s18 }
 0x124   : > { %s7003_s20 = scalar_lea.hbm %s8223_s9, %s5591_s8  ;;  %s624_s1 = sshll.u32 %s617_s19, 4  ;;  %s7005_s1 = int_to_ptr.vmem [resolvable:$true] %s624_s1 }
 0x125   : > { %s6322_s24 = scalar_lea.hbm %s7003_s20, 8192  ;;  %s6327_s26 = scalar_lea.hbm %s8223_s9, 24576 }
 0x126   : > { %p6323_p5 = scmp.ne.s32.totalorder %s7003_s20, %s6322_s24  ;;  %p6328_p1 = scmp.lt.u32.totalorder %s7003_s20, %s8223_s9 }
 0x127   : > { %p6329_p8 = scmp.lt.u32.totalorder %s6327_s26, %s6322_s24  ;;  %p6331_p2 = scmp.lt.u32.totalorder %s6322_s24, %s7003_s20 }
 0x128   : > { %p6325_p10 = pnand %p6323_p5, %p6667_p7 }
 0x129   : > { %p6330_p12 = por %p6329_p8, %p6328_p1 }
 0x12a   : > { %p6326_p9 = pneg %p6325_p10 }
 0x12b   : > { %p6332_p0 = por %p6331_p2, %p6330_p12 }
 0x12d   : > { %p6333_p4 = pnand %p6332_p0, %p6326_p9 }
 0x12f   : > { %6336 = shalt.err (!%p6333_p4)
}
 0x130   : > { %s6337_s6 = scalar_lea.vmem %s7005_s1, 8192  ;;  %s6520_s18 = smov [#allocation18]  }
 0x131   : > { %p6338_p3 = scmp.ne.s32.totalorder %s7005_s1, %s6337_s6  ;;  %s6342_s8 = sshll.u32 %s6520_s18, 4  ;;  %s6343_s8 = int_to_ptr.vmem [resolvable:$false] %s6342_s8 }
 0x132   : > { %s6344_s2 = scalar_lea.vmem %s6343_s8, 16384  ;;  %p6345_p5 = scmp.lt.s32.totalorder %s7005_s1, %s6343_s8 }
 0x133   : > { %p6340_p6 = pnand %p6338_p3, %p6667_p7  ;;  %p6346_p10 = scmp.lt.s32.totalorder %s6344_s2, %s6337_s6 }
 0x135   : > { %p6341_p11 = pneg %p6340_p6  ;;  %p6347_p1 = por %p6346_p10, %p6345_p5 }
 0x137   : > { %p6348_p8 = pnand %p6347_p1, %p6341_p11 }
 0x139   : > { %6351 = shalt.err (!%p6348_p8)
}
 0x13a   : > { %s6521_s29 = smov 256   ;;  %s6522_s19 = smov 16  }
 0x13b   : > { %s8279_s24 = scalar_lea.sflag [#allocation17], %s6644_s22  ;;  %s5202_s25 = sshll.u32 %s6641_s21, 11 }
 0x13c   : > { %5850 = dma.hbm_to_vmem [thread:$0]  (!%p8272_p13), %s7003_s20, 8192, %s7005_s1, %s8279_s24, %s6521_s29, %s6521_s29, %s6522_s19  }
 0x13d   : > { %s5593_s0 = sshll.u32 %s6504_s16, 15  ;;  %s657_s6 = scalar_lea.vmem [#allocation21], %s5202_s25 }
 0x13e   : > { %s7035_s14 = scalar_lea.hbm %s8225_s11, %s5593_s0  ;;  %s664_s18 = sshll.u32 %s657_s6, 4  ;;  %s7037_s18 = int_to_ptr.vmem [resolvable:$true] %s664_s18 }
 0x13f   : > { %s6352_s8 = scalar_lea.hbm %s7035_s14, 32768  ;;  %s6357_s2 = scalar_lea.hbm %s8225_s11, 98304 }
 0x140   : > { %p6353_p9 = scmp.ne.s32.totalorder %s7035_s14, %s6352_s8  ;;  %p6358_p0 = scmp.lt.u32.totalorder %s7035_s14, %s8225_s11 }
 0x141   : > { %p6359_p4 = scmp.lt.u32.totalorder %s6357_s2, %s6352_s8  ;;  %p6361_p6 = scmp.lt.u32.totalorder %s6352_s8, %s7035_s14 }
 0x142   : > { %p6355_p12 = pnand %p6353_p9, %p6667_p7 }
 0x143   : > { %p6360_p3 = por %p6359_p4, %p6358_p0 }
 0x144   : > { %p6356_p2 = pneg %p6355_p12 }
 0x145   : > { %p6362_p11 = por %p6361_p6, %p6360_p3 }
 0x147   : > { %p6363_p5 = pnand %p6362_p11, %p6356_p2 }
 0x149   : > { %6366 = shalt.err (!%p6363_p5)
}
 0x14a   : > { %s6367_s24 = scalar_lea.vmem %s7037_s18, 32768  ;;  %s6523_s25 = smov [#allocation21]  }
 0x14b   : > { %p6368_p10 = scmp.ne.s32.totalorder %s7037_s18, %s6367_s24  ;;  %s6372_s0 = sshll.u32 %s6523_s25, 4  ;;  %s6373_s0 = int_to_ptr.vmem [resolvable:$false] %s6372_s0 }
 0x14c   : > { %s6374_s26 = scalar_lea.vmem %s6373_s0, 65536  ;;  %p6375_p9 = scmp.lt.s32.totalorder %s7037_s18, %s6373_s0 }
 0x14d   : > { %p6370_p1 = pnand %p6368_p10, %p6667_p7  ;;  %p6376_p12 = scmp.lt.s32.totalorder %s6374_s26, %s6367_s24 }
 0x14f   : > { %p6371_p8 = pneg %p6370_p1  ;;  %p6377_p0 = por %p6376_p12, %p6375_p9 }
 0x151   : > { %p6378_p4 = pnand %p6377_p0, %p6371_p8 }
 0x153   : > { %6381 = shalt.err (!%p6378_p4)
}
 0x154   : > { %s6524_s4 = smov 512   ;;  %s6525_s6 = smov 32  }
 0x155   : > { %s8280_s8 = scalar_lea.sflag [#allocation20], %s6644_s22  ;;  %s5205_s20 = sshll.u32 %s6641_s21, 3 }
 0x156   : > { %5856 = dma.hbm_to_vmem [thread:$0]  (!%p8272_p13), %s7035_s14, 32768, %s7037_s18, %s8280_s8, %s6524_s4, %s6524_s4, %s6525_s6  }
 0x157   : > { %s5594_s1 = sshll.u32 %s6504_s16, 7  ;;  %s678_s24 = scalar_lea.vmem [#allocation22], %s5205_s20 }
 0x158   : > { %s7067_s19 = scalar_lea.hbm %s8226_s12, %s5594_s1  ;;  %s686_s25 = sshll.u32 %s678_s24, 4  ;;  %s687_s25 = int_to_ptr.vmem [resolvable:$true] %s686_s25 }
 0x159   : > { %s675_s0 = scalar_lea.sflag [#allocation23], %s6641_s21  ;;  %s6382_s26 = scalar_lea.hbm %s7067_s19, 128 }
 0x15a   : > { %p6383_p2 = scmp.ne.s32.totalorder %s7067_s19, %s6382_s26  ;;  %s6387_s14 = scalar_lea.hbm %s8226_s12, 384 }
 0x15b   : > { %p6388_p11 = scmp.lt.u32.totalorder %s7067_s19, %s8226_s12  ;;  %p6389_p5 = scmp.lt.u32.totalorder %s6387_s14, %s6382_s26 }
 0x15c   : > { %p6385_p3 = pnand %p6383_p2, %p6667_p7  ;;  %p6391_p1 = scmp.lt.u32.totalorder %s6382_s26, %s7067_s19 }
 0x15d   : > { %p6390_p10 = por %p6389_p5, %p6388_p11 }
 0x15e   : > { %p6386_p6 = pneg %p6385_p3 }
 0x15f   : > { %p6392_p8 = por %p6391_p1, %p6390_p10 }
 0x161   : > { %p6393_p9 = pnand %p6392_p8, %p6386_p6 }
 0x163   : > { %6396 = shalt.err (!%p6393_p9)
}
 0x164   : > { %s6397_s21 = scalar_lea.vmem %s687_s25, 128  ;;  %s6526_s6 = smov [#allocation22]  }
 0x165   : > { %p6398_p12 = scmp.ne.s32.totalorder %s687_s25, %s6397_s21  ;;  %s6402_s8 = sshll.u32 %s6526_s6, 4  ;;  %s6403_s8 = int_to_ptr.vmem [resolvable:$false] %s6402_s8 }
 0x166   : > { %s6404_s20 = scalar_lea.vmem %s6403_s8, 256  ;;  %p6405_p2 = scmp.lt.s32.totalorder %s687_s25, %s6403_s8 }
 0x167   : > { %p6400_p0 = pnand %p6398_p12, %p6667_p7  ;;  %p6406_p3 = scmp.lt.s32.totalorder %s6404_s20, %s6397_s21 }
 0x169   : > { %p6401_p4 = pneg %p6400_p0  ;;  %p6407_p13 = por %p6406_p3, %p6405_p2 }
 0x16b   : > { %p6408_p5 = pnand %p6407_p13, %p6401_p4 }
 0x16d   : > { %6411 = shalt.err (!%p6408_p5)
}
 0x16e   : > { %p8281_p11 = scmp.ne.s32.totalorder %s8257_s23, 0  ;;  %p8282_p6 = scmp.ne.s32.totalorder %s8268_s17, 0 }
 0x170   : > { %5859 = dma.hbm_to_vmem [thread:$0]  (!%p8281_p11), %s7067_s19, 128, %s687_s25, %s675_s0  }
 0x171   : > { %695 = sbr.rel (%p8282_p6) target bundleno = 2063 (0x80f), region = 76 }
 0x178   : > { %s7090_s15 = sand.u32 1, %s6496_s30   ;;  %p8283_p7 = scmp.ne.s32.totalorder %s8267_s27, 0 }
 0x179   : > { %s5209_s1 = sshll.u32 %s7090_s15, 1  ;;  %s698_s2 = scalar_lea.sflag [#allocation4], %s7090_s15 }
 0x17a   : > { %s7094_s29 = scalar_lea.vmem [#allocation3], %s5209_s1 }
 0x17b   : > { %6455 = dma.done.wait (%p8283_p7), %s698_s2, 32  }
 0x17c   : > { %6457 = vsyncadd (%p8283_p7), %s698_s2, 4294967264  ;;  %s706_s23 = sand.u32 1, %s6819_s28   ;;  %s709_s19 = scalar_lea.vmem [#allocation7], %s7090_s15 }
 0x17d   : > { %s707_s17 = scalar_lea.sflag [#allocation8], %s706_s23 }
 0x17e   : > { %6459 = dma.done.wait (%p8283_p7), %s707_s17, 528  }
 0x17f   : > { %6461 = vsyncadd (%p8283_p7), %s707_s17, 4294966768  ;;  %s5210_s24 = sshll.u32 %s7090_s15, 5  ;;  %s724_s0 = scalar_lea.sflag [#allocation11], %s706_s23 }
 0x180   : > { %s7107_s25 = scalar_lea.vmem [#allocation9], %s5210_s24  ;;  %s726_s26 = scalar_lea.vmem [#allocation10], %s7090_s15 }
 0x181   : > { %6463 = dma.done.wait (%p8283_p7), %s724_s0, 528  }
 0x182   : > { %6465 = vsyncadd (%p8283_p7), %s724_s0, 4294966768  ;;  %s7114_s22 = scalar_lea.vmem [#allocation12], %s5210_s24  ;;  %s741_s16 = scalar_lea.sflag [#allocation14], %s706_s23 }
 0x183   : > { %s743_s14 = scalar_lea.vmem [#allocation13], %s7090_s15 }
 0x184   : > { %6467 = dma.done.wait (%p8283_p7), %s741_s16, 2064  }
 0x185   : > { %6469 = vsyncadd (%p8283_p7), %s741_s16, 4294965232  ;;  %s5212_s18 = sshll.u32 %s7090_s15, 7  ;;  %s758_s21 = scalar_lea.sflag [#allocation17], %s706_s23 }
 0x186   : > { %s7122_s4 = scalar_lea.vmem [#allocation15], %s5212_s18  ;;  %s7124_s6 = scalar_lea.vmem [#allocation16], %s5209_s1 }
 0x187   : > { %6471 = dma.done.wait (%p8283_p7), %s758_s21, 8224  }
 0x188   : > { %6473 = vsyncadd (%p8283_p7), %s758_s21, 4294959072  ;;  %s5214_s8 = sshll.u32 %s7090_s15, 9  ;;  %s5215_s20 = sshll.u32 %s7090_s15, 2 }
 0x189   : > { %s7132_s2 = scalar_lea.vmem [#allocation18], %s5214_s8  ;;  %s776_s17 = scalar_lea.sflag [#allocation20], %s706_s23 }
 0x18a   : > { %s7134_s24 = scalar_lea.vmem [#allocation19], %s5215_s20 }
 0x18b   : > { %6475 = dma.done.wait (%p8283_p7), %s776_s17, 32832  }
 0x18c   : > { %6477 = vsyncadd (%p8283_p7), %s776_s17, 4294934464  ;;  %s5216_s1 = sshll.u32 %s7090_s15, 11  ;;  %s5217_s0 = sshll.u32 %s7090_s15, 3 }
 0x18d   : > { %s7142_s16 = scalar_lea.vmem [#allocation21], %s5216_s1  ;;  %s794_s18 = scalar_lea.sflag [#allocation23], %s7090_s15 }
 0x18e   : > { %s7145_s21 = scalar_lea.vmem [#allocation22], %s5217_s0 }
 0x18f   : > { %6479 = dma.done.wait (%p8283_p7), %s794_s18, 128  }
 0x190   : > { %6481 = vsyncadd (%p8283_p7), %s794_s18, 4294967168  ;;  %p8284_p13 = scmp.eq.s32.totalorder %s6819_s28, 0 }
 0x192   : > { %6483 = dma.done.wait (%p8284_p13), [#allocation6], 16   ;;  %p8285_p10 = pmov %p8284_p13 }
 0x194   : > { %6485 = vsyncadd (%p8285_p10), [#allocation6], 4294967280 }
 0x195   : > { %806 = sfence }
 0x196   : > { %v917_v0 = vld [vmem:[%s7094_s29] sm:$0x3]  ;;  %vm938_vm0 = vcmask 1040384   ;;  %vm939_vm1 = vcmask 1041408   ;;  %p899_p1 = scmp.lt.s32.totalorder %s6819_s28, 2  ;;  %v6527_v1 = vmov 65535  }
 0x197   : > { %v940_v2 = vsel %vm938_vm0, 4294967295, %v6527_v1  ;;  %v5911_v4 = vld [vmem:[%s7107_s25] sm:$0xff]   ;;  %s8286_s17 = sld [smem:[#allocation41_spill]]  ;;  %vm925_vm2 = vcmask 23552   ;;  %v5912_v15 = vld [vmem:[%s7107_s25 + $0x8] sm:$0xff]   ;;  %v5913_v19 = vld [vmem:[%s7107_s25 + $0x10] sm:$0xff]  }
 0x198   : > { %v941_v3 = vsel %vm939_vm1, %v940_v2, 0  ;;  %s900_s27 = scalar_select %p899_p1, %s6819_s28, 2  ;;  %v5914_v20 = vld [vmem:[%s7107_s25 + $0x18] sm:$0xff]   ;;  %v5915_v21 = vld [vmem:[%s7114_s22] sm:$0xff]   ;;  %vm1061_vm3 = vcmask 523264   ;;  %v5916_v40 = vld [vmem:[%s7114_s22 + $0x8] sm:$0xff]  }
 0x199   : > { %v943_v5 = vand.u32 %v941_v3, %v917_v0  ;;  %v5221_v22 = vld [vmem:[%s709_s19] ss:$0 sm:$0xff]  ;;  %v5917_v52 = vld [vmem:[%s7114_s22 + $0x10] sm:$0xff]   ;;  %v5921_v55 = vld [vmem:[%s7122_s4] ss:$8 sps:$4 sm:$0xff]   ;;  %s8019_s15 = sld [smem:[#allocation24 + %s6819_s28]] }
 0x19a   : > { %s5595_s23 = sshll.u32 %s900_s27, 6  ;;  %v5918_v53 = vld [vmem:[%s7114_s22 + $0x18] sm:$0xff]   ;;  %v5919_v54 = vld [vmem:[%s7122_s4 + $0x4] ss:$8 sps:$4 sm:$0xff]   ;;  %v5927_v59 = vld [vmem:[%s7122_s4 + $0x20] ss:$8 sps:$4 sm:$0xff]  }
 0x19b   : > { %5617 = vmatprep.subr.bf16.mxu0 %v943_v5  ;;  %v5922_v56 = vld [vmem:[%s7122_s4 + $0x14] ss:$8 sps:$4 sm:$0xff]   ;;  %1387 = vmatprep.subr.bf16.mxu1 %v5919_v54  ;;  %v5924_v57 = vld [vmem:[%s7122_s4 + $0x10] ss:$8 sps:$4 sm:$0xff]   ;;  %v5925_v58 = vld [vmem:[%s7122_s4 + $0x24] ss:$8 sps:$4 sm:$0xff]  }
 0x19c   : > { %5618 = vmatpush3.bf16.msra.mxu0 %v943_v5  ;;  %1388 = vmatpush1.bf16.msra.mxu1 %v5921_v55  ;;  %v5928_v60 = vld [vmem:[%s7122_s4 + $0x34] ss:$8 sps:$4 sm:$0xff]   ;;  %v5930_v61 = vld [vmem:[%s7122_s4 + $0x30] ss:$8 sps:$4 sm:$0xff]   ;;  %v5931_v62 = vld [vmem:[%s7122_s4 + $0x44] ss:$8 sps:$4 sm:$0xff]  }
 0x19d   : > { %s903_s1 = scalar_lea.vmem %s8286_s17, %s5595_s23  ;;  %5627 = vmatprep.subr.bf16.mxu0 %v5911_v4  ;;  %1389 = vmatprep.subr.bf16.mxu1 %v5922_v56  ;;  %v5933_v63 = vld [vmem:[%s7122_s4 + $0x40] ss:$8 sps:$4 sm:$0xff]   ;;  %v5934_v0 = vld [vmem:[%s7122_s4 + $0x54] ss:$8 sps:$4 sm:$0xff]   ;;  %v5936_v1 = vld [vmem:[%s7122_s4 + $0x50] ss:$8 sps:$4 sm:$0xff]  }
 0x19e   : > { %v905_v6 = vld [vmem:[%s903_s1] sm:$0xff]  ;;  %v906_v7 = vld [vmem:[%s903_s1 + $0x8] sm:$0xff]  ;;  %v907_v8 = vld [vmem:[%s903_s1 + $0x10] sm:$0xff]  ;;  %p8316_p8 = scmp.ne.s32.totalorder %s6819_s28, 0 }
 0x19f   : > { %v913_v9 = vpack.c.bf16 %v906_v7, %v905_v6  ;;  %v908_v10 = vld [vmem:[%s903_s1 + $0x18] sm:$0xff]  ;;  %v909_v11 = vld [vmem:[%s903_s1 + $0x20] sm:$0xff]  ;;  %v910_v12 = vld [vmem:[%s903_s1 + $0x28] sm:$0xff] }
 0x1a0   : > { %v914_v13 = vpack.c.bf16 %v908_v10, %v907_v8  ;;  %v915_v14 = vpack.c.bf16 %v910_v12, %v909_v11  ;;  %v911_v16 = vld [vmem:[%s903_s1 + $0x30] sm:$0xff]  ;;  %v912_v17 = vld [vmem:[%s903_s1 + $0x38] sm:$0xff]  ;;  %1390 = vmatpush1.bf16.msra.mxu1 %v5924_v57  ;;  %v5226_v2 = vld [vmem:[%s726_s26] ss:$0 sm:$0xff] }
 0x1a1   : > { %5619 = vmatprep.mubr.msk.bf16.mxu0 %vm925_vm2, %v913_v9  ;;  %v916_v18 = vpack.c.bf16 %v912_v17, %v911_v16  ;;  %1391 = vmatprep.subr.bf16.mxu1 %v5925_v58  ;;  %v5991_v54 = vld [vmem:[%s7132_s2 + $0x100] ss:$16 sps:$4 sm:$0xff]   ;;  %v5999_v55 = vld [vmem:[%s7132_s2 + $0x124] ss:$16 sps:$4 sm:$0xff]  }
 0x1a2   : > { %5620 = vmatmul.mubr.msk.bf16.vlgmr.msra.gmra.mrb[0].mxu0 %vm925_vm2, %v914_v13  ;;  %v5997_v56 = vld [vmem:[%s7132_s2 + $0x120] ss:$16 sps:$4 sm:$0xff]   ;;  %v6005_v57 = vld [vmem:[%s7132_s2 + $0x144] ss:$16 sps:$4 sm:$0xff]  }
 0x1a3   : > { %5623 = vmatprep.mubr.msk.bf16.mxu0 %vm925_vm2, %v915_v14  ;;  %5628 = vmatpush3.bf16.msra.mxu0 %v5911_v4  ;;  %v6003_v58 = vld [vmem:[%s7132_s2 + $0x140] ss:$16 sps:$4 sm:$0xff]  }
 0x1a4   : > { %5629 = vmatprep.subr.bf16.mxu0 %v5912_v15  ;;  %1392 = vmatpush1.bf16.msra.mxu1 %v5927_v59  ;;  %v6011_v59 = vld [vmem:[%s7132_s2 + $0x164] ss:$16 sps:$4 sm:$0xff]  }
 0x1a5   : > { %1393 = vmatprep.subr.bf16.mxu1 %v5928_v60  ;;  %v6009_v60 = vld [vmem:[%s7132_s2 + $0x160] ss:$16 sps:$4 sm:$0xff]  }
 0x1a7   : > { %5630 = vmatpush3.bf16.msra.mxu0 %v5912_v15 }
 0x1a8   : > { %5631 = vmatprep.subr.bf16.mxu0 %v5913_v19  ;;  %1394 = vmatpush1.bf16.msra.mxu1 %v5930_v61  ;;  %v6017_v61 = vld [vmem:[%s7132_s2 + $0x184] ss:$16 sps:$4 sm:$0xff]  }
 0x1a9   : > { %1395 = vmatprep.subr.bf16.mxu1 %v5931_v62  ;;  %v6015_v62 = vld [vmem:[%s7132_s2 + $0x180] ss:$16 sps:$4 sm:$0xff]  }
 0x1aa   : > { %5624 = vmatmul.mubr.msk.bf16.gmra.mrb[4].mxu0 %vm925_vm2, %v916_v18 }
 0x1ab   : > { %5632 = vmatpush3.bf16.msra.mxu0 %v5913_v19 }
 0x1ac   : > { %5633 = vmatprep.subr.bf16.mxu0 %v5914_v20  ;;  %1396 = vmatpush1.bf16.msra.mxu1 %v5933_v63  ;;  %v6023_v63 = vld [vmem:[%s7132_s2 + $0x1a4] ss:$16 sps:$4 sm:$0xff]  }
 0x1ad   : > { %1397 = vmatprep.subr.bf16.mxu1 %v5934_v0  ;;  %v6021_v0 = vld [vmem:[%s7132_s2 + $0x1a0] ss:$16 sps:$4 sm:$0xff]  }
 0x1af   : > { %5634 = vmatpush3.bf16.msra.mxu0 %v5914_v20 }
 0x1b0   : > { %5643 = vmatprep.subr.bf16.mxu0 %v5915_v21  ;;  %1398 = vmatpush1.bf16.msra.mxu1 %v5936_v1  ;;  %v5235_v1 = vld [vmem:[%s743_s14] ss:$0 sm:$0xff] }
 0x275   : > { %v5621_v23 = vpop.f32.mrb[0].mxu0 }
 0x276   : > { %v988_v24 = vadd.f32 %v5621_v23, %v5221_v22  ;;  %v979_v25 = vpop.f32.mrb[1].mxu0 }
 0x277   : > { %v980_v26 = vadd.f32 %v5221_v22, %v979_v25  ;;  %v5622_v27 = vpop.f32.mrb[2].mxu0 }
 0x278   : > { %v991_v28 = vadd.f32 %v5622_v27, %v5221_v22  ;;  %v982_v29 = vpop.f32.mrb[3].mxu0  ;;  %v1012_v31 = vmax.f32 %v988_v24, 0.0 }
 0x279   : > { %v983_v30 = vadd.f32 %v5221_v22, %v982_v29  ;;  %v1010_v33 = vmax.f32 %v980_v26, 0.0 }
 0x27a   : > { %v1013_v32 = vmax.f32 %v991_v28, 0.0 }
 0x27b   : > { %v1011_v34 = vmax.f32 %v983_v30, 0.0 }
 0x27c   : > { %v1019_v35 = vpack.c.bf16 %v1013_v32, %v1012_v31  ;;  %v5937_v31 = vld [vmem:[%s7122_s4 + $0x64] ss:$8 sps:$4 sm:$0xff]   ;;  %v5939_v32 = vld [vmem:[%s7122_s4 + $0x60] ss:$8 sps:$4 sm:$0xff]  }
 0x27d   : > { %v1018_v36 = vpack.c.bf16 %v1011_v34, %v1010_v33  ;;  %v5625_v37 = vpop.f32.mrb[4].mxu0  ;;  %1399 = vmatprep.subr.bf16.mxu1 %v5937_v31  ;;  %v5940_v33 = vld [vmem:[%s7122_s4 + $0x74] ss:$8 sps:$4 sm:$0xff]   ;;  %v5942_v34 = vld [vmem:[%s7122_s4 + $0x70] ss:$8 sps:$4 sm:$0xff]  }
 0x27e   : > { %v1004_v38 = vadd.f32 %v5625_v37, %v5221_v22  ;;  %v995_v39 = vpop.f32.mrb[5].mxu0  ;;  %1400 = vmatpush1.bf16.msra.mxu1 %v5939_v32  ;;  %v5945_v37 = vld [vmem:[%s7132_s2 + $0x4] ss:$16 sps:$4 sm:$0xff]  }
 0x27f   : > { %5635 = vmatprep.mubr.msk.bf16.mxu0 %vm1061_vm3, %v1018_v36  ;;  %v996_v41 = vadd.f32 %v5221_v22, %v995_v39  ;;  %v5626_v42 = vpop.f32.mrb[6].mxu0  ;;  %1401 = vmatprep.subr.bf16.mxu1 %v5940_v33  ;;  %v5943_v36 = vld [vmem:[%s7132_s2] ss:$16 sps:$4 sm:$0xff]   ;;  %v5951_v39 = vld [vmem:[%s7132_s2 + $0x24] ss:$16 sps:$4 sm:$0xff]  }
 0x280   : > { %5636 = vmatmul.mubr.msk.bf16.vlgmr.msra.gmra.mrb[8].mxu0 %vm1061_vm3, %v1019_v35  ;;  %v1016_v43 = vmax.f32 %v1004_v38, 0.0  ;;  %v1007_v44 = vadd.f32 %v5626_v42, %v5221_v22  ;;  %v998_v45 = vpop.f32.mrb[7].mxu0  ;;  %v6528_v35 = vmov 0   ;;  %v5948_v38 = vld [vmem:[%s7132_s2 + $0xc] ss:$16 sps:$4 sm:$0xff]  }
 0x281   : > { %v1014_v46 = vmax.f32 %v996_v41, 0.0  ;;  %v999_v47 = vadd.f32 %v5221_v22, %v998_v45  ;;  %5644 = vmatpush3.bf16.msra.mxu0 %v5915_v21  ;;  %1419 = vmatprep.mubr.bf16.mxu1 %v6528_v35  ;;  %v5957_v41 = vld [vmem:[%s7132_s2 + $0x44] ss:$16 sps:$4 sm:$0xff]   ;;  %v5955_v42 = vld [vmem:[%s7132_s2 + $0x40] ss:$16 sps:$4 sm:$0xff]  }
 0x282   : > { %v1017_v48 = vmax.f32 %v1007_v44, 0.0  ;;  %5645 = vmatprep.subr.bf16.mxu0 %v5916_v40  ;;  %1402 = vmatpush1.bf16.msra.mxu1 %v5942_v34  ;;  %v5961_v44 = vld [vmem:[%s7132_s2 + $0x60] ss:$16 sps:$4 sm:$0xff]   ;;  %v5969_v45 = vld [vmem:[%s7132_s2 + $0x84] ss:$16 sps:$4 sm:$0xff]  }
 0x283   : > { %v1015_v49 = vmax.f32 %v999_v47, 0.0  ;;  %1963 = vmatprep.subr.bf16.mxu1 %v5948_v38  ;;  %v5975_v47 = vld [vmem:[%s7132_s2 + $0xa4] ss:$16 sps:$4 sm:$0xff]   ;;  %v5960_v33 = vld [vmem:[%s7132_s2 + $0x4c] ss:$16 sps:$4 sm:$0xff]  }
 0x284   : > { %v1021_v50 = vpack.c.bf16 %v1017_v48, %v1016_v43  ;;  %v5963_v43 = vld [vmem:[%s7132_s2 + $0x64] ss:$16 sps:$4 sm:$0xff]   ;;  %v5973_v48 = vld [vmem:[%s7132_s2 + $0xa0] ss:$16 sps:$4 sm:$0xff]  }
 0x285   : > { %v1020_v51 = vpack.c.bf16 %v1015_v49, %v1014_v46  ;;  %5646 = vmatpush3.bf16.msra.mxu0 %v5916_v40  ;;  %v5949_v40 = vld [vmem:[%s7132_s2 + $0x20] ss:$16 sps:$4 sm:$0xff]   ;;  %v5981_v49 = vld [vmem:[%s7132_s2 + $0xc4] ss:$16 sps:$4 sm:$0xff]  }
 0x286   : > { %5647 = vmatprep.subr.bf16.mxu0 %v5917_v52  ;;  %v5967_v46 = vld [vmem:[%s7132_s2 + $0x80] ss:$16 sps:$4 sm:$0xff]  }
 0x287   : > { %5639 = vmatprep.mubr.msk.bf16.mxu0 %vm1061_vm3, %v1020_v51  ;;  %v5987_v51 = vld [vmem:[%s7132_s2 + $0xe4] ss:$16 sps:$4 sm:$0xff]  }
 0x288   : > { %5640 = vmatmul.mubr.msk.bf16.gmra.mrb[12].mxu0 %vm1061_vm3, %v1021_v50  ;;  %v5979_v50 = vld [vmem:[%s7132_s2 + $0xc0] ss:$16 sps:$4 sm:$0xff]  }
 0x289   : > { %5648 = vmatpush3.bf16.msra.mxu0 %v5917_v52  ;;  %v5985_v52 = vld [vmem:[%s7132_s2 + $0xe0] ss:$16 sps:$4 sm:$0xff]  }
 0x28a   : > { %5649 = vmatprep.subr.bf16.mxu0 %v5918_v53 }
 0x28d   : > { %5650 = vmatpush3.bf16.msra.mxu0 %v5918_v53  ;;  %v5993_v53 = vld [vmem:[%s7132_s2 + $0x104] ss:$16 sps:$4 sm:$0xff]  }
 0x28e   : > { %1890 = vmatprep.subr.bf16.mxu0 %v5945_v37 }
 0x353   : > { %v5637_v3 = vpop.f32.mrb[8].mxu0 }
 0x354   : > { %v1117_v4 = vadd.f32 %v5637_v3, %v5226_v2  ;;  %v1108_v5 = vpop.f32.mrb[9].mxu0 }
 0x355   : > { %v1109_v6 = vadd.f32 %v5226_v2, %v1108_v5  ;;  %v5638_v7 = vpop.f32.mrb[10].mxu0 }
 0x356   : > { %v1120_v8 = vadd.f32 %v5638_v7, %v5226_v2  ;;  %v1111_v9 = vpop.f32.mrb[11].mxu0  ;;  %v1141_v11 = vmax.f32 %v1117_v4, 0.0 }
 0x357   : > { %v1112_v10 = vadd.f32 %v5226_v2, %v1111_v9  ;;  %v1139_v13 = vmax.f32 %v1109_v6, 0.0 }
 0x358   : > { %v1142_v12 = vmax.f32 %v1120_v8, 0.0 }
 0x359   : > { %v1140_v14 = vmax.f32 %v1112_v10, 0.0 }
 0x35a   : > { %v1148_v15 = vpack.c.bf16 %v1142_v12, %v1141_v11 }
 0x35b   : > { %v1147_v16 = vpack.c.bf16 %v1140_v14, %v1139_v13  ;;  %v5641_v17 = vpop.f32.mrb[12].mxu0 }
 0x35c   : > { %v1133_v18 = vadd.f32 %v5641_v17, %v5226_v2  ;;  %v1124_v19 = vpop.f32.mrb[13].mxu0 }
 0x35d   : > { %5651 = vmatprep.mubr.msk.bf16.mxu0 %vm1061_vm3, %v1147_v16  ;;  %v1125_v20 = vadd.f32 %v5226_v2, %v1124_v19  ;;  %v5642_v21 = vpop.f32.mrb[14].mxu0  ;;  %v5946_v16 = vld [vmem:[%s7132_s2 + $0x8] ss:$16 sps:$4 sm:$0xff]  }
 0x35e   : > { %5652 = vmatmul.mubr.msk.bf16.vlgmr.msra.gmra.mrb[16].mxu0 %vm1061_vm3, %v1148_v15  ;;  %v1145_v22 = vmax.f32 %v1133_v18, 0.0  ;;  %v1136_v23 = vadd.f32 %v5642_v21, %v5226_v2  ;;  %v1127_v24 = vpop.f32.mrb[15].mxu0 }
 0x35f   : > { %v1143_v25 = vmax.f32 %v1125_v20, 0.0  ;;  %v1128_v26 = vadd.f32 %v5226_v2, %v1127_v24  ;;  %1891 = vmatpush1.bf16.msra.mxu0 %v5943_v36  ;;  %v5954_v20 = vld [vmem:[%s7132_s2 + $0x2c] ss:$16 sps:$4 sm:$0xff]  }
 0x360   : > { %v1146_v27 = vmax.f32 %v1136_v23, 0.0  ;;  %1892 = vmatprep.subr.bf16.mxu0 %v5951_v39 }
 0x361   : > { %v1144_v28 = vmax.f32 %v1128_v26, 0.0 }
 0x362   : > { %v1150_v29 = vpack.c.bf16 %v1146_v27, %v1145_v22 }
 0x363   : > { %v1149_v30 = vpack.c.bf16 %v1144_v28, %v1143_v25  ;;  %1893 = vmatpush1.bf16.msra.mxu0 %v5949_v40  ;;  %v5958_v40 = vld [vmem:[%s7132_s2 + $0x48] ss:$16 sps:$4 sm:$0xff]  }
 0x364   : > { %1894 = vmatprep.subr.bf16.mxu0 %v5957_v41 }
 0x365   : > { %5655 = vmatprep.mubr.msk.bf16.mxu0 %vm1061_vm3, %v1149_v30 }
 0x366   : > { %5656 = vmatmul.mubr.msk.bf16.gmra.mrb[20].mxu0 %vm1061_vm3, %v1150_v29  ;;  %v5952_v29 = vld [vmem:[%s7132_s2 + $0x28] ss:$16 sps:$4 sm:$0xff]  }
 0x367   : > { %1895 = vmatpush1.bf16.msra.mxu0 %v5955_v42 }
 0x368   : > { %1896 = vmatprep.subr.bf16.mxu0 %v5963_v43 }
 0x36b   : > { %1897 = vmatpush1.bf16.msra.mxu0 %v5961_v44  ;;  %v5966_v44 = vld [vmem:[%s7132_s2 + $0x6c] ss:$16 sps:$4 sm:$0xff]  }
 0x36c   : > { %1898 = vmatprep.subr.bf16.mxu0 %v5969_v45 }
 0x36f   : > { %1899 = vmatpush1.bf16.msra.mxu0 %v5967_v46 }
 0x370   : > { %1900 = vmatprep.subr.bf16.mxu0 %v5975_v47  ;;  %v5964_v47 = vld [vmem:[%s7132_s2 + $0x68] ss:$16 sps:$4 sm:$0xff]  }
 0x373   : > { %1901 = vmatpush1.bf16.msra.mxu0 %v5973_v48 }
 0x374   : > { %1902 = vmatprep.subr.bf16.mxu0 %v5981_v49 }
 0x377   : > { %1903 = vmatpush1.bf16.msra.mxu0 %v5979_v50  ;;  %v5972_v50 = vld [vmem:[%s7132_s2 + $0x8c] ss:$16 sps:$4 sm:$0xff]  }
 0x378   : > { %1904 = vmatprep.subr.bf16.mxu0 %v5987_v51 }
 0x37b   : > { %1905 = vmatpush1.bf16.msra.mxu0 %v5985_v52 }
 0x37c   : > { %1906 = vmatprep.subr.bf16.mxu0 %v5993_v53  ;;  %v5970_v53 = vld [vmem:[%s7132_s2 + $0x88] ss:$16 sps:$4 sm:$0xff]  }
 0x37f   : > { %1907 = vmatpush1.bf16.msra.mxu0 %v5991_v54 }
 0x380   : > { %1908 = vmatprep.subr.bf16.mxu0 %v5999_v55  ;;  %v5978_v55 = vld [vmem:[%s7132_s2 + $0xac] ss:$16 sps:$4 sm:$0xff]  }
 0x383   : > { %1909 = vmatpush1.bf16.msra.mxu0 %v5997_v56 }
 0x384   : > { %1910 = vmatprep.subr.bf16.mxu0 %v6005_v57  ;;  %v5976_v57 = vld [vmem:[%s7132_s2 + $0xa8] ss:$16 sps:$4 sm:$0xff]  }
 0x387   : > { %1911 = vmatpush1.bf16.msra.mxu0 %v6003_v58 }
 0x388   : > { %1912 = vmatprep.subr.bf16.mxu0 %v6011_v59  ;;  %v5984_v59 = vld [vmem:[%s7132_s2 + $0xcc] ss:$16 sps:$4 sm:$0xff]  }
 0x38b   : > { %1913 = vmatpush1.bf16.msra.mxu0 %v6009_v60 }
 0x38c   : > { %1914 = vmatprep.subr.bf16.mxu0 %v6017_v61  ;;  %v5982_v61 = vld [vmem:[%s7132_s2 + $0xc8] ss:$16 sps:$4 sm:$0xff]  }
 0x38f   : > { %1915 = vmatpush1.bf16.msra.mxu0 %v6015_v62  ;;  %v5990_v62 = vld [vmem:[%s7132_s2 + $0xec] ss:$16 sps:$4 sm:$0xff]  }
 0x390   : > { %1916 = vmatprep.subr.bf16.mxu0 %v6023_v63  ;;  %v5996_v63 = vld [vmem:[%s7132_s2 + $0x10c] ss:$16 sps:$4 sm:$0xff]  }
 0x393   : > { %1917 = vmatpush1.bf16.msra.mxu0 %v6021_v0  ;;  %v5994_v0 = vld [vmem:[%s7132_s2 + $0x108] ss:$16 sps:$4 sm:$0xff]  }
 0x431   : > { %v5653_v2 = vpop.f32.mrb[16].mxu0 }
 0x432   : > { %v1245_v3 = vadd.f32 %v5653_v2, %v5235_v1  ;;  %v1236_v4 = vpop.f32.mrb[17].mxu0  ;;  %v6000_v2 = vld [vmem:[%s7132_s2 + $0x128] ss:$16 sps:$4 sm:$0xff]  }
 0x433   : > { %v1237_v5 = vadd.f32 %v5235_v1, %v1236_v4  ;;  %v5654_v6 = vpop.f32.mrb[18].mxu0  ;;  %v6006_v4 = vld [vmem:[%s7132_s2 + $0x148] ss:$16 sps:$4 sm:$0xff]  }
 0x434   : > { %v1269_v7 = vmax.f32 %v1245_v3, 0.0  ;;  %v1248_v8 = vadd.f32 %v5654_v6, %v5235_v1  ;;  %v1239_v9 = vpop.f32.mrb[19].mxu0  ;;  %v6008_v3 = vld [vmem:[%s7132_s2 + $0x14c] ss:$16 sps:$4 sm:$0xff]   ;;  %v6012_v6 = vld [vmem:[%s7132_s2 + $0x168] ss:$16 sps:$4 sm:$0xff]  }
 0x435   : > { %v1267_v10 = vmax.f32 %v1237_v5, 0.0  ;;  %v1240_v11 = vadd.f32 %v5235_v1, %v1239_v9  ;;  %v6014_v5 = vld [vmem:[%s7132_s2 + $0x16c] ss:$16 sps:$4 sm:$0xff]  }
 0x436   : > { %v1270_v12 = vmax.f32 %v1248_v8, 0.0  ;;  %v6018_v8 = vld [vmem:[%s7132_s2 + $0x188] ss:$16 sps:$4 sm:$0xff]   ;;  %v6026_v9 = vld [vmem:[%s7132_s2 + $0x1ac] ss:$16 sps:$4 sm:$0xff]  }
 0x437   : > { %v4562_v13 = vmax.f32 %v1267_v10, %v1269_v7  ;;  %v1268_v14 = vmax.f32 %v1240_v11, 0.0  ;;  %v6029_v11 = vld [vmem:[%s7132_s2 + $0x1c4] ss:$16 sps:$4 sm:$0xff]  }
 0x438   : > { %v1276_v15 = vpack.c.bf16 %v1270_v12, %v1269_v7  ;;  %v6020_v7 = vld [vmem:[%s7132_s2 + $0x18c] ss:$16 sps:$4 sm:$0xff]   ;;  %1918 = vmatprep.subr.bf16.mxu0 %v6029_v11 }
 0x439   : > { %v1275_v17 = vpack.c.bf16 %v1268_v14, %v1267_v10  ;;  %v4563_v18 = vmax.f32 %v1268_v14, %v1270_v12  ;;  %v5657_v19 = vpop.f32.mrb[20].mxu0  ;;  %v6024_v10 = vld [vmem:[%s7132_s2 + $0x1a8] ss:$16 sps:$4 sm:$0xff]   ;;  %v6032_v12 = vld [vmem:[%s7132_s2 + $0x1cc] ss:$16 sps:$4 sm:$0xff]  }
 0x43a   : > { %v1261_v21 = vadd.f32 %v5657_v19, %v5235_v1  ;;  %v1252_v22 = vpop.f32.mrb[21].mxu0  ;;  %v6030_v14 = vld [vmem:[%s7132_s2 + $0x1c8] ss:$16 sps:$4 sm:$0xff]  }
 0x43b   : > { %v4564_v23 = vmax.f32 %v4562_v13, %v4563_v18  ;;  %1420 = vmatmul.mubr.bf16.vlgmr.msra.gmra.mrb[0].mxu1 %v1275_v17  ;;  %v1253_v24 = vadd.f32 %v5235_v1, %v1252_v22  ;;  %v5658_v25 = vpop.f32.mrb[22].mxu0  ;;  %v6027_v13 = vld [vmem:[%s7132_s2 + $0x1c0] ss:$16 sps:$4 sm:$0xff]   ;;  %v6036_v18 = vld [vmem:[%s7132_s2 + $0x1e8] ss:$16 sps:$4 sm:$0xff]  }
 0x43c   : > { %v1273_v26 = vmax.f32 %v1261_v21, 0.0  ;;  %1429 = vmatprep.mubr.bf16.mxu1 %v6528_v35  ;;  %v1264_v27 = vadd.f32 %v5658_v25, %v5235_v1  ;;  %v1255_v28 = vpop.f32.mrb[23].mxu0  ;;  %1964 = vmatpush1.bf16.msra.mxu1 %v5946_v16  ;;  %v6038_v16 = vld [vmem:[%s7132_s2 + $0x1ec] ss:$16 sps:$4 sm:$0xff]   ;;  %v6033_v17 = vld [vmem:[%s7132_s2 + $0x1e0] ss:$16 sps:$4 sm:$0xff]  }
 0x43d   : > { %v4565_v30 = vrot.slane %v4564_v23, 4  ;;  %v1271_v31 = vmax.f32 %v1253_v24, 0.0  ;;  %v1256_v32 = vadd.f32 %v5235_v1, %v1255_v28  ;;  %1965 = vmatprep.subr.bf16.mxu1 %v5954_v20  ;;  %v6002_v1 = vld [vmem:[%s7132_s2 + $0x12c] ss:$16 sps:$4 sm:$0xff]   ;;  %1919 = vmatpush1.bf16.msra.mxu0 %v6027_v13  ;;  %v2085_v21 = vld [vmem:[%s7142_s16 + $0x8] sm:$0xff] }
 0x43e   : > { %v1274_v34 = vmax.f32 %v1264_v27, 0.0  ;;  %v2084_v19 = vld [vmem:[%s7142_s16] sm:$0xff]  ;;  %v2089_v24 = vld [vmem:[%s7142_s16 + $0x28] sm:$0xff]  ;;  %v1297_v27 = vlaneseq }
 0x43f   : > { %v4566_v36 = vmax.f32 %v4564_v23, %v4565_v30  ;;  %v4571_v37 = vmax.f32 %v1271_v31, %v1273_v26  ;;  %v1272_v38 = vmax.f32 %v1256_v32, 0.0  ;;  %v2088_v20 = vld [vmem:[%s7142_s16 + $0x20] sm:$0xff]  ;;  %v5326_v25 = vcombine.low %v2085_v21, %v2089_v24  ;;  %v1295_v30 = vld [vmem:[%s7124_s6] sm:$0x3] }
 0x440   : > { %v1278_v39 = vpack.c.bf16 %v1274_v34, %v1273_v26  ;;  %1966 = vmatpush1.bf16.msra.mxu1 %v5952_v29  ;;  %v5324_v22 = vcombine.low %v2084_v19, %v2088_v20  ;;  %v5325_v23 = vcombine.high %v2084_v19, %v2088_v20  ;;  %v5327_v26 = vcombine.high %v2085_v21, %v2089_v24  ;;  %v2113_v19 = vld [vmem:[%s7142_s16 + $0xe8] sm:$0xff] }
 0x441   : > { %v4567_v41 = vrot.slane %v4566_v36, 2  ;;  %v1277_v42 = vpack.c.bf16 %v1272_v38, %v1271_v31  ;;  %v4572_v43 = vmax.f32 %v1272_v38, %v1274_v34  ;;  %1967 = vmatprep.subr.bf16.mxu1 %v5960_v33  ;;  %v7279_v28 = vshrl.u32 %v1297_v27, 7 }
 0x443   : > { %v4568_v45 = vmax.f32 %v4566_v36, %v4567_v41  ;;  %1430 = vmatmul.mubr.bf16.gmra.mrb[4].mxu1 %v1276_v15  ;;  %v4573_v46 = vmax.f32 %v4571_v37, %v4572_v43  ;;  %v6035_v15 = vld [vmem:[%s7132_s2 + $0x1e4] ss:$16 sps:$4 sm:$0xff]   ;;  %v7282_v29 = vsub.s32 0, %v7279_v28  ;;  %v7286_v31 = vsub.s32 1, %v7279_v28 }
 0x444   : > { %1439 = vmatprep.mubr.bf16.mxu1 %v6528_v35  ;;  %1968 = vmatpush1.bf16.msra.mxu1 %v5958_v40 }
 0x445   : > { %v4569_v48 = vrot.slane %v4568_v45, 1  ;;  %v4574_v49 = vrot.slane %v4573_v46, 4  ;;  %1969 = vmatprep.subr.bf16.mxu1 %v5966_v44  ;;  %1920 = vmatprep.subr.bf16.mxu0 %v6035_v15  ;;  %v7289_v32 = vrot.slane %v1295_v30, %v7282_v29  ;;  %v7292_v33 = vrot.slane %v1295_v30, %v7286_v31 }
 0x446   : > { %1921 = vmatpush1.bf16.msra.mxu0 %v6033_v17  ;;  %v2112_v17 = vld [vmem:[%s7142_s16 + $0xe0] sm:$0xff] }
 0x447   : > { %v7243_v51 = vmax.f32 %v4568_v45, %v4569_v48  ;;  %v4575_v52 = vmax.f32 %v4573_v46, %v4574_v49  ;;  %3662 = vmatprep.subr.bf16.mxu0 %v5325_v23  ;;  %v2092_v45 = vld [vmem:[%s7142_s16 + $0x40] sm:$0xff]  ;;  %v2093_v49 = vld [vmem:[%s7142_s16 + $0x48] sm:$0xff] }
 0x448   : > { %1970 = vmatpush1.bf16.msra.mxu1 %v5964_v47  ;;  %v2096_v48 = vld [vmem:[%s7142_s16 + $0x60] sm:$0xff] }
 0x449   : > { %8287 = vst [vmem:[#allocation38_spill] sm:$0xff] %v7243_v51  ;;  %v4576_v54 = vrot.slane %v4575_v52, 2  ;;  %1971 = vmatprep.subr.bf16.mxu1 %v5972_v50  ;;  %v2097_v50 = vld [vmem:[%s7142_s16 + $0x68] sm:$0xff] }
 0x44b   : > { %v4577_v56 = vmax.f32 %v4575_v52, %v4576_v54  ;;  %1440 = vmatmul.mubr.bf16.gmra.mrb[8].mxu1 %v1277_v42 }
 0x44c   : > { %1449 = vmatprep.mubr.bf16.mxu1 %v6528_v35  ;;  %1972 = vmatpush1.bf16.msra.mxu1 %v5970_v53  ;;  %v5988_v35 = vld [vmem:[%s7132_s2 + $0xe8] ss:$16 sps:$4 sm:$0xff]  }
 0x44d   : > { %v4578_v58 = vrot.slane %v4577_v56, 1  ;;  %1973 = vmatprep.subr.bf16.mxu1 %v5978_v55 }
 0x44f   : > { %v7250_v60 = vmax.f32 %v4577_v56, %v4578_v58 }
 0x450   : > { %1974 = vmatpush1.bf16.msra.mxu1 %v5976_v57 }
 0x451   : > { %8288 = vst [vmem:[#allocation39_spill] sm:$0xff] %v7250_v60  ;;  %1975 = vmatprep.subr.bf16.mxu1 %v5984_v59  ;;  %v5333_v59 = vcombine.high %v2092_v45, %v2096_v48 }
 0x453   : > { %1450 = vmatmul.mubr.bf16.gmra.mrb[12].mxu1 %v1278_v39 }
 0x454   : > { %1976 = vmatpush1.bf16.msra.mxu1 %v5982_v61  ;;  %v5335_v61 = vcombine.high %v2093_v49, %v2097_v50 }
 0x455   : > { %1977 = vmatprep.subr.bf16.mxu1 %v5990_v62  ;;  %v7304_v62 = vld [vmem:[%s7142_s16 + $0x80] sm:$0xff] }
 0x458   : > { %1978 = vmatpush1.bf16.msra.mxu1 %v5988_v35 }
 0x459   : > { %1979 = vmatprep.subr.bf16.mxu1 %v5996_v63 }
 0x45c   : > { %1980 = vmatpush1.bf16.msra.mxu1 %v5994_v0  ;;  %v2104_v0 = vld [vmem:[%s7142_s16 + $0xa0] sm:$0xff] }
 0x45d   : > { %1981 = vmatprep.subr.bf16.mxu1 %v6002_v1  ;;  %v2101_v1 = vld [vmem:[%s7142_s16 + $0x88] sm:$0xff] }
 0x460   : > { %1982 = vmatpush1.bf16.msra.mxu1 %v6000_v2  ;;  %v2105_v2 = vld [vmem:[%s7142_s16 + $0xa8] sm:$0xff] }
 0x461   : > { %1983 = vmatprep.subr.bf16.mxu1 %v6008_v3  ;;  %v5343_v13 = vcombine.high %v2101_v1, %v2105_v2 }
 0x464   : > { %1984 = vmatpush1.bf16.msra.mxu1 %v6006_v4 }
 0x465   : > { %1985 = vmatprep.subr.bf16.mxu1 %v6014_v5 }
 0x468   : > { %1986 = vmatpush1.bf16.msra.mxu1 %v6012_v6 }
 0x469   : > { %1987 = vmatprep.subr.bf16.mxu1 %v6020_v7 }
 0x46c   : > { %1988 = vmatpush1.bf16.msra.mxu1 %v6018_v8  ;;  %v5332_v8 = vcombine.low %v2092_v45, %v2096_v48 }
 0x46d   : > { %1989 = vmatprep.subr.bf16.mxu1 %v6026_v9  ;;  %v5334_v9 = vcombine.low %v2093_v49, %v2097_v50 }
 0x470   : > { %1990 = vmatpush1.bf16.msra.mxu1 %v6024_v10 }
 0x471   : > { %1991 = vmatprep.subr.bf16.mxu1 %v6032_v12  ;;  %v5341_v12 = vcombine.high %v7304_v62, %v2104_v0 }
 0x474   : > { %1992 = vmatpush1.bf16.msra.mxu1 %v6030_v14  ;;  %v7314_v14 = vld [vmem:[%s7142_s16 + $0xc0] sm:$0xff] }
 0x475   : > { %1993 = vmatprep.subr.bf16.mxu1 %v6038_v16  ;;  %v5348_v49 = vcombine.low %v7314_v14, %v2112_v17 }
 0x478   : > { %1994 = vmatpush1.bf16.msra.mxu1 %v6036_v18  ;;  %v2109_v18 = vld [vmem:[%s7142_s16 + $0xc8] sm:$0xff] }
 0x479   : > { %3808 = vmatprep.subr.bf16.mxu1 %v5327_v26  ;;  %v5342_v26 = vcombine.low %v2101_v1, %v2105_v2  ;;  %v2129_v1 = vld [vmem:[%s7142_s16 + $0x168] sm:$0xff] }
 0x50e   : > { %v1421_v34 = vpop.f32.mrb[0].mxu1 }
 0x50f   : > { %v1422_v36 = vadd.f32 %v1421_v34, %v7289_v32  ;;  %v1423_v37 = vpop.f32.mrb[1].mxu1 }
 0x510   : > { %v1424_v38 = vadd.f32 %v1423_v37, %v7292_v33  ;;  %v1425_v39 = vpop.f32.mrb[2].mxu1  ;;  %v5351_v37 = vcombine.high %v2109_v18, %v2113_v19 }
 0x511   : > { %v1426_v40 = vadd.f32 %v1425_v39, %v7289_v32  ;;  %v1427_v41 = vpop.f32.mrb[3].mxu1  ;;  %v1460_v43 = vmax.f32 %v1422_v36, 0.0  ;;  %v5349_v36 = vcombine.high %v7314_v14, %v2112_v17 }
 0x512   : > { %v1428_v42 = vadd.f32 %v1427_v41, %v7292_v33  ;;  %v1461_v46 = vmax.f32 %v1424_v38, 0.0  ;;  %v7323_v38 = vld [vmem:[%s7142_s16 + $0x100] sm:$0xff] }
 0x513   : > { %v1462_v44 = vmax.f32 %v1426_v40, 0.0 }
 0x514   : > { %v1463_v47 = vmax.f32 %v1428_v42, 0.0  ;;  %v7327_v42 = vld [vmem:[%s7142_s16 + $0x120] sm:$0xff] }
 0x515   : > { %v1476_v52 = vpack.c.bf16 %v1462_v44, %v1460_v43  ;;  %v4526_v53 = vmax.f32 %v1460_v43, %v1462_v44  ;;  %v7330_v43 = vld [vmem:[%s7142_s16 + $0x108] sm:$0xff] }
 0x516   : > { %v1477_v54 = vpack.c.bf16 %v1463_v47, %v1461_v46  ;;  %v4535_v55 = vmax.f32 %v1461_v46, %v1463_v47  ;;  %v1431_v56 = vpop.f32.mrb[4].mxu1  ;;  %v7333_v44 = vld [vmem:[%s7142_s16 + $0x128] sm:$0xff] }
 0x517   : > { %v1432_v57 = vadd.f32 %v1431_v56, %v7289_v32  ;;  %v1433_v58 = vpop.f32.mrb[5].mxu1 }
 0x518   : > { %v1434_v35 = vadd.f32 %v1433_v58, %v7292_v33  ;;  %v1435_v63 = vpop.f32.mrb[6].mxu1  ;;  %1922 = vmatprep.mubr.bf16.mxu0 %v1477_v54  ;;  %1995 = vmatprep.mubr.bf16.mxu1 %v1477_v54  ;;  %v5350_v54 = vcombine.low %v2109_v18, %v2113_v19  ;;  %v5359_v58 = vcombine.high %v7330_v43, %v7333_v44  ;;  %v2136_v19 = vld [vmem:[%s7142_s16 + $0x1a0] sm:$0xff] }
 0x519   : > { %v1464_v3 = vmax.f32 %v1432_v57, 0.0  ;;  %v1436_v4 = vadd.f32 %v1435_v63, %v7289_v32  ;;  %v1437_v5 = vpop.f32.mrb[7].mxu1  ;;  %1923 = vmatmul.mubr.bf16.vlgmr.msra.gmra.mrb[24].mxu0 %v1476_v52  ;;  %1996 = vmatmul.mubr.bf16.vlgmr.msra.gmra.mrb[16].mxu1 %v1476_v52  ;;  %v5357_v57 = vcombine.high %v7323_v38, %v7327_v42  ;;  %v2128_v63 = vld [vmem:[%s7142_s16 + $0x160] sm:$0xff] }
 0x51a   : > { %v1465_v6 = vmax.f32 %v1434_v35, 0.0  ;;  %v1438_v7 = vadd.f32 %v1437_v5, %v7292_v33  ;;  %3663 = vmatpush1.bf16.msra.mxu0 %v5324_v22  ;;  %3809 = vmatpush1.bf16.msra.mxu1 %v5326_v25  ;;  %v5340_v22 = vcombine.low %v7304_v62, %v2104_v0  ;;  %v5356_v35 = vcombine.low %v7323_v38, %v7327_v42  ;;  %v2125_v0 = vld [vmem:[%s7142_s16 + $0x148] sm:$0xff] }
 0x51b   : > { %v4527_v10 = vmax.f32 %v4526_v53, %v1464_v3  ;;  %v1466_v11 = vmax.f32 %v1436_v4, 0.0  ;;  %3664 = vmatprep.subr.bf16.mxu0 %v5333_v59  ;;  %3810 = vmatprep.subr.bf16.mxu1 %v5335_v61  ;;  %v7343_v59 = vld [vmem:[%s7142_s16 + $0x140] sm:$0xff]  ;;  %v5358_v5 = vcombine.low %v7330_v43, %v7333_v44  ;;  %v5367_v14 = vcombine.high %v2125_v0, %v2129_v1  ;;  %v2141_v44 = vld [vmem:[%s7142_s16 + $0x1c8] sm:$0xff] }
 0x51c   : > { %v4536_v15 = vmax.f32 %v4535_v55, %v1465_v6  ;;  %v1467_v16 = vmax.f32 %v1438_v7, 0.0  ;;  %v2144_v43 = vld [vmem:[%s7142_s16 + $0x1e0] sm:$0xff] }
 0x51d   : > { %v1478_v20 = vpack.c.bf16 %v1466_v11, %v1464_v3  ;;  %v4528_v21 = vmax.f32 %v4527_v10, %v1466_v11 }
 0x51e   : > { %v1479_v23 = vpack.c.bf16 %v1467_v16, %v1465_v6  ;;  %v4537_v24 = vmax.f32 %v4536_v15, %v1467_v16  ;;  %v1441_v25 = vpop.f32.mrb[8].mxu1  ;;  %3665 = vmatpush1.bf16.msra.mxu0 %v5332_v8  ;;  %3811 = vmatpush1.bf16.msra.mxu1 %v5334_v9  ;;  %v2132_v15 = vld [vmem:[%s7142_s16 + $0x180] sm:$0xff] }
 0x51f   : > { %v4529_v27 = vrot.slane %v4528_v21, 4  ;;  %v1442_v30 = vadd.f32 %v1441_v25, %v7289_v32  ;;  %v1443_v34 = vpop.f32.mrb[9].mxu1  ;;  %3666 = vmatprep.subr.bf16.mxu0 %v5341_v12  ;;  %3812 = vmatprep.subr.bf16.mxu1 %v5343_v13  ;;  %v5365_v13 = vcombine.high %v7343_v59, %v2128_v63 }
 0x520   : > { %v4538_v39 = vrot.slane %v4537_v24, 4  ;;  %v1444_v40 = vadd.f32 %v1443_v34, %v7292_v33  ;;  %v1445_v41 = vpop.f32.mrb[10].mxu1  ;;  %1932 = vmatprep.mubr.bf16.mxu0 %v1479_v23  ;;  %2005 = vmatprep.mubr.bf16.mxu1 %v1479_v23 }
 0x521   : > { %v4530_v45 = vmax.f32 %v4528_v21, %v4529_v27  ;;  %v1468_v46 = vmax.f32 %v1442_v30, 0.0  ;;  %v1446_v47 = vadd.f32 %v1445_v41, %v7289_v32  ;;  %v1447_v48 = vpop.f32.mrb[11].mxu1  ;;  %1933 = vmatmul.mubr.bf16.gmra.mrb[28].mxu0 %v1478_v20  ;;  %2006 = vmatmul.mubr.bf16.gmra.mrb[20].mxu1 %v1478_v20  ;;  %v2133_v20 = vld [vmem:[%s7142_s16 + $0x188] sm:$0xff] }
 0x522   : > { %v4539_v50 = vmax.f32 %v4537_v24, %v4538_v39  ;;  %v1469_v52 = vmax.f32 %v1444_v40, 0.0  ;;  %v1448_v53 = vadd.f32 %v1447_v48, %v7292_v33  ;;  %3667 = vmatpush1.bf16.msra.mxu0 %v5340_v22  ;;  %3813 = vmatpush1.bf16.msra.mxu1 %v5342_v26  ;;  %v2137_v21 = vld [vmem:[%s7142_s16 + $0x1a8] sm:$0xff]  ;;  %v5364_v26 = vcombine.low %v7343_v59, %v2128_v63  ;;  %v2140_v40 = vld [vmem:[%s7142_s16 + $0x1c0] sm:$0xff] }
 0x523   : > { %v4531_v55 = vrot.slane %v4530_v45, 2  ;;  %v1470_v56 = vmax.f32 %v1446_v47, 0.0  ;;  %3668 = vmatprep.subr.bf16.mxu0 %v5349_v36  ;;  %3814 = vmatprep.subr.bf16.mxu1 %v5351_v37  ;;  %v5366_v36 = vcombine.low %v2125_v0, %v2129_v1  ;;  %v5375_v39 = vcombine.high %v2133_v20, %v2137_v21  ;;  %v2153_v59 = vld [vmem:[%s7142_s16 + $0x228] sm:$0xff] }
 0x524   : > { %v4540_v61 = vrot.slane %v4539_v50, 2  ;;  %v1471_v62 = vmax.f32 %v1448_v53, 0.0  ;;  %v5381_v53 = vcombine.high %v2140_v40, %v2144_v43 }
 0x525   : > { %v4532_v2 = vmax.f32 %v4530_v45, %v4531_v55  ;;  %v1480_v3 = vpack.c.bf16 %v1470_v56, %v1468_v46  ;;  %v4544_v4 = vmax.f32 %v1468_v46, %v1470_v56  ;;  %v2145_v45 = vld [vmem:[%s7142_s16 + $0x1e8] sm:$0xff]  ;;  %v2148_v55 = vld [vmem:[%s7142_s16 + $0x200] sm:$0xff] }
 0x526   : > { %v4541_v6 = vmax.f32 %v4539_v50, %v4540_v61  ;;  %v1481_v7 = vpack.c.bf16 %v1471_v62, %v1469_v52  ;;  %v4553_v8 = vmax.f32 %v1469_v52, %v1471_v62  ;;  %v1451_v9 = vpop.f32.mrb[12].mxu1  ;;  %3669 = vmatpush1.bf16.msra.mxu0 %v5348_v49  ;;  %3815 = vmatpush1.bf16.msra.mxu1 %v5350_v54 }
 0x527   : > { %v4533_v10 = vrot.slane %v4532_v2, 1  ;;  %v1452_v11 = vadd.f32 %v1451_v9, %v7289_v32  ;;  %v1453_v12 = vpop.f32.mrb[13].mxu1  ;;  %3670 = vmatprep.subr.bf16.mxu0 %v5357_v57  ;;  %3816 = vmatprep.subr.bf16.mxu1 %v5359_v58  ;;  %v5374_v50 = vcombine.low %v2133_v20, %v2137_v21  ;;  %v5383_v54 = vcombine.high %v2141_v44, %v2145_v45  ;;  %v2152_v57 = vld [vmem:[%s7142_s16 + $0x220] sm:$0xff]  ;;  %v2149_v58 = vld [vmem:[%s7142_s16 + $0x208] sm:$0xff] }
 0x528   : > { %v4542_v16 = vrot.slane %v4541_v6, 1  ;;  %v1454_v17 = vadd.f32 %v1453_v12, %v7292_v33  ;;  %v1455_v18 = vpop.f32.mrb[14].mxu1  ;;  %1942 = vmatprep.mubr.bf16.mxu0 %v1481_v7  ;;  %2015 = vmatprep.mubr.bf16.mxu1 %v1481_v7  ;;  %v5382_v63 = vcombine.low %v2141_v44, %v2145_v45  ;;  %v5389_v1 = vcombine.high %v2148_v55, %v2152_v57  ;;  %v2161_v7 = vld [vmem:[%s7142_s16 + $0x268] sm:$0xff] }
 0x529   : > { %v7359_v22 = vmax.f32 %v4532_v2, %v4533_v10  ;;  %v1472_v23 = vmax.f32 %v1452_v11, 0.0  ;;  %v1456_v24 = vadd.f32 %v1455_v18, %v7289_v32  ;;  %v1457_v25 = vpop.f32.mrb[15].mxu1  ;;  %1943 = vmatmul.mubr.bf16.gmra.mrb[32].mxu0 %v1480_v3  ;;  %2016 = vmatmul.mubr.bf16.gmra.mrb[24].mxu1 %v1480_v3  ;;  %v5373_v32 = vcombine.high %v2132_v15, %v2136_v19  ;;  %v2156_v3 = vld [vmem:[%s7142_s16 + $0x240] sm:$0xff]  ;;  %v2165_v18 = vld [vmem:[%s7142_s16 + $0x288] sm:$0xff] }
 0x52a   : > { %v7363_v27 = vmax.f32 %v4541_v6, %v4542_v16  ;;  %v1473_v30 = vmax.f32 %v1454_v17, 0.0  ;;  %v1458_v34 = vadd.f32 %v1457_v25, %v7292_v33  ;;  %3671 = vmatpush1.bf16.msra.mxu0 %v5356_v35  ;;  %3817 = vmatpush1.bf16.msra.mxu1 %v5358_v5  ;;  %v5372_v33 = vcombine.low %v2132_v15, %v2136_v19  ;;  %v2160_v5 = vld [vmem:[%s7142_s16 + $0x260] sm:$0xff]  ;;  %v2157_v6 = vld [vmem:[%s7142_s16 + $0x248] sm:$0xff] }
 0x52b   : > { %v4545_v37 = vmax.f32 %v4544_v4, %v1472_v23  ;;  %v1474_v38 = vmax.f32 %v1456_v24, 0.0  ;;  %3672 = vmatprep.subr.bf16.mxu0 %v5365_v13  ;;  %3818 = vmatprep.subr.bf16.mxu1 %v5367_v14  ;;  %v5380_v35 = vcombine.low %v2140_v40, %v2144_v43  ;;  %v5391_v2 = vcombine.high %v2149_v58, %v2153_v59  ;;  %v2164_v15 = vld [vmem:[%s7142_s16 + $0x280] sm:$0xff]  ;;  %v2169_v19 = vld [vmem:[%s7142_s16 + $0x2a8] sm:$0xff] }
 0x52c   : > { %v4554_v41 = vmax.f32 %v4553_v8, %v1473_v30  ;;  %v1475_v42 = vmax.f32 %v1458_v34, 0.0  ;;  %v5388_v10 = vcombine.low %v2148_v55, %v2152_v57  ;;  %v5390_v11 = vcombine.low %v2149_v58, %v2153_v59  ;;  %v2168_v17 = vld [vmem:[%s7142_s16 + $0x2a0] sm:$0xff]  ;;  %v2181_v43 = vld [vmem:[%s7142_s16 + $0x308] sm:$0xff] }
 0x52d   : > { %v1482_v46 = vpack.c.bf16 %v1474_v38, %v1472_v23  ;;  %v4546_v47 = vmax.f32 %v4545_v37, %v1474_v38  ;;  %v5397_v13 = vcombine.high %v2156_v3, %v2160_v5  ;;  %v5399_v14 = vcombine.high %v2157_v6, %v2161_v7  ;;  %v2176_v34 = vld [vmem:[%s7142_s16 + $0x2e0] sm:$0xff]  ;;  %v2177_v37 = vld [vmem:[%s7142_s16 + $0x2e8] sm:$0xff] }
 0x52e   : > { %v1483_v48 = vpack.c.bf16 %v1475_v42, %v1473_v30  ;;  %v4555_v49 = vmax.f32 %v4554_v41, %v1475_v42  ;;  %3673 = vmatpush1.bf16.msra.mxu0 %v5364_v26  ;;  %3819 = vmatpush1.bf16.msra.mxu1 %v5366_v36  ;;  %v5396_v23 = vcombine.low %v2156_v3, %v2160_v5  ;;  %v2172_v30 = vld [vmem:[%s7142_s16 + $0x2c0] sm:$0xff]  ;;  %v2173_v36 = vld [vmem:[%s7142_s16 + $0x2c8] sm:$0xff] }
 0x52f   : > { %v4547_v52 = vrot.slane %v4546_v47, 4  ;;  %3674 = vmatprep.subr.bf16.mxu0 %v5373_v32  ;;  %3820 = vmatprep.subr.bf16.mxu1 %v5375_v39  ;;  %v5398_v24 = vcombine.low %v2157_v6, %v2161_v7  ;;  %v5405_v25 = vcombine.high %v2164_v15, %v2168_v17  ;;  %v5407_v26 = vcombine.high %v2165_v18, %v2169_v19  ;;  %v2180_v41 = vld [vmem:[%s7142_s16 + $0x300] sm:$0xff]  ;;  %v2185_v44 = vld [vmem:[%s7142_s16 + $0x328] sm:$0xff] }
 0x530   : > { %v4556_v56 = vrot.slane %v4555_v49, 4  ;;  %1952 = vmatprep.mubr.bf16.mxu0 %v1483_v48  ;;  %2025 = vmatprep.mubr.bf16.mxu1 %v1483_v48  ;;  %v5404_v38 = vcombine.low %v2164_v15, %v2168_v17  ;;  %v5406_v32 = vcombine.low %v2165_v18, %v2169_v19  ;;  %v5413_v39 = vcombine.high %v2172_v30, %v2176_v34  ;;  %v2184_v42 = vld [vmem:[%s7142_s16 + $0x320] sm:$0xff]  ;;  %v2205_v5 = vld [vmem:[%s7142_s16 + $0x3c8] sm:$0xff]  ;;  %v1548_v19 = vld [vmem:[%s7134_s24] sm:$0xf] }
 0x531   : > { %v4548_v61 = vmax.f32 %v4546_v47, %v4547_v52  ;;  %1953 = vmatmul.mubr.bf16.gmra.mrb[36].mxu0 %v1482_v46  ;;  %2026 = vmatmul.mubr.bf16.gmra.mrb[28].mxu1 %v1482_v46  ;;  %v5415_v40 = vcombine.high %v2173_v36, %v2177_v37  ;;  %v5412_v45 = vcombine.low %v2172_v30, %v2176_v34  ;;  %v2188_v48 = vld [vmem:[%s7142_s16 + $0x340] sm:$0xff]  ;;  %v2193_v52 = vld [vmem:[%s7142_s16 + $0x368] sm:$0xff] }
 0x532   : > { %v4557_v62 = vmax.f32 %v4555_v49, %v4556_v56  ;;  %3675 = vmatpush1.bf16.msra.mxu0 %v5372_v33  ;;  %3821 = vmatpush1.bf16.msra.mxu1 %v5374_v50  ;;  %v5414_v46 = vcombine.low %v2173_v36, %v2177_v37  ;;  %v5421_v47 = vcombine.high %v2180_v41, %v2184_v42  ;;  %v2192_v49 = vld [vmem:[%s7142_s16 + $0x360] sm:$0xff]  ;;  %v2189_v50 = vld [vmem:[%s7142_s16 + $0x348] sm:$0xff] }
 0x533   : > { %v4549_v0 = vrot.slane %v4548_v61, 2  ;;  %3676 = vmatprep.subr.bf16.mxu0 %v5381_v53  ;;  %3822 = vmatprep.subr.bf16.mxu1 %v5383_v54  ;;  %v5423_v33 = vcombine.high %v2181_v43, %v2185_v44  ;;  %v5420_v53 = vcombine.low %v2180_v41, %v2184_v42  ;;  %v5422_v54 = vcombine.low %v2181_v43, %v2185_v44  ;;  %v2196_v59 = vld [vmem:[%s7142_s16 + $0x380] sm:$0xff]  ;;  %v2209_v7 = vld [vmem:[%s7142_s16 + $0x3e8] sm:$0xff] }
 0x534   : > { %v4558_v4 = vrot.slane %v4557_v62, 2  ;;  %v5429_v55 = vcombine.high %v2188_v48, %v2192_v49  ;;  %v5431_v56 = vcombine.high %v2189_v50, %v2193_v52  ;;  %v5428_v57 = vcombine.low %v2188_v48, %v2192_v49  ;;  %v2204_v3 = vld [vmem:[%s7142_s16 + $0x3c0] sm:$0xff]  ;;  %v7418_v15 = vld [vmem:[%s7142_s16 + $0x428] sm:$0xff] }
 0x535   : > { %v4550_v8 = vmax.f32 %v4548_v61, %v4549_v0  ;;  %v5430_v58 = vcombine.low %v2189_v50, %v2193_v52  ;;  %v2200_v61 = vld [vmem:[%s7142_s16 + $0x3a0] sm:$0xff]  ;;  %v7436_v30 = vld [vmem:[%s7142_s16 + $0x448] sm:$0xff]  ;;  %v7464_v42 = vrot.slane %v1548_v19, %v7286_v31 }
 0x536   : > { %v4559_v9 = vmax.f32 %v4557_v62, %v4558_v4  ;;  %3677 = vmatpush1.bf16.msra.mxu0 %v5380_v35  ;;  %3823 = vmatpush1.bf16.msra.mxu1 %v5382_v63  ;;  %v2197_v62 = vld [vmem:[%s7142_s16 + $0x388] sm:$0xff]  ;;  %v5437_v35 = vcombine.high %v2196_v59, %v2200_v61  ;;  %v5436_v0 = vcombine.low %v2196_v59, %v2200_v61  ;;  %v2208_v4 = vld [vmem:[%s7142_s16 + $0x3e0] sm:$0xff] }
 0x537   : > { %v4551_v12 = vrot.slane %v4550_v8, 1  ;;  %3678 = vmatprep.subr.bf16.mxu0 %v5389_v1  ;;  %3824 = vmatprep.subr.bf16.mxu1 %v5391_v2  ;;  %v2201_v63 = vld [vmem:[%s7142_s16 + $0x3a8] sm:$0xff]  ;;  %v5445_v6 = vcombine.high %v2204_v3, %v2208_v4  ;;  %v7442_v36 = vld [vmem:[%s7142_s16 + $0x480] sm:$0xff] }
 0x538   : > { %v4560_v16 = vrot.slane %v4559_v9, 1  ;;  %v5438_v1 = vcombine.low %v2197_v62, %v2201_v63  ;;  %v5439_v2 = vcombine.high %v2197_v62, %v2201_v63  ;;  %v7439_v34 = vld [vmem:[%s7142_s16 + $0x468] sm:$0xff]  ;;  %v7445_v37 = vld [vmem:[%s7142_s16 + $0x4a0] sm:$0xff] }
 0x539   : > { %v7382_v20 = vmax.f32 %v4550_v8, %v4551_v12  ;;  %v5444_v8 = vcombine.low %v2204_v3, %v2208_v4  ;;  %v7410_v12 = vld [vmem:[%s7142_s16 + $0x420] sm:$0xff]  ;;  %v7470_v44 = vld [vmem:[%s7142_s16 + $0x4c8] sm:$0xff] }
 0x53a   : > { %v7384_v21 = vmax.f32 %v4559_v9, %v4560_v16  ;;  %3679 = vmatpush1.bf16.msra.mxu0 %v5388_v10  ;;  %3825 = vmatpush1.bf16.msra.mxu1 %v5390_v11  ;;  %v5446_v9 = vcombine.low %v2205_v5, %v2209_v7  ;;  %v5447_v10 = vcombine.high %v2205_v5, %v2209_v7  ;;  %v7407_v11 = vld [vmem:[%s7142_s16 + $0x400] sm:$0xff] }
 0x53b   : > { %3680 = vmatprep.subr.bf16.mxu0 %v5397_v13  ;;  %3826 = vmatprep.subr.bf16.mxu1 %v5399_v14  ;;  %v7413_v13 = vld [vmem:[%s7142_s16 + $0x408] sm:$0xff]  ;;  %v5453_v14 = vcombine.high %v7407_v11, %v7410_v12  ;;  %v7467_v43 = vld [vmem:[%s7142_s16 + $0x4e0] sm:$0xff] }
 0x53c   : > { %8289 = vst [vmem:[#allocation40_spill] sm:$0xff] %v7384_v21  ;;  %v5455_v18 = vcombine.high %v7413_v13, %v7418_v15  ;;  %v7486_v49 = vld [vmem:[%s7142_s16 + $0x500] sm:$0xff] }
 0x53d   : > { %v7489_v50 = vld [vmem:[%s7142_s16 + $0x520] sm:$0xff] }
 0x53e   : > { %3681 = vmatpush1.bf16.msra.mxu0 %v5396_v23  ;;  %3827 = vmatpush1.bf16.msra.mxu1 %v5398_v24  ;;  %v8246_v23 = vsub.s32 2, %v7279_v28  ;;  %v8245_v24 = vsub.s32 3, %v7279_v28 }
 0x53f   : > { %3682 = vmatprep.subr.bf16.mxu0 %v5405_v25  ;;  %3828 = vmatprep.subr.bf16.mxu1 %v5407_v26  ;;  %v7430_v25 = vld [vmem:[%s7142_s16 + $0x440] sm:$0xff] }
 0x540   : > { %v7433_v26 = vld [vmem:[%s7142_s16 + $0x460] sm:$0xff]  ;;  %v7461_v41 = vrot.slane %v1548_v19, %v8246_v23 }
 0x542   : > { %3683 = vmatpush1.bf16.msra.mxu0 %v5404_v38  ;;  %3829 = vmatpush1.bf16.msra.mxu1 %v5406_v32  ;;  %v7448_v38 = vld [vmem:[%s7142_s16 + $0x488] sm:$0xff] }
 0x543   : > { %3684 = vmatprep.subr.bf16.mxu0 %v5413_v39  ;;  %3830 = vmatprep.subr.bf16.mxu1 %v5415_v40  ;;  %v7451_v32 = vld [vmem:[%s7142_s16 + $0x4a8] sm:$0xff]  ;;  %v7454_v39 = vld [vmem:[%s7142_s16 + $0x4c0] sm:$0xff]  ;;  %v7457_v40 = vrot.slane %v1548_v19, %v7282_v29 }
 0x546   : > { %3685 = vmatpush1.bf16.msra.mxu0 %v5412_v45  ;;  %3831 = vmatpush1.bf16.msra.mxu1 %v5414_v46  ;;  %v7473_v45 = vld [vmem:[%s7142_s16 + $0x4e8] sm:$0xff]  ;;  %v7477_v46 = vrot.slane %v1548_v19, %v8245_v24 }
 0x547   : > { %3686 = vmatprep.subr.bf16.mxu0 %v5421_v47  ;;  %3832 = vmatprep.subr.bf16.mxu1 %v5423_v33 }
 0x54a   : > { %3687 = vmatpush1.bf16.msra.mxu0 %v5420_v53  ;;  %3833 = vmatpush1.bf16.msra.mxu1 %v5422_v54  ;;  %v7550_v54 = vld [vmem:[%s7142_s16 + $0x580] sm:$0xff] }
 0x54b   : > { %3688 = vmatprep.subr.bf16.mxu0 %v5429_v55  ;;  %3834 = vmatprep.subr.bf16.mxu1 %v5431_v56  ;;  %v7500_v56 = vld [vmem:[%s7142_s16 + $0x508] sm:$0xff] }
 0x54e   : > { %3689 = vmatpush1.bf16.msra.mxu0 %v5428_v57  ;;  %3835 = vmatpush1.bf16.msra.mxu1 %v5430_v58  ;;  %v7503_v57 = vld [vmem:[%s7142_s16 + $0x528] sm:$0xff] }
 0x54f   : > { %3690 = vmatprep.subr.bf16.mxu0 %v5437_v35  ;;  %3836 = vmatprep.subr.bf16.mxu1 %v5439_v2 }
 0x552   : > { %3691 = vmatpush1.bf16.msra.mxu0 %v5436_v0  ;;  %3837 = vmatpush1.bf16.msra.mxu1 %v5438_v1  ;;  %v7514_v0 = vld [vmem:[%s7142_s16 + $0x540] sm:$0xff] }
 0x553   : > { %3692 = vmatprep.subr.bf16.mxu0 %v5445_v6  ;;  %3838 = vmatprep.subr.bf16.mxu1 %v5447_v10  ;;  %v7517_v1 = vld [vmem:[%s7142_s16 + $0x560] sm:$0xff] }
 0x556   : > { %3693 = vmatpush1.bf16.msra.mxu0 %v5444_v8  ;;  %3839 = vmatpush1.bf16.msra.mxu1 %v5446_v9  ;;  %v7526_v8 = vld [vmem:[%s7142_s16 + $0x548] sm:$0xff] }
 0x557   : > { %3735 = vmatprep.subr.bf16.mxu0 %v5453_v14  ;;  %3881 = vmatprep.subr.bf16.mxu1 %v5455_v18  ;;  %v7529_v9 = vld [vmem:[%s7142_s16 + $0x568] sm:$0xff] }
 0x5ec   : > { %v1924_v58 = vpop.f32.mrb[24].mxu0  ;;  %v1997_v59 = vpop.f32.mrb[16].mxu1 }
 0x5ed   : > { %v1925_v2 = vadd.f32 %v1924_v58, %v7457_v40  ;;  %v1998_v3 = vadd.f32 %v1997_v59, %v7461_v41  ;;  %v1926_v4 = vpop.f32.mrb[25].mxu0  ;;  %v1999_v5 = vpop.f32.mrb[17].mxu1 }
 0x5ee   : > { %v1927_v10 = vadd.f32 %v1926_v4, %v7464_v42  ;;  %v2000_v14 = vadd.f32 %v1999_v5, %v7477_v46  ;;  %v1928_v18 = vpop.f32.mrb[26].mxu0  ;;  %v2001_v19 = vpop.f32.mrb[18].mxu1 }
 0x5ef   : > { %v1929_v24 = vadd.f32 %v1928_v18, %v7457_v40  ;;  %v2002_v23 = vadd.f32 %v2001_v19, %v7461_v41  ;;  %v1930_v7 = vpop.f32.mrb[27].mxu0  ;;  %v2003_v63 = vpop.f32.mrb[19].mxu1  ;;  %v2036_v19 = vmax.f32 %v1925_v2, 0.0  ;;  %v2038_v6 = vmax.f32 %v1998_v3, 0.0  ;;  %v7560_v18 = vld [vmem:[%s7142_s16 + $0x588] sm:$0xff] }
 0x5f0   : > { %v1931_v62 = vadd.f32 %v1930_v7, %v7464_v42  ;;  %v2004_v58 = vadd.f32 %v2003_v63, %v7477_v46  ;;  %v2037_v4 = vmax.f32 %v1927_v10, 0.0  ;;  %v2039_v53 = vmax.f32 %v2000_v14, 0.0  ;;  %v7553_v7 = vld [vmem:[%s7142_s16 + $0x5a0] sm:$0xff]  ;;  %v7563_v2 = vld [vmem:[%s7142_s16 + $0x5a8] sm:$0xff] }
 0x5f1   : > { %v2040_v35 = vmax.f32 %v1929_v24, 0.0  ;;  %v2042_v55 = vmax.f32 %v2002_v23, 0.0 }
 0x5f2   : > { %v2041_v61 = vmax.f32 %v1931_v62, 0.0  ;;  %v2043_v5 = vmax.f32 %v2004_v58, 0.0 }
 0x5f3   : > { %v7555_v63 = vpack.c.bf16 %v2040_v35, %v2036_v19  ;;  %v4454_v59 = vmax.f32 %v2036_v19, %v2040_v35  ;;  %v7557_v48 = vpack.c.bf16 %v2042_v55, %v2038_v6  ;;  %v4472_v47 = vmax.f32 %v2038_v6, %v2042_v55 }
 0x5f4   : > { %v7565_v24 = vpack.c.bf16 %v2041_v61, %v2037_v4  ;;  %v4463_v23 = vmax.f32 %v2037_v4, %v2041_v61  ;;  %v7567_v3 = vpack.c.bf16 %v2043_v5, %v2039_v53  ;;  %v4481_v62 = vmax.f32 %v2039_v53, %v2043_v5  ;;  %v1934_v10 = vpop.f32.mrb[28].mxu0  ;;  %v2007_v14 = vpop.f32.mrb[20].mxu1 }
 0x5f5   : > { %v1935_v58 = vadd.f32 %v1934_v10, %v7457_v40  ;;  %v2008_v52 = vadd.f32 %v2007_v14, %v7461_v41  ;;  %v1936_v35 = vpop.f32.mrb[29].mxu0  ;;  %v2009_v19 = vpop.f32.mrb[21].mxu1 }
 0x5f6   : > { %v1937_v33 = vadd.f32 %v1936_v35, %v7464_v42  ;;  %v2010_v61 = vadd.f32 %v2009_v19, %v7477_v46  ;;  %v1938_v4 = vpop.f32.mrb[30].mxu0  ;;  %v2011_v53 = vpop.f32.mrb[22].mxu1  ;;  %3694 = vmatprep.mubr.bf16.mxu0 %v7565_v24  ;;  %3840 = vmatprep.mubr.bf16.mxu1 %v7565_v24 }
 0x5f7   : > { %v2044_v10 = vmax.f32 %v1935_v58, 0.0  ;;  %v2046_v14 = vmax.f32 %v2008_v52, 0.0  ;;  %v1939_v55 = vadd.f32 %v1938_v4, %v7457_v40  ;;  %v2012_v17 = vadd.f32 %v2011_v53, %v7461_v41  ;;  %v1940_v6 = vpop.f32.mrb[31].mxu0  ;;  %v2013_v16 = vpop.f32.mrb[23].mxu1  ;;  %3695 = vmatmul.mubr.bf16.vlgmr.msra.gmra.mrb[40].mxu0 %v7555_v63  ;;  %3841 = vmatmul.mubr.bf16.vlgmr.msra.gmra.mrb[32].mxu1 %v7555_v63 }
 0x5f8   : > { %v2045_v35 = vmax.f32 %v1937_v33, 0.0  ;;  %v2047_v19 = vmax.f32 %v2010_v61, 0.0  ;;  %v1941_v60 = vadd.f32 %v1940_v6, %v7464_v42  ;;  %v2014_v51 = vadd.f32 %v2013_v16, %v7477_v46 }
 0x5f9   : > { %v8290_v58 = vcombine.low %v7407_v11, %v7410_v12  ;;  %v8291_v52 = vcombine.low %v7413_v13, %v7418_v15  ;;  %v4455_v4 = vmax.f32 %v4454_v59, %v2044_v10  ;;  %v4473_v53 = vmax.f32 %v4472_v47, %v2046_v14 }
 0x5fa   : > { %v2048_v5 = vmax.f32 %v1939_v55, 0.0  ;;  %v2050_v21 = vmax.f32 %v2012_v17, 0.0  ;;  %v8292_v33 = vcombine.high %v7430_v25, %v7433_v26  ;;  %v8293_v6 = vcombine.high %v7436_v30, %v7439_v34 }
 0x5fb   : > { %3736 = vmatpush1.bf16.msra.mxu0 %v8290_v58  ;;  %3882 = vmatpush1.bf16.msra.mxu1 %v8291_v52  ;;  %v4464_v16 = vmax.f32 %v4463_v23, %v2045_v35  ;;  %v4482_v61 = vmax.f32 %v4481_v62, %v2047_v19  ;;  %v2049_v11 = vmax.f32 %v1941_v60, 0.0  ;;  %v2051_v12 = vmax.f32 %v2014_v51, 0.0 }
 0x5fc   : > { %3737 = vmatprep.subr.bf16.mxu0 %v8292_v33  ;;  %3883 = vmatprep.subr.bf16.mxu1 %v8293_v6  ;;  %v7599_v58 = vpack.c.bf16 %v2048_v5, %v2044_v10  ;;  %v4456_v13 = vmax.f32 %v4455_v4, %v2048_v5  ;;  %v7601_v15 = vpack.c.bf16 %v2050_v21, %v2046_v14  ;;  %v1944_v23 = vpop.f32.mrb[32].mxu0  ;;  %v2017_v62 = vpop.f32.mrb[24].mxu1 }
 0x5fd   : > { %v4474_v47 = vmax.f32 %v4473_v53, %v2050_v21  ;;  %v7603_v59 = vpack.c.bf16 %v2049_v11, %v2045_v35  ;;  %v4465_v17 = vmax.f32 %v4464_v16, %v2049_v11  ;;  %v7605_v55 = vpack.c.bf16 %v2051_v12, %v2047_v19  ;;  %v1946_v10 = vpop.f32.mrb[33].mxu0 }
 0x5fe   : > { %v4483_v52 = vmax.f32 %v4482_v61, %v2051_v12  ;;  %v8294_v33 = vcombine.low %v7430_v25, %v7433_v26  ;;  %v4457_v60 = vrot.slane %v4456_v13, 4  ;;  %v8295_v5 = vcombine.low %v7436_v30, %v7439_v34  ;;  %v2019_v25 = vpop.f32.mrb[25].mxu1  ;;  %v1948_v53 = vpop.f32.mrb[34].mxu0 }
 0x5ff   : > { %v4475_v51 = vrot.slane %v4474_v47, 4  ;;  %v1945_v21 = vadd.f32 %v1944_v23, %v7457_v40  ;;  %v8296_v14 = vcombine.high %v7442_v36, %v7445_v37  ;;  %v7618_v35 = vadd.f32 %v2017_v62, %v7461_v41  ;;  %3704 = vmatprep.mubr.bf16.mxu0 %v7603_v59  ;;  %3850 = vmatprep.mubr.bf16.mxu1 %v7603_v59  ;;  %v2021_v34 = vpop.f32.mrb[26].mxu1 }
 0x600   : > { %3738 = vmatpush1.bf16.msra.mxu0 %v8294_v33  ;;  %3884 = vmatpush1.bf16.msra.mxu1 %v8295_v5  ;;  %v4466_v26 = vrot.slane %v4465_v17, 4  ;;  %v4484_v19 = vrot.slane %v4483_v52, 4  ;;  %v1947_v4 = vadd.f32 %v1946_v10, %v7464_v42  ;;  %v7624_v30 = vadd.f32 %v2019_v25, %v7477_v46  ;;  %v1950_v33 = vpop.f32.mrb[35].mxu0  ;;  %v2023_v23 = vpop.f32.mrb[27].mxu1 }
 0x601   : > { %3739 = vmatprep.subr.bf16.mxu0 %v8296_v14  ;;  %v4458_v6 = vmax.f32 %v4456_v13, %v4457_v60  ;;  %v4476_v16 = vmax.f32 %v4474_v47, %v4475_v51  ;;  %v2052_v61 = vmax.f32 %v1945_v21, 0.0  ;;  %v1949_v11 = vadd.f32 %v1948_v53, %v7457_v40  ;;  %3705 = vmatmul.mubr.bf16.gmra.mrb[44].mxu0 %v7599_v58 }
 0x602   : > { %v8297_v12 = vcombine.high %v7448_v38, %v7451_v32  ;;  %v4467_v62 = vmax.f32 %v4465_v17, %v4466_v26  ;;  %v4485_v5 = vmax.f32 %v4483_v52, %v4484_v19  ;;  %v2053_v10 = vmax.f32 %v1947_v4, 0.0  ;;  %3851 = vmatmul.mubr.bf16.gmra.mrb[36].mxu1 %v7599_v58 }
 0x603   : > { %v1951_v14 = vadd.f32 %v1950_v33, %v7464_v42  ;;  %v8298_v13 = vcombine.low %v7442_v36, %v7445_v37  ;;  %v4459_v47 = vrot.slane %v4458_v6, 2  ;;  %v4477_v60 = vrot.slane %v4476_v16, 2 }
 0x604   : > { %3885 = vmatprep.subr.bf16.mxu1 %v8297_v12  ;;  %v2056_v51 = vmax.f32 %v1949_v11, 0.0  ;;  %v8299_v21 = vcombine.low %v7448_v38, %v7451_v32  ;;  %v2054_v25 = vmax.f32 %v7618_v35, 0.0  ;;  %v8300_v17 = vcombine.high %v7454_v39, %v7467_v43 }
 0x605   : > { %3740 = vmatpush1.bf16.msra.mxu0 %v8298_v13  ;;  %v4468_v52 = vrot.slane %v4467_v62, 2  ;;  %v4486_v26 = vrot.slane %v4485_v5, 2  ;;  %v2057_v19 = vmax.f32 %v1951_v14, 0.0  ;;  %v2055_v36 = vmax.f32 %v7624_v30, 0.0  ;;  %v1954_v14 = vpop.f32.mrb[36].mxu0  ;;  %v2027_v30 = vpop.f32.mrb[28].mxu1 }
 0x606   : > { %3886 = vmatpush1.bf16.msra.mxu1 %v8299_v21  ;;  %3741 = vmatprep.subr.bf16.mxu0 %v8300_v17  ;;  %v8301_v37 = vcombine.high %v7470_v44, %v7473_v45  ;;  %v4460_v4 = vmax.f32 %v4458_v6, %v4459_v47  ;;  %v4478_v53 = vmax.f32 %v4476_v16, %v4477_v60 }
 0x607   : > { %v7647_v11 = vpack.c.bf16 %v2056_v51, %v2052_v61  ;;  %v4490_v38 = vmax.f32 %v2052_v61, %v2056_v51  ;;  %v4469_v32 = vmax.f32 %v4467_v62, %v4468_v52  ;;  %v4487_v35 = vmax.f32 %v4485_v5, %v4486_v26  ;;  %v1956_v61 = vpop.f32.mrb[37].mxu0  ;;  %v2029_v62 = vpop.f32.mrb[29].mxu1 }
 0x608   : > { %3887 = vmatprep.subr.bf16.mxu1 %v8301_v37  ;;  %v7649_v12 = vpack.c.bf16 %v2057_v19, %v2053_v10  ;;  %v4499_v33 = vmax.f32 %v2053_v10, %v2057_v19  ;;  %v8302_v13 = vcombine.low %v7454_v39, %v7467_v43  ;;  %v4461_v21 = vrot.slane %v4460_v4, 1  ;;  %v1958_v60 = vpop.f32.mrb[38].mxu0 }
 0x609   : > { %v4479_v17 = vrot.slane %v4478_v53, 1  ;;  %v2022_v37 = vadd.f32 %v2021_v34, %v7461_v41  ;;  %v2024_v6 = vadd.f32 %v2023_v23, %v7477_v46  ;;  %v8303_v16 = vcombine.low %v7470_v44, %v7473_v45  ;;  %v2031_v34 = vpop.f32.mrb[30].mxu1  ;;  %v1960_v26 = vpop.f32.mrb[39].mxu0 }
 0x60a   : > { %3742 = vmatpush1.bf16.msra.mxu0 %v8302_v13  ;;  %v8304_v5 = vcombine.high %v7486_v49, %v7489_v50  ;;  %v4470_v39 = vrot.slane %v4469_v32, 1  ;;  %v4488_v43 = vrot.slane %v4487_v35, 1  ;;  %v1955_v10 = vadd.f32 %v1954_v14, %v7457_v40  ;;  %3714 = vmatprep.mubr.bf16.mxu0 %v7649_v12  ;;  %v2033_v19 = vpop.f32.mrb[31].mxu1 }
 0x60b   : > { %3888 = vmatpush1.bf16.msra.mxu1 %v8303_v16  ;;  %v2028_v47 = vadd.f32 %v2027_v30, %v7461_v41  ;;  %3860 = vmatprep.mubr.bf16.mxu1 %v7649_v12  ;;  %v7666_v44 = vmax.f32 %v4460_v4, %v4461_v21  ;;  %v7668_v45 = vmax.f32 %v4478_v53, %v4479_v17  ;;  %v2058_v23 = vmax.f32 %v2022_v37, 0.0 }
 0x60c   : > { %3743 = vmatprep.subr.bf16.mxu0 %v8304_v5  ;;  %v2059_v51 = vmax.f32 %v2024_v6, 0.0  ;;  %v8305_v52 = vcombine.high %v7500_v56, %v7503_v57  ;;  %3715 = vmatmul.mubr.bf16.gmra.mrb[48].mxu0 %v7647_v11  ;;  %v7674_v13 = vmax.f32 %v4469_v32, %v4470_v39  ;;  %v7676_v14 = vmax.f32 %v4487_v35, %v4488_v43 }
 0x60d   : > { %v2060_v30 = vmax.f32 %v1955_v10, 0.0  ;;  %v2062_v16 = vmax.f32 %v2028_v47, 0.0  ;;  %v8306_v4 = vcombine.low %v7486_v49, %v7489_v50  ;;  %3861 = vmatmul.mubr.bf16.gmra.mrb[40].mxu1 %v7647_v11  ;;  %v7682_v53 = vpack.c.bf16 %v2058_v23, %v2054_v25 }
 0x60e   : > { %3889 = vmatprep.subr.bf16.mxu1 %v8305_v52  ;;  %v4508_v21 = vmax.f32 %v2054_v25, %v2058_v23  ;;  %v7684_v17 = vpack.c.bf16 %v2059_v51, %v2055_v36  ;;  %v4517_v37 = vmax.f32 %v2055_v36, %v2059_v51  ;;  %v8307_v32 = vcombine.low %v7500_v56, %v7503_v57 }
 0x60f   : > { %3744 = vmatpush1.bf16.msra.mxu0 %v8306_v4  ;;  %v4491_v35 = vmax.f32 %v4490_v38, %v2060_v30  ;;  %v1957_v6 = vadd.f32 %v1956_v61, %v7464_v42  ;;  %v2030_v5 = vadd.f32 %v2029_v62, %v7477_v46  ;;  %v1959_v49 = vadd.f32 %v1958_v60, %v7457_v40  ;;  %v2272_v60 = vld [vmem:[%s7142_s16 + $0x5e0] sm:$0xff] }
 0x610   : > { %3890 = vmatpush1.bf16.msra.mxu1 %v8307_v32  ;;  %v8308_v50 = vcombine.high %v7514_v0, %v7517_v1  ;;  %v4509_v39 = vmax.f32 %v4508_v21, %v2062_v16  ;;  %v2032_v25 = vadd.f32 %v2031_v34, %v7461_v41  ;;  %v1961_v36 = vadd.f32 %v1960_v26, %v7464_v42  ;;  %v2273_v26 = vld [vmem:[%s7142_s16 + $0x5e8] sm:$0xff]  ;;  %v2280_v21 = vld [vmem:[%s7142_s16 + $0x620] sm:$0xff] }
 0x611   : > { %v2034_v56 = vadd.f32 %v2033_v19, %v7477_v46  ;;  %v8309_v57 = vcombine.high %v7526_v8, %v7529_v9  ;;  %v2061_v38 = vmax.f32 %v1957_v6, 0.0  ;;  %v2063_v61 = vmax.f32 %v2030_v5, 0.0  ;;  %v2277_v6 = vld [vmem:[%s7142_s16 + $0x608] sm:$0xff] }
 0x612   : > { %3745 = vmatprep.subr.bf16.mxu0 %v8308_v50  ;;  %v2064_v40 = vmax.f32 %v1959_v49, 0.0  ;;  %v8310_v62 = vcombine.low %v7514_v0, %v7517_v1  ;;  %v5500_v41 = vcombine.low %v7550_v54, %v7553_v7  ;;  %v2066_v43 = vmax.f32 %v2032_v25, 0.0  ;;  %v2268_v1 = vld [vmem:[%s7142_s16 + $0x5c0] sm:$0xff]  ;;  %v2281_v5 = vld [vmem:[%s7142_s16 + $0x628] sm:$0xff] }
 0x613   : > { %3891 = vmatprep.subr.bf16.mxu1 %v8309_v57  ;;  %v2065_v42 = vmax.f32 %v1961_v36, 0.0  ;;  %v2067_v10 = vmax.f32 %v2034_v56, 0.0  ;;  %v8311_v46 = vcombine.low %v7526_v8, %v7529_v9  ;;  %v8312_v47 = vcombine.high %v7550_v54, %v7553_v7  ;;  %v2269_v9 = vld [vmem:[%s7142_s16 + $0x5c8] sm:$0xff]  ;;  %v2284_v57 = vld [vmem:[%s7142_s16 + $0x640] sm:$0xff] }
 0x614   : > { %3746 = vmatpush1.bf16.msra.mxu0 %v8310_v62  ;;  %v5502_v0 = vcombine.low %v7560_v18, %v7563_v2  ;;  %v4500_v34 = vmax.f32 %v4499_v33, %v2061_v38  ;;  %v4518_v23 = vmax.f32 %v4517_v37, %v2063_v61  ;;  %v7716_v51 = vpack.c.bf16 %v2064_v40, %v2060_v30  ;;  %v2276_v33 = vld [vmem:[%s7142_s16 + $0x600] sm:$0xff] }
 0x615   : > { %3892 = vmatpush1.bf16.msra.mxu1 %v8311_v46  ;;  %3747 = vmatprep.subr.bf16.mxu0 %v8312_v47  ;;  %v4492_v52 = vmax.f32 %v4491_v35, %v2064_v40  ;;  %v8313_v8 = vcombine.high %v7560_v18, %v7563_v2  ;;  %v7723_v54 = vpack.c.bf16 %v2066_v43, %v2062_v16  ;;  %v2289_v46 = vld [vmem:[%s7142_s16 + $0x668] sm:$0xff] }
 0x616   : > { %v4510_v7 = vmax.f32 %v4509_v39, %v2066_v43  ;;  %v7725_v19 = vpack.c.bf16 %v2065_v42, %v2061_v38  ;;  %v7727_v4 = vpack.c.bf16 %v2067_v10, %v2063_v61  ;;  %v4501_v37 = vmax.f32 %v4500_v34, %v2065_v42  ;;  %v2288_v38 = vld [vmem:[%s7142_s16 + $0x660] sm:$0xff] }
 0x617   : > { %3893 = vmatprep.subr.bf16.mxu1 %v8313_v8  ;;  %v4493_v30 = vrot.slane %v4492_v52, 4  ;;  %v4519_v32 = vmax.f32 %v4518_v23, %v2067_v10  ;;  %v5509_v35 = vcombine.high %v2268_v1, %v2272_v60  ;;  %v5508_v2 = vcombine.low %v2268_v1, %v2272_v60  ;;  %v2285_v10 = vld [vmem:[%s7142_s16 + $0x648] sm:$0xff]  ;;  %v2296_v8 = vld [vmem:[%s7142_s16 + $0x6a0] sm:$0xff] }
 0x618   : > { %3748 = vmatpush1.bf16.msra.mxu0 %v5500_v41  ;;  %v4511_v18 = vrot.slane %v4510_v7, 4  ;;  %3724 = vmatprep.mubr.bf16.mxu0 %v7725_v19  ;;  %v5511_v16 = vcombine.high %v2269_v9, %v2273_v26  ;;  %v4502_v50 = vrot.slane %v4501_v37, 4  ;;  %v5517_v25 = vcombine.high %v2276_v33, %v2280_v21 }
 0x619   : > { %3870 = vmatprep.mubr.bf16.mxu1 %v7725_v19  ;;  %v4494_v49 = vmax.f32 %v4492_v52, %v4493_v30  ;;  %v4520_v39 = vrot.slane %v4519_v32, 4  ;;  %3725 = vmatmul.mubr.bf16.gmra.mrb[52].mxu0 %v7716_v51  ;;  %v5510_v56 = vcombine.low %v2269_v9, %v2273_v26  ;;  %v5519_v41 = vcombine.high %v2277_v6, %v2281_v5  ;;  %v2292_v52 = vld [vmem:[%s7142_s16 + $0x680] sm:$0xff] }
 0x61a   : > { %3871 = vmatmul.mubr.bf16.gmra.mrb[44].mxu1 %v7716_v51  ;;  %v4512_v36 = vmax.f32 %v4510_v7, %v4511_v18  ;;  %3767 = vmatprep.mubr.bf16.mxu0 %v7567_v3  ;;  %v4503_v40 = vmax.f32 %v4501_v37, %v4502_v50  ;;  %v5516_v42 = vcombine.low %v2276_v33, %v2280_v21  ;;  %v2293_v37 = vld [vmem:[%s7142_s16 + $0x688] sm:$0xff]  ;;  %v2304_v50 = vld [vmem:[%s7142_s16 + $0x6e0] sm:$0xff] }
 0x61b   : > { %3894 = vmatpush1.bf16.msra.mxu1 %v5502_v0  ;;  %v4495_v61 = vrot.slane %v4494_v49, 2  ;;  %v4521_v62 = vmax.f32 %v4519_v32, %v4520_v39  ;;  %3913 = vmatprep.mubr.bf16.mxu1 %v7567_v3  ;;  %v5525_v60 = vcombine.high %v2284_v57, %v2288_v38  ;;  %v5518_v23 = vcombine.low %v2277_v6, %v2281_v5  ;;  %v2297_v32 = vld [vmem:[%s7142_s16 + $0x6a8] sm:$0xff] }
 0x61c   : > { %3749 = vmatprep.subr.bf16.mxu0 %v5509_v35  ;;  %v4513_v43 = vrot.slane %v4512_v36, 2  ;;  %3895 = vmatprep.subr.bf16.mxu1 %v5511_v16  ;;  %v4504_v0 = vrot.slane %v4503_v40, 2  ;;  %v5527_v33 = vcombine.high %v2285_v10, %v2289_v46  ;;  %v5524_v30 = vcombine.low %v2284_v57, %v2288_v38  ;;  %v2301_v57 = vld [vmem:[%s7142_s16 + $0x6c8] sm:$0xff] }
 0x61d   : > { %3750 = vmatpush1.bf16.msra.mxu0 %v5508_v2  ;;  %v4496_v47 = vmax.f32 %v4494_v49, %v4495_v61  ;;  %v4522_v1 = vrot.slane %v4521_v62, 2  ;;  %v5533_v16 = vcombine.high %v2292_v52, %v2296_v8  ;;  %v5526_v5 = vcombine.low %v2285_v10, %v2289_v46  ;;  %v2300_v49 = vld [vmem:[%s7142_s16 + $0x6c0] sm:$0xff]  ;;  %v2305_v38 = vld [vmem:[%s7142_s16 + $0x6e8] sm:$0xff] }
 0x61e   : > { %3751 = vmatprep.subr.bf16.mxu0 %v5517_v25  ;;  %v4514_v34 = vmax.f32 %v4512_v36, %v4513_v43  ;;  %v4505_v26 = vmax.f32 %v4503_v40, %v4504_v0  ;;  %v5535_v36 = vcombine.high %v2293_v37, %v2297_v32  ;;  %v5541_v61 = vcombine.high %v2300_v49, %v2304_v50  ;;  %v2309_v10 = vld [vmem:[%s7142_s16 + $0x708] sm:$0xff] }
 0x61f   : > { %3896 = vmatpush1.bf16.msra.mxu1 %v5510_v56  ;;  %v4497_v9 = vrot.slane %v4496_v47, 1  ;;  %v4523_v7 = vmax.f32 %v4521_v62, %v4522_v1  ;;  %v5532_v56 = vcombine.low %v2292_v52, %v2296_v8  ;;  %v5534_v40 = vcombine.low %v2293_v37, %v2297_v32  ;;  %v2308_v62 = vld [vmem:[%s7142_s16 + $0x700] sm:$0xff]  ;;  %v2313_v46 = vld [vmem:[%s7142_s16 + $0x728] sm:$0xff] }
 0x620   : > { %3897 = vmatprep.subr.bf16.mxu1 %v5519_v41  ;;  %v4515_v21 = vrot.slane %v4514_v34, 1  ;;  %v4506_v18 = vrot.slane %v4505_v26, 1  ;;  %v2312_v41 = vld [vmem:[%s7142_s16 + $0x720] sm:$0xff]  ;;  %v5543_v43 = vcombine.high %v2301_v57, %v2305_v38  ;;  %v5542_v0 = vcombine.low %v2301_v57, %v2305_v38  ;;  %v2317_v52 = vld [vmem:[%s7142_s16 + $0x748] sm:$0xff] }
 0x621   : > { %3752 = vmatpush1.bf16.msra.mxu0 %v5516_v42  ;;  %v7747_v35 = vmax.f32 %v4496_v47, %v4497_v9  ;;  %v4524_v2 = vrot.slane %v4523_v7, 1  ;;  %v5540_v42 = vcombine.low %v2300_v49, %v2304_v50  ;;  %v5549_v47 = vcombine.high %v2308_v62, %v2312_v41  ;;  %v2316_v1 = vld [vmem:[%s7142_s16 + $0x740] sm:$0xff]  ;;  %v2321_v8 = vld [vmem:[%s7142_s16 + $0x768] sm:$0xff] }
 0x622   : > { %3753 = vmatprep.subr.bf16.mxu0 %v5525_v60  ;;  %v7749_v6 = vmax.f32 %v4514_v34, %v4515_v21  ;;  %v7753_v39 = vmax.f32 %v4505_v26, %v4506_v18  ;;  %v2320_v60 = vld [vmem:[%s7142_s16 + $0x760] sm:$0xff]  ;;  %v5551_v34 = vcombine.high %v2309_v10, %v2313_v46  ;;  %v5550_v26 = vcombine.low %v2309_v10, %v2313_v46  ;;  %v2325_v37 = vld [vmem:[%s7142_s16 + $0x788] sm:$0xff] }
 0x623   : > { %3898 = vmatpush1.bf16.msra.mxu1 %v5518_v23  ;;  %v7755_v25 = vmax.f32 %v4523_v7, %v4524_v2  ;;  %v5548_v23 = vcombine.low %v2308_v62, %v2312_v41  ;;  %v5557_v9 = vcombine.high %v2316_v1, %v2320_v60  ;;  %v2324_v7 = vld [vmem:[%s7142_s16 + $0x780] sm:$0xff]  ;;  %v5559_v21 = vcombine.high %v2317_v52, %v2321_v8  ;;  %v2329_v32 = vld [vmem:[%s7142_s16 + $0x7a8] sm:$0xff] }
 0x624   : > { %3899 = vmatprep.subr.bf16.mxu1 %v5527_v33  ;;  %v2328_v33 = vld [vmem:[%s7142_s16 + $0x7a0] sm:$0xff]  ;;  %v5558_v2 = vcombine.low %v2317_v52, %v2321_v8  ;;  %v5567_v49 = vcombine.high %v2325_v37, %v2329_v32  ;;  %v5566_v38 = vcombine.low %v2325_v37, %v2329_v32 }
 0x625   : > { %3754 = vmatpush1.bf16.msra.mxu0 %v5524_v30  ;;  %v5556_v30 = vcombine.low %v2316_v1, %v2320_v60  ;;  %v5565_v18 = vcombine.high %v2324_v7, %v2328_v33  ;;  %v5564_v50 = vcombine.low %v2324_v7, %v2328_v33 }
 0x626   : > { %3755 = vmatprep.subr.bf16.mxu0 %v5533_v16  ;;  %v2332_v16 = vld [vmem:[%s7142_s16 + $0x7c0] sm:$0xff] }
 0x627   : > { %3900 = vmatpush1.bf16.msra.mxu1 %v5526_v5  ;;  %v2336_v5 = vld [vmem:[%s7142_s16 + $0x7e0] sm:$0xff] }
 0x628   : > { %3901 = vmatprep.subr.bf16.mxu1 %v5535_v36  ;;  %v2333_v36 = vld [vmem:[%s7142_s16 + $0x7c8] sm:$0xff]  ;;  %v5573_v57 = vcombine.high %v2332_v16, %v2336_v5  ;;  %v5572_v41 = vcombine.low %v2332_v16, %v2336_v5 }
 0x629   : > { %3756 = vmatpush1.bf16.msra.mxu0 %v5532_v56  ;;  %v2337_v56 = vld [vmem:[%s7142_s16 + $0x7e8] sm:$0xff] }
 0x62a   : > { %3757 = vmatprep.subr.bf16.mxu0 %v5541_v61  ;;  %v2086_v61 = vld [vmem:[%s7142_s16 + $0x10] sm:$0xff]  ;;  %v5575_v62 = vcombine.high %v2333_v36, %v2337_v56  ;;  %v5574_v46 = vcombine.low %v2333_v36, %v2337_v56 }
 0x62b   : > { %3902 = vmatpush1.bf16.msra.mxu1 %v5534_v40  ;;  %v2090_v40 = vld [vmem:[%s7142_s16 + $0x30] sm:$0xff] }
 0x62c   : > { %3903 = vmatprep.subr.bf16.mxu1 %v5543_v43  ;;  %v2087_v43 = vld [vmem:[%s7142_s16 + $0x18] sm:$0xff]  ;;  %v5329_v10 = vcombine.high %v2086_v61, %v2090_v40  ;;  %v5328_v60 = vcombine.low %v2086_v61, %v2090_v40 }
 0x62d   : > { %3758 = vmatpush1.bf16.msra.mxu0 %v5540_v42  ;;  %v2091_v42 = vld [vmem:[%s7142_s16 + $0x38] sm:$0xff] }
 0x62e   : > { %3759 = vmatprep.subr.bf16.mxu0 %v5549_v47  ;;  %v2094_v47 = vld [vmem:[%s7142_s16 + $0x50] sm:$0xff]  ;;  %v5331_v1 = vcombine.high %v2087_v43, %v2091_v42  ;;  %v5330_v8 = vcombine.low %v2087_v43, %v2091_v42 }
 0x62f   : > { %3904 = vmatpush1.bf16.msra.mxu1 %v5542_v0  ;;  %v2098_v0 = vld [vmem:[%s7142_s16 + $0x70] sm:$0xff] }
 0x630   : > { %3905 = vmatprep.subr.bf16.mxu1 %v5551_v34  ;;  %v2095_v34 = vld [vmem:[%s7142_s16 + $0x58] sm:$0xff]  ;;  %v5337_v52 = vcombine.high %v2094_v47, %v2098_v0  ;;  %v5336_v33 = vcombine.low %v2094_v47, %v2098_v0 }
 0x631   : > { %3760 = vmatpush1.bf16.msra.mxu0 %v5548_v23  ;;  %v2099_v23 = vld [vmem:[%s7142_s16 + $0x78] sm:$0xff] }
 0x632   : > { %3761 = vmatprep.subr.bf16.mxu0 %v5557_v9  ;;  %v2102_v9 = vld [vmem:[%s7142_s16 + $0x90] sm:$0xff]  ;;  %v5339_v7 = vcombine.high %v2095_v34, %v2099_v23  ;;  %v5338_v32 = vcombine.low %v2095_v34, %v2099_v23 }
 0x633   : > { %3906 = vmatpush1.bf16.msra.mxu1 %v5550_v26  ;;  %v2106_v26 = vld [vmem:[%s7142_s16 + $0xb0] sm:$0xff] }
 0x634   : > { %3907 = vmatprep.subr.bf16.mxu1 %v5559_v21  ;;  %v2103_v21 = vld [vmem:[%s7142_s16 + $0x98] sm:$0xff]  ;;  %v5345_v37 = vcombine.high %v2102_v9, %v2106_v26  ;;  %v5344_v5 = vcombine.low %v2102_v9, %v2106_v26 }
 0x635   : > { %3762 = vmatpush1.bf16.msra.mxu0 %v5556_v30  ;;  %v2107_v30 = vld [vmem:[%s7142_s16 + $0xb8] sm:$0xff] }
 0x636   : > { %3763 = vmatprep.subr.bf16.mxu0 %v5565_v18  ;;  %v2110_v18 = vld [vmem:[%s7142_s16 + $0xd0] sm:$0xff]  ;;  %v5347_v16 = vcombine.high %v2103_v21, %v2107_v30  ;;  %v5346_v56 = vcombine.low %v2103_v21, %v2107_v30 }
 0x637   : > { %3908 = vmatpush1.bf16.msra.mxu1 %v5558_v2  ;;  %v2114_v2 = vld [vmem:[%s7142_s16 + $0xf0] sm:$0xff] }
 0x638   : > { %3909 = vmatprep.subr.bf16.mxu1 %v5567_v49  ;;  %v2111_v49 = vld [vmem:[%s7142_s16 + $0xd8] sm:$0xff]  ;;  %v5353_v36 = vcombine.high %v2110_v18, %v2114_v2  ;;  %v5352_v40 = vcombine.low %v2110_v18, %v2114_v2 }
 0x639   : > { %3764 = vmatpush1.bf16.msra.mxu0 %v5564_v50  ;;  %v2115_v50 = vld [vmem:[%s7142_s16 + $0xf8] sm:$0xff] }
 0x63a   : > { %3765 = vmatprep.subr.bf16.mxu0 %v5573_v57  ;;  %v2118_v57 = vld [vmem:[%s7142_s16 + $0x110] sm:$0xff]  ;;  %v5355_v61 = vcombine.high %v2111_v49, %v2115_v50  ;;  %v5354_v42 = vcombine.low %v2111_v49, %v2115_v50 }
 0x63b   : > { %3910 = vmatpush1.bf16.msra.mxu1 %v5566_v38  ;;  %v2122_v38 = vld [vmem:[%s7142_s16 + $0x130] sm:$0xff] }
 0x63c   : > { %3911 = vmatprep.subr.bf16.mxu1 %v5575_v62  ;;  %v2119_v62 = vld [vmem:[%s7142_s16 + $0x118] sm:$0xff]  ;;  %v5361_v43 = vcombine.high %v2118_v57, %v2122_v38  ;;  %v5360_v0 = vcombine.low %v2118_v57, %v2122_v38 }
 0x63d   : > { %3766 = vmatpush1.bf16.msra.mxu0 %v5572_v41  ;;  %v2123_v41 = vld [vmem:[%s7142_s16 + $0x138] sm:$0xff] }
 0x63e   : > { %3954 = vmatprep.subr.bf16.mxu0 %v5329_v10  ;;  %v2126_v10 = vld [vmem:[%s7142_s16 + $0x150] sm:$0xff]  ;;  %v5363_v47 = vcombine.high %v2119_v62, %v2123_v41  ;;  %v5362_v23 = vcombine.low %v2119_v62, %v2123_v41 }
 0x63f   : > { %3912 = vmatpush1.bf16.msra.mxu1 %v5574_v46  ;;  %v2130_v46 = vld [vmem:[%s7142_s16 + $0x170] sm:$0xff] }
 0x640   : > { %3768 = vmatmul.mubr.bf16.vlgmr.msra.gmra.mrb[40].mxu0 %v7557_v48  ;;  %4100 = vmatprep.subr.bf16.mxu1 %v5331_v1  ;;  %v2127_v1 = vld [vmem:[%s7142_s16 + $0x158] sm:$0xff]  ;;  %v5369_v34 = vcombine.high %v2126_v10, %v2130_v46  ;;  %v5368_v26 = vcombine.low %v2126_v10, %v2130_v46 }
 0x641   : > { %3777 = vmatprep.mubr.bf16.mxu0 %v7605_v55  ;;  %3955 = vmatpush1.bf16.msra.mxu0 %v5328_v60  ;;  %v2131_v60 = vld [vmem:[%s7142_s16 + $0x178] sm:$0xff] }
 0x642   : > { %3914 = vmatmul.mubr.bf16.vlgmr.msra.gmra.mrb[32].mxu1 %v7557_v48  ;;  %3956 = vmatprep.subr.bf16.mxu0 %v5337_v52  ;;  %v2134_v52 = vld [vmem:[%s7142_s16 + $0x190] sm:$0xff]  ;;  %v5371_v9 = vcombine.high %v2127_v1, %v2131_v60  ;;  %v5370_v30 = vcombine.low %v2127_v1, %v2131_v60 }
 0x643   : > { %3923 = vmatprep.mubr.bf16.mxu1 %v7605_v55  ;;  %4101 = vmatpush1.bf16.msra.mxu1 %v5330_v8  ;;  %v2138_v8 = vld [vmem:[%s7142_s16 + $0x1b0] sm:$0xff] }
 0x644   : > { %4102 = vmatprep.subr.bf16.mxu1 %v5339_v7  ;;  %v2135_v7 = vld [vmem:[%s7142_s16 + $0x198] sm:$0xff]  ;;  %v5377_v21 = vcombine.high %v2134_v52, %v2138_v8  ;;  %v5376_v2 = vcombine.low %v2134_v52, %v2138_v8 }
 0x645   : > { %3957 = vmatpush1.bf16.msra.mxu0 %v5336_v33  ;;  %v2139_v33 = vld [vmem:[%s7142_s16 + $0x1b8] sm:$0xff] }
 0x646   : > { %3958 = vmatprep.subr.bf16.mxu0 %v5345_v37  ;;  %v2142_v37 = vld [vmem:[%s7142_s16 + $0x1d0] sm:$0xff]  ;;  %v5379_v18 = vcombine.high %v2135_v7, %v2139_v33  ;;  %v5378_v50 = vcombine.low %v2135_v7, %v2139_v33  ;;  %v2167_v8 = vld [vmem:[%s7142_s16 + $0x298] sm:$0xff] }
 0x647   : > { %4103 = vmatpush1.bf16.msra.mxu1 %v5338_v32  ;;  %v2146_v32 = vld [vmem:[%s7142_s16 + $0x1f0] sm:$0xff] }
 0x648   : > { %3778 = vmatmul.mubr.bf16.gmra.mrb[44].mxu0 %v7601_v15  ;;  %4104 = vmatprep.subr.bf16.mxu1 %v5347_v16  ;;  %v2143_v16 = vld [vmem:[%s7142_s16 + $0x1d8] sm:$0xff]  ;;  %v5385_v49 = vcombine.high %v2142_v37, %v2146_v32  ;;  %v5384_v38 = vcombine.low %v2142_v37, %v2146_v32  ;;  %v2174_v33 = vld [vmem:[%s7142_s16 + $0x2d0] sm:$0xff] }
 0x649   : > { %3787 = vmatprep.mubr.bf16.mxu0 %v7684_v17  ;;  %3959 = vmatpush1.bf16.msra.mxu0 %v5344_v5  ;;  %v2147_v5 = vld [vmem:[%s7142_s16 + $0x1f8] sm:$0xff] }
 0x64a   : > { %3924 = vmatmul.mubr.bf16.gmra.mrb[36].mxu1 %v7601_v15  ;;  %3960 = vmatprep.subr.bf16.mxu0 %v5353_v36  ;;  %v2150_v36 = vld [vmem:[%s7142_s16 + $0x210] sm:$0xff]  ;;  %v5387_v57 = vcombine.high %v2143_v16, %v2147_v5  ;;  %v5386_v41 = vcombine.low %v2143_v16, %v2147_v5  ;;  %v2175_v32 = vld [vmem:[%s7142_s16 + $0x2d8] sm:$0xff] }
 0x64b   : > { %3933 = vmatprep.mubr.bf16.mxu1 %v7684_v17  ;;  %4105 = vmatpush1.bf16.msra.mxu1 %v5346_v56  ;;  %v2154_v56 = vld [vmem:[%s7142_s16 + $0x230] sm:$0xff] }
 0x64c   : > { %4106 = vmatprep.subr.bf16.mxu1 %v5355_v61  ;;  %v2151_v61 = vld [vmem:[%s7142_s16 + $0x218] sm:$0xff]  ;;  %v5393_v62 = vcombine.high %v2150_v36, %v2154_v56  ;;  %v5392_v46 = vcombine.low %v2150_v36, %v2154_v56  ;;  %v2182_v5 = vld [vmem:[%s7142_s16 + $0x310] sm:$0xff] }
 0x64d   : > { %3961 = vmatpush1.bf16.msra.mxu0 %v5352_v40  ;;  %v2155_v40 = vld [vmem:[%s7142_s16 + $0x238] sm:$0xff] }
 0x64e   : > { %3962 = vmatprep.subr.bf16.mxu0 %v5361_v43  ;;  %v2158_v43 = vld [vmem:[%s7142_s16 + $0x250] sm:$0xff]  ;;  %v5395_v10 = vcombine.high %v2151_v61, %v2155_v40  ;;  %v5394_v60 = vcombine.low %v2151_v61, %v2155_v40  ;;  %v2183_v56 = vld [vmem:[%s7142_s16 + $0x318] sm:$0xff] }
 0x64f   : > { %4107 = vmatpush1.bf16.msra.mxu1 %v5354_v42  ;;  %v2162_v42 = vld [vmem:[%s7142_s16 + $0x270] sm:$0xff] }
 0x650   : > { %3788 = vmatmul.mubr.bf16.gmra.mrb[48].mxu0 %v7682_v53  ;;  %4108 = vmatprep.subr.bf16.mxu1 %v5363_v47  ;;  %v2159_v47 = vld [vmem:[%s7142_s16 + $0x258] sm:$0xff]  ;;  %v5401_v1 = vcombine.high %v2158_v43, %v2162_v42  ;;  %v5400_v52 = vcombine.low %v2158_v43, %v2162_v42  ;;  %v2190_v40 = vld [vmem:[%s7142_s16 + $0x350] sm:$0xff] }
 0x651   : > { %3797 = vmatprep.mubr.bf16.mxu0 %v7727_v4  ;;  %3963 = vmatpush1.bf16.msra.mxu0 %v5360_v0  ;;  %v2163_v0 = vld [vmem:[%s7142_s16 + $0x278] sm:$0xff] }
 0x652   : > { %3934 = vmatmul.mubr.bf16.gmra.mrb[40].mxu1 %v7682_v53  ;;  %3964 = vmatprep.subr.bf16.mxu0 %v5369_v34  ;;  %v2166_v34 = vld [vmem:[%s7142_s16 + $0x290] sm:$0xff]  ;;  %v5402_v7 = vcombine.low %v2159_v47, %v2163_v0  ;;  %v2191_v42 = vld [vmem:[%s7142_s16 + $0x358] sm:$0xff] }
 0x653   : > { %3943 = vmatprep.mubr.bf16.mxu1 %v7727_v4  ;;  %4109 = vmatpush1.bf16.msra.mxu1 %v5362_v23  ;;  %v2170_v23 = vld [vmem:[%s7142_s16 + $0x2b0] sm:$0xff] }
 0x654   : > { %4110 = vmatprep.subr.bf16.mxu1 %v5371_v9  ;;  %v2171_v9 = vld [vmem:[%s7142_s16 + $0x2b8] sm:$0xff]  ;;  %v5408_v37 = vcombine.low %v2166_v34, %v2170_v23 }
 0x655   : > { %3965 = vmatpush1.bf16.msra.mxu0 %v5368_v26  ;;  %v5409_v26 = vcombine.high %v2166_v34, %v2170_v23  ;;  %v5410_v16 = vcombine.low %v2167_v8, %v2171_v9  ;;  %v2199_v23 = vld [vmem:[%s7142_s16 + $0x398] sm:$0xff] }
 0x656   : > { %3966 = vmatprep.subr.bf16.mxu0 %v5377_v21  ;;  %v2178_v21 = vld [vmem:[%s7142_s16 + $0x2f0] sm:$0xff] }
 0x657   : > { %4111 = vmatpush1.bf16.msra.mxu1 %v5370_v30  ;;  %v5411_v30 = vcombine.high %v2167_v8, %v2171_v9  ;;  %v5416_v36 = vcombine.low %v2174_v33, %v2178_v21  ;;  %v2206_v9 = vld [vmem:[%s7142_s16 + $0x3d0] sm:$0xff] }
 0x658   : > { %3798 = vmatmul.mubr.bf16.gmra.mrb[52].mxu0 %v7723_v54  ;;  %4112 = vmatprep.subr.bf16.mxu1 %v5379_v18  ;;  %v2179_v18 = vld [vmem:[%s7142_s16 + $0x2f8] sm:$0xff] }
 0x659   : > { %3967 = vmatpush1.bf16.msra.mxu0 %v5376_v2  ;;  %3986 = vmatprep.mubr.bf16.mxu0 %v7565_v24  ;;  %v5417_v2 = vcombine.high %v2174_v33, %v2178_v21  ;;  %v5418_v61 = vcombine.low %v2175_v32, %v2179_v18  ;;  %v2207_v21 = vld [vmem:[%s7142_s16 + $0x3d8] sm:$0xff] }
 0x65a   : > { %3944 = vmatmul.mubr.bf16.gmra.mrb[44].mxu1 %v7723_v54  ;;  %3968 = vmatprep.subr.bf16.mxu0 %v5385_v49  ;;  %v2186_v49 = vld [vmem:[%s7142_s16 + $0x330] sm:$0xff] }
 0x65b   : > { %4113 = vmatpush1.bf16.msra.mxu1 %v5378_v50  ;;  %4132 = vmatprep.mubr.bf16.mxu1 %v7565_v24  ;;  %v5403_v24 = vcombine.high %v2159_v47, %v2163_v0  ;;  %v5419_v50 = vcombine.high %v2175_v32, %v2179_v18  ;;  %v5424_v43 = vcombine.low %v2182_v5, %v2186_v49  ;;  %v2198_v0 = vld [vmem:[%s7142_s16 + $0x390] sm:$0xff] }
 0x65c   : > { %4114 = vmatprep.subr.bf16.mxu1 %v5387_v57  ;;  %v2187_v57 = vld [vmem:[%s7142_s16 + $0x338] sm:$0xff]  ;;  %v2214_v18 = vld [vmem:[%s7142_s16 + $0x410] sm:$0xff] }
 0x65d   : > { %3969 = vmatpush1.bf16.msra.mxu0 %v5384_v38  ;;  %v5425_v38 = vcombine.high %v2182_v5, %v2186_v49  ;;  %v5426_v47 = vcombine.low %v2183_v56, %v2187_v57  ;;  %v2215_v49 = vld [vmem:[%s7142_s16 + $0x418] sm:$0xff] }
 0x65e   : > { %3970 = vmatprep.subr.bf16.mxu0 %v5393_v62  ;;  %v2194_v62 = vld [vmem:[%s7142_s16 + $0x370] sm:$0xff] }
 0x65f   : > { %4115 = vmatpush1.bf16.msra.mxu1 %v5386_v41  ;;  %v5427_v41 = vcombine.high %v2183_v56, %v2187_v57  ;;  %v5432_v34 = vcombine.low %v2190_v40, %v2194_v62  ;;  %v2222_v57 = vld [vmem:[%s7142_s16 + $0x450] sm:$0xff] }
 0x660   : > { %4116 = vmatprep.subr.bf16.mxu1 %v5395_v10  ;;  %v2195_v10 = vld [vmem:[%s7142_s16 + $0x378] sm:$0xff] }
 0x661   : > { %3971 = vmatpush1.bf16.msra.mxu0 %v5392_v46  ;;  %v5433_v46 = vcombine.high %v2190_v40, %v2194_v62  ;;  %v5434_v8 = vcombine.low %v2191_v42, %v2195_v10  ;;  %v2223_v62 = vld [vmem:[%s7142_s16 + $0x458] sm:$0xff] }
 0x662   : > { %3972 = vmatprep.subr.bf16.mxu0 %v5401_v1  ;;  %v2202_v1 = vld [vmem:[%s7142_s16 + $0x3b0] sm:$0xff] }
 0x663   : > { %4117 = vmatpush1.bf16.msra.mxu1 %v5394_v60  ;;  %v5435_v60 = vcombine.high %v2191_v42, %v2195_v10  ;;  %v5440_v33 = vcombine.low %v2198_v0, %v2202_v1  ;;  %v2230_v10 = vld [vmem:[%s7142_s16 + $0x490] sm:$0xff] }
 0x664   : > { %4118 = vmatprep.subr.bf16.mxu1 %v5403_v24  ;;  %v2203_v24 = vld [vmem:[%s7142_s16 + $0x3b8] sm:$0xff] }
 0x665   : > { %3973 = vmatpush1.bf16.msra.mxu0 %v5400_v52  ;;  %v5441_v52 = vcombine.high %v2198_v0, %v2202_v1  ;;  %v5442_v32 = vcombine.low %v2199_v23, %v2203_v24  ;;  %v2231_v1 = vld [vmem:[%s7142_s16 + $0x498] sm:$0xff] }
 0x666   : > { %3974 = vmatprep.subr.bf16.mxu0 %v5409_v26  ;;  %v2210_v26 = vld [vmem:[%s7142_s16 + $0x3f0] sm:$0xff] }
 0x667   : > { %4119 = vmatpush1.bf16.msra.mxu1 %v5402_v7  ;;  %v5443_v7 = vcombine.high %v2199_v23, %v2203_v24  ;;  %v5448_v5 = vcombine.low %v2206_v9, %v2210_v26  ;;  %v2238_v24 = vld [vmem:[%s7142_s16 + $0x4d0] sm:$0xff] }
 0x668   : > { %4120 = vmatprep.subr.bf16.mxu1 %v5411_v30  ;;  %v2211_v30 = vld [vmem:[%s7142_s16 + $0x3f8] sm:$0xff] }
 0x669   : > { %3975 = vmatpush1.bf16.msra.mxu0 %v5408_v37  ;;  %v5449_v37 = vcombine.high %v2206_v9, %v2210_v26  ;;  %v5450_v56 = vcombine.low %v2207_v21, %v2211_v30  ;;  %v2239_v26 = vld [vmem:[%s7142_s16 + $0x4d8] sm:$0xff] }
 0x66a   : > { %3976 = vmatprep.subr.bf16.mxu0 %v5417_v2  ;;  %v2218_v2 = vld [vmem:[%s7142_s16 + $0x430] sm:$0xff] }
 0x66b   : > { %4121 = vmatpush1.bf16.msra.mxu1 %v5410_v16  ;;  %v5451_v16 = vcombine.high %v2207_v21, %v2211_v30  ;;  %v5456_v40 = vcombine.low %v2214_v18, %v2218_v2  ;;  %v2246_v21 = vld [vmem:[%s7142_s16 + $0x510] sm:$0xff] }
 0x66c   : > { %4122 = vmatprep.subr.bf16.mxu1 %v5419_v50  ;;  %v2219_v50 = vld [vmem:[%s7142_s16 + $0x438] sm:$0xff] }
 0x66d   : > { %3977 = vmatpush1.bf16.msra.mxu0 %v5416_v36  ;;  %v5457_v36 = vcombine.high %v2214_v18, %v2218_v2  ;;  %v5458_v42 = vcombine.low %v2215_v49, %v2219_v50  ;;  %v2251_v18 = vld [vmem:[%s7142_s16 + $0x538] sm:$0xff] }
 0x66e   : > { %3978 = vmatprep.subr.bf16.mxu0 %v5425_v38  ;;  %v2226_v38 = vld [vmem:[%s7142_s16 + $0x470] sm:$0xff] }
 0x66f   : > { %4123 = vmatpush1.bf16.msra.mxu1 %v5418_v61  ;;  %v5459_v61 = vcombine.high %v2215_v49, %v2219_v50  ;;  %v5464_v0 = vcombine.low %v2222_v57, %v2226_v38  ;;  %v2258_v49 = vld [vmem:[%s7142_s16 + $0x570] sm:$0xff] }
 0x670   : > { %4124 = vmatprep.subr.bf16.mxu1 %v5427_v41  ;;  %v2227_v41 = vld [vmem:[%s7142_s16 + $0x478] sm:$0xff] }
 0x671   : > { %3979 = vmatpush1.bf16.msra.mxu0 %v5424_v43  ;;  %v5465_v43 = vcombine.high %v2222_v57, %v2226_v38  ;;  %v5466_v23 = vcombine.low %v2223_v62, %v2227_v41  ;;  %v2259_v57 = vld [vmem:[%s7142_s16 + $0x578] sm:$0xff] }
 0x672   : > { %3980 = vmatprep.subr.bf16.mxu0 %v5433_v46  ;;  %v2234_v46 = vld [vmem:[%s7142_s16 + $0x4b0] sm:$0xff] }
 0x673   : > { %4125 = vmatpush1.bf16.msra.mxu1 %v5426_v47  ;;  %v5467_v47 = vcombine.high %v2223_v62, %v2227_v41  ;;  %v5472_v9 = vcombine.low %v2230_v10, %v2234_v46  ;;  %v2263_v41 = vld [vmem:[%s7142_s16 + $0x598] sm:$0xff] }
 0x674   : > { %4126 = vmatprep.subr.bf16.mxu1 %v5435_v60  ;;  %v2235_v60 = vld [vmem:[%s7142_s16 + $0x4b8] sm:$0xff] }
 0x675   : > { %3981 = vmatpush1.bf16.msra.mxu0 %v5432_v34  ;;  %v5473_v34 = vcombine.high %v2230_v10, %v2234_v46  ;;  %v2270_v46 = vld [vmem:[%s7142_s16 + $0x5d0] sm:$0xff] }
 0x676   : > { %3982 = vmatprep.subr.bf16.mxu0 %v5441_v52  ;;  %v2242_v52 = vld [vmem:[%s7142_s16 + $0x4f0] sm:$0xff] }
 0x677   : > { %4127 = vmatpush1.bf16.msra.mxu1 %v5434_v8  ;;  %v5475_v8 = vcombine.high %v2231_v1, %v2235_v60 }
 0x678   : > { %4128 = vmatprep.subr.bf16.mxu1 %v5443_v7  ;;  %v2243_v7 = vld [vmem:[%s7142_s16 + $0x4f8] sm:$0xff] }
 0x679   : > { %3983 = vmatpush1.bf16.msra.mxu0 %v5440_v33  ;;  %v5474_v33 = vcombine.low %v2231_v1, %v2235_v60  ;;  %v5483_v30 = vcombine.high %v2239_v26, %v2243_v7  ;;  %v2271_v60 = vld [vmem:[%s7142_s16 + $0x5d8] sm:$0xff] }
 0x67a   : > { %3984 = vmatprep.subr.bf16.mxu0 %v5449_v37  ;;  %v5480_v37 = vcombine.low %v2238_v24, %v2242_v52 }
 0x67b   : > { %4129 = vmatpush1.bf16.msra.mxu1 %v5442_v32  ;;  %v2247_v32 = vld [vmem:[%s7142_s16 + $0x518] sm:$0xff] }
 0x67c   : > { %4130 = vmatprep.subr.bf16.mxu1 %v5451_v16  ;;  %v5482_v16 = vcombine.low %v2239_v26, %v2243_v7  ;;  %v5491_v50 = vcombine.high %v2247_v32, %v2251_v18  ;;  %v5490_v38 = vcombine.low %v2247_v32, %v2251_v18  ;;  %v2283_v26 = vld [vmem:[%s7142_s16 + $0x638] sm:$0xff] }
 0x67d   : > { %3985 = vmatpush1.bf16.msra.mxu0 %v5448_v5  ;;  %v2254_v5 = vld [vmem:[%s7142_s16 + $0x550] sm:$0xff]  ;;  %v2291_v32 = vld [vmem:[%s7142_s16 + $0x678] sm:$0xff] }
 0x67e   : > { %4027 = vmatprep.subr.bf16.mxu0 %v5457_v36  ;;  %v5496_v62 = vcombine.low %v2254_v5, %v2258_v49 }
 0x67f   : > { %4131 = vmatpush1.bf16.msra.mxu1 %v5450_v56  ;;  %v2255_v56 = vld [vmem:[%s7142_s16 + $0x558] sm:$0xff] }
 0x680   : > { %3987 = vmatmul.mubr.bf16.vlgmr.msra.gmra.mrb[56].mxu0 %v7555_v63  ;;  %4173 = vmatprep.subr.bf16.mxu1 %v5459_v61  ;;  %v2262_v61 = vld [vmem:[%s7142_s16 + $0x590] sm:$0xff]  ;;  %v5498_v10 = vcombine.low %v2255_v56, %v2259_v57 }
 0x681   : > { %3996 = vmatprep.mubr.bf16.mxu0 %v7603_v59  ;;  %4028 = vmatpush1.bf16.msra.mxu0 %v5456_v40  ;;  %v5499_v40 = vcombine.high %v2255_v56, %v2259_v57  ;;  %v2302_v57 = vld [vmem:[%s7142_s16 + $0x6d0] sm:$0xff] }
 0x682   : > { %4133 = vmatmul.mubr.bf16.vlgmr.msra.gmra.mrb[48].mxu1 %v7555_v63  ;;  %4029 = vmatprep.subr.bf16.mxu0 %v5465_v43  ;;  %v5481_v63 = vcombine.high %v2238_v24, %v2242_v52  ;;  %v2267_v43 = vld [vmem:[%s7142_s16 + $0x5b8] sm:$0xff]  ;;  %v2278_v24 = vld [vmem:[%s7142_s16 + $0x610] sm:$0xff] }
 0x683   : > { %4142 = vmatprep.mubr.bf16.mxu1 %v7603_v59  ;;  %4174 = vmatpush1.bf16.msra.mxu1 %v5458_v42  ;;  %v2250_v59 = vld [vmem:[%s7142_s16 + $0x530] sm:$0xff] }
 0x684   : > { %4175 = vmatprep.subr.bf16.mxu1 %v5467_v47  ;;  %v5489_v2 = vcombine.high %v2246_v21, %v2250_v59  ;;  %v5488_v36 = vcombine.low %v2246_v21, %v2250_v59  ;;  %v2274_v47 = vld [vmem:[%s7142_s16 + $0x5f0] sm:$0xff] }
 0x685   : > { %4030 = vmatpush1.bf16.msra.mxu0 %v5464_v0  ;;  %v5507_v0 = vcombine.high %v2263_v41, %v2267_v43  ;;  %v2290_v21 = vld [vmem:[%s7142_s16 + $0x670] sm:$0xff] }
 0x686   : > { %4031 = vmatprep.subr.bf16.mxu0 %v5473_v34  ;;  %v2275_v34 = vld [vmem:[%s7142_s16 + $0x5f8] sm:$0xff] }
 0x687   : > { %4176 = vmatpush1.bf16.msra.mxu1 %v5466_v23  ;;  %v5506_v23 = vcombine.low %v2263_v41, %v2267_v43  ;;  %v5515_v52 = vcombine.high %v2271_v60, %v2275_v34  ;;  %v2310_v43 = vld [vmem:[%s7142_s16 + $0x710] sm:$0xff] }
 0x688   : > { %3997 = vmatmul.mubr.bf16.gmra.mrb[60].mxu0 %v7599_v58  ;;  %4177 = vmatprep.subr.bf16.mxu1 %v5475_v8  ;;  %v5512_v8 = vcombine.low %v2270_v46, %v2274_v47 }
 0x689   : > { %4006 = vmatprep.mubr.bf16.mxu0 %v7649_v12  ;;  %4032 = vmatpush1.bf16.msra.mxu0 %v5472_v9  ;;  %v2279_v9 = vld [vmem:[%s7142_s16 + $0x618] sm:$0xff] }
 0x68a   : > { %4143 = vmatmul.mubr.bf16.gmra.mrb[52].mxu1 %v7599_v58  ;;  %4033 = vmatprep.subr.bf16.mxu0 %v5481_v63  ;;  %v5497_v58 = vcombine.high %v2254_v5, %v2258_v49  ;;  %v5514_v63 = vcombine.low %v2271_v60, %v2275_v34  ;;  %v5523_v59 = vcombine.high %v2279_v9, %v2283_v26  ;;  %v2295_v49 = vld [vmem:[%s7142_s16 + $0x698] sm:$0xff]  ;;  %v2318_v34 = vld [vmem:[%s7142_s16 + $0x750] sm:$0xff] }
 0x68b   : > { %4152 = vmatprep.mubr.bf16.mxu1 %v7649_v12  ;;  %4178 = vmatpush1.bf16.msra.mxu1 %v5474_v33  ;;  %v2266_v12 = vld [vmem:[%s7142_s16 + $0x5b0] sm:$0xff]  ;;  %v5522_v18 = vcombine.low %v2279_v9, %v2283_v26 }
 0x68c   : > { %4179 = vmatprep.subr.bf16.mxu1 %v5483_v30  ;;  %v5505_v42 = vcombine.high %v2262_v61, %v2266_v12  ;;  %v5504_v1 = vcombine.low %v2262_v61, %v2266_v12  ;;  %v2286_v33 = vld [vmem:[%s7142_s16 + $0x650] sm:$0xff]  ;;  %v2303_v12 = vld [vmem:[%s7142_s16 + $0x6d8] sm:$0xff] }
 0x68d   : > { %4034 = vmatpush1.bf16.msra.mxu0 %v5480_v37  ;;  %v2287_v37 = vld [vmem:[%s7142_s16 + $0x658] sm:$0xff]  ;;  %v5528_v5 = vcombine.low %v2286_v33, %v2290_v21  ;;  %v2326_v26 = vld [vmem:[%s7142_s16 + $0x790] sm:$0xff] }
 0x68e   : > { %4035 = vmatprep.subr.bf16.mxu0 %v5489_v2  ;;  %v2294_v2 = vld [vmem:[%s7142_s16 + $0x690] sm:$0xff]  ;;  %v5530_v56 = vcombine.low %v2287_v37, %v2291_v32 }
 0x68f   : > { %4180 = vmatpush1.bf16.msra.mxu1 %v5482_v16  ;;  %v2298_v16 = vld [vmem:[%s7142_s16 + $0x6b0] sm:$0xff] }
 0x690   : > { %4007 = vmatmul.mubr.bf16.gmra.mrb[64].mxu0 %v7647_v11  ;;  %4181 = vmatprep.subr.bf16.mxu1 %v5491_v50  ;;  %v2299_v50 = vld [vmem:[%s7142_s16 + $0x6b8] sm:$0xff]  ;;  %v5536_v61 = vcombine.low %v2294_v2, %v2298_v16 }
 0x691   : > { %4016 = vmatprep.mubr.bf16.mxu0 %v7725_v19  ;;  %4036 = vmatpush1.bf16.msra.mxu0 %v5488_v36  ;;  %v5537_v36 = vcombine.high %v2294_v2, %v2298_v16  ;;  %v5538_v41 = vcombine.low %v2295_v49, %v2299_v50  ;;  %v2335_v16 = vld [vmem:[%s7142_s16 + $0x7d8] sm:$0xff] }
 0x692   : > { %4153 = vmatmul.mubr.bf16.gmra.mrb[56].mxu1 %v7647_v11  ;;  %4037 = vmatprep.subr.bf16.mxu0 %v5497_v58  ;;  %v5513_v11 = vcombine.high %v2270_v46, %v2274_v47  ;;  %v2306_v58 = vld [vmem:[%s7142_s16 + $0x6f0] sm:$0xff]  ;;  %v2311_v47 = vld [vmem:[%s7142_s16 + $0x718] sm:$0xff] }
 0x693   : > { %4162 = vmatprep.mubr.bf16.mxu1 %v7725_v19  ;;  %4182 = vmatpush1.bf16.msra.mxu1 %v5490_v38  ;;  %v2282_v19 = vld [vmem:[%s7142_s16 + $0x630] sm:$0xff]  ;;  %v5539_v38 = vcombine.high %v2295_v49, %v2299_v50  ;;  %v5544_v46 = vcombine.low %v2302_v57, %v2306_v58 }
 0x694   : > { %4183 = vmatprep.subr.bf16.mxu1 %v5499_v40  ;;  %v5521_v7 = vcombine.high %v2278_v24, %v2282_v19  ;;  %v5520_v30 = vcombine.low %v2278_v24, %v2282_v19  ;;  %v2307_v40 = vld [vmem:[%s7142_s16 + $0x6f8] sm:$0xff] }
 0x695   : > { %4038 = vmatpush1.bf16.msra.mxu0 %v5496_v62  ;;  %v5545_v62 = vcombine.high %v2302_v57, %v2306_v58  ;;  %v5546_v60 = vcombine.low %v2303_v12, %v2307_v40  ;;  %v2319_v19 = vld [vmem:[%s7142_s16 + $0x758] sm:$0xff]  ;;  %v8315_v57 = vsub.s32 3, %v7279_v28 }
 0x696   : > { %4039 = vmatprep.subr.bf16.mxu0 %v5505_v42  ;;  %v2314_v42 = vld [vmem:[%s7142_s16 + $0x730] sm:$0xff] }
 0x697   : > { %4184 = vmatpush1.bf16.msra.mxu1 %v5498_v10  ;;  %v5547_v10 = vcombine.high %v2303_v12, %v2307_v40  ;;  %v5552_v24 = vcombine.low %v2310_v43, %v2314_v42 }
 0x698   : > { %4017 = vmatmul.mubr.bf16.gmra.mrb[68].mxu0 %v7716_v51  ;;  %4185 = vmatprep.subr.bf16.mxu1 %v5507_v0  ;;  %v2315_v0 = vld [vmem:[%s7142_s16 + $0x738] sm:$0xff] }
 0x699   : > { %4040 = vmatpush1.bf16.msra.mxu0 %v5504_v1  ;;  %4059 = vmatprep.mubr.bf16.mxu0 %v7567_v3  ;;  %v5553_v1 = vcombine.high %v2310_v43, %v2314_v42  ;;  %v5554_v9 = vcombine.low %v2311_v47, %v2315_v0 }
 0x69a   : > { %4163 = vmatmul.mubr.bf16.gmra.mrb[60].mxu1 %v7716_v51  ;;  %4041 = vmatprep.subr.bf16.mxu0 %v5513_v11  ;;  %v5529_v51 = vcombine.high %v2286_v33, %v2290_v21  ;;  %v2322_v11 = vld [vmem:[%s7142_s16 + $0x770] sm:$0xff]  ;;  %v2327_v21 = vld [vmem:[%s7142_s16 + $0x798] sm:$0xff] }
 0x69b   : > { %4186 = vmatpush1.bf16.msra.mxu1 %v5506_v23  ;;  %4205 = vmatprep.mubr.bf16.mxu1 %v7567_v3  ;;  %v5531_v3 = vcombine.high %v2287_v37, %v2291_v32  ;;  %v5555_v23 = vcombine.high %v2311_v47, %v2315_v0  ;;  %v5560_v33 = vcombine.low %v2318_v34, %v2322_v11  ;;  %v2334_v32 = vld [vmem:[%s7142_s16 + $0x7d0] sm:$0xff] }
 0x69c   : > { %4187 = vmatprep.subr.bf16.mxu1 %v5515_v52  ;;  %v2323_v52 = vld [vmem:[%s7142_s16 + $0x778] sm:$0xff] }
 0x69d   : > { %4042 = vmatpush1.bf16.msra.mxu0 %v5512_v8  ;;  %v5561_v8 = vcombine.high %v2318_v34, %v2322_v11  ;;  %v5562_v37 = vcombine.low %v2319_v19, %v2323_v52 }
 0x69e   : > { %4043 = vmatprep.subr.bf16.mxu0 %v5521_v7  ;;  %v2330_v7 = vld [vmem:[%s7142_s16 + $0x7b0] sm:$0xff] }
 0x69f   : > { %4188 = vmatpush1.bf16.msra.mxu1 %v5514_v63  ;;  %v5563_v63 = vcombine.high %v2319_v19, %v2323_v52  ;;  %v5568_v2 = vcombine.low %v2326_v26, %v2330_v7 }
 0x6a0   : > { %4189 = vmatprep.subr.bf16.mxu1 %v5523_v59  ;;  %v2331_v59 = vld [vmem:[%s7142_s16 + $0x7b8] sm:$0xff] }
 0x6a1   : > { %4044 = vmatpush1.bf16.msra.mxu0 %v5520_v30  ;;  %v5569_v30 = vcombine.high %v2326_v26, %v2330_v7  ;;  %v5570_v49 = vcombine.low %v2327_v21, %v2331_v59 }
 0x6a2   : > { %4045 = vmatprep.subr.bf16.mxu0 %v5529_v51  ;;  %v2338_v51 = vld [vmem:[%s7142_s16 + $0x7f0] sm:$0xff] }
 0x6a3   : > { %4190 = vmatpush1.bf16.msra.mxu1 %v5522_v18  ;;  %v5571_v18 = vcombine.high %v2327_v21, %v2331_v59 }
 0x6a4   : > { %4191 = vmatprep.subr.bf16.mxu1 %v5531_v3  ;;  %v2339_v3 = vld [vmem:[%s7142_s16 + $0x7f8] sm:$0xff] }
 0x6a5   : > { %4046 = vmatpush1.bf16.msra.mxu0 %v5528_v5  ;;  %v5577_v5 = vcombine.high %v2334_v32, %v2338_v51  ;;  %v5579_v50 = vcombine.high %v2335_v16, %v2339_v3 }
 0x6a6   : > { %4047 = vmatprep.subr.bf16.mxu0 %v5537_v36  ;;  %v5576_v36 = vcombine.low %v2334_v32, %v2338_v51 }
 0x6a7   : > { %4192 = vmatpush1.bf16.msra.mxu1 %v5530_v56  ;;  %v5578_v56 = vcombine.low %v2335_v16, %v2339_v3 }
 0x6a8   : > { %4193 = vmatprep.subr.bf16.mxu1 %v5539_v38 }
 0x6a9   : > { %4048 = vmatpush1.bf16.msra.mxu0 %v5536_v61 }
 0x6aa   : > { %4049 = vmatprep.subr.bf16.mxu0 %v5545_v62 }
 0x6ab   : > { %4194 = vmatpush1.bf16.msra.mxu1 %v5538_v41 }
 0x6ac   : > { %4195 = vmatprep.subr.bf16.mxu1 %v5547_v10 }
 0x6ad   : > { %4050 = vmatpush1.bf16.msra.mxu0 %v5544_v46 }
 0x6ae   : > { %4051 = vmatprep.subr.bf16.mxu0 %v5553_v1 }
 0x6af   : > { %4196 = vmatpush1.bf16.msra.mxu1 %v5546_v60 }
 0x6b0   : > { %4197 = vmatprep.subr.bf16.mxu1 %v5555_v23 }
 0x6b1   : > { %4052 = vmatpush1.bf16.msra.mxu0 %v5552_v24 }
 0x6b2   : > { %4053 = vmatprep.subr.bf16.mxu0 %v5561_v8 }
 0x6b3   : > { %4198 = vmatpush1.bf16.msra.mxu1 %v5554_v9 }
 0x6b4   : > { %4199 = vmatprep.subr.bf16.mxu1 %v5563_v63 }
 0x6b5   : > { %4054 = vmatpush1.bf16.msra.mxu0 %v5560_v33 }
 0x6b6   : > { %4055 = vmatprep.subr.bf16.mxu0 %v5569_v30 }
 0x6b7   : > { %4200 = vmatpush1.bf16.msra.mxu1 %v5562_v37 }
 0x6b8   : > { %4201 = vmatprep.subr.bf16.mxu1 %v5571_v18 }
 0x6b9   : > { %4056 = vmatpush1.bf16.msra.mxu0 %v5568_v2 }
 0x6ba   : > { %4057 = vmatprep.subr.bf16.mxu0 %v5577_v5 }
 0x6bb   : > { %4202 = vmatpush1.bf16.msra.mxu1 %v5570_v49 }
 0x6bc   : > { %4203 = vmatprep.subr.bf16.mxu1 %v5579_v50 }
 0x6bd   : > { %4058 = vmatpush1.bf16.msra.mxu0 %v5576_v36 }
 0x6bf   : > { %4204 = vmatpush1.bf16.msra.mxu1 %v5578_v56 }
 0x6c0   : > { %4060 = vmatmul.mubr.bf16.vlgmr.msra.gmra.mrb[56].mxu0 %v7557_v48 }
 0x6c1   : > { %4069 = vmatprep.mubr.bf16.mxu0 %v7605_v55 }
 0x6c2   : > { %4206 = vmatmul.mubr.bf16.vlgmr.msra.gmra.mrb[48].mxu1 %v7557_v48  ;;  %v7950_v48 = vld [vmem:[%s7145_s21] sm:$0xff] }
 0x6c3   : > { %4215 = vmatprep.mubr.bf16.mxu1 %v7605_v55  ;;  %v7954_v55 = vrot.slane %v7950_v48, %v7282_v29 }
 0x6c8   : > { %4070 = vmatmul.mubr.bf16.gmra.mrb[60].mxu0 %v7601_v15 }
 0x6c9   : > { %4079 = vmatprep.mubr.bf16.mxu0 %v7684_v17 }
 0x6ca   : > { %4216 = vmatmul.mubr.bf16.gmra.mrb[52].mxu1 %v7601_v15  ;;  %v7958_v15 = vrot.slane %v7950_v48, %v7286_v31 }
 0x6cb   : > { %4225 = vmatprep.mubr.bf16.mxu1 %v7684_v17  ;;  %v8314_v17 = vsub.s32 2, %v7279_v28 }
 0x6d0   : > { %4080 = vmatmul.mubr.bf16.gmra.mrb[64].mxu0 %v7682_v53 }
 0x6d1   : > { %4089 = vmatprep.mubr.bf16.mxu0 %v7727_v4 }
 0x6d2   : > { %4226 = vmatmul.mubr.bf16.gmra.mrb[56].mxu1 %v7682_v53  ;;  %v7963_v53 = vrot.slane %v7950_v48, %v8314_v17 }
 0x6d3   : > { %4235 = vmatprep.mubr.bf16.mxu1 %v7727_v4 }
 0x6d8   : > { %4090 = vmatmul.mubr.bf16.gmra.mrb[68].mxu0 %v7723_v54 }
 0x6da   : > { %4236 = vmatmul.mubr.bf16.gmra.mrb[60].mxu1 %v7723_v54  ;;  %v7968_v54 = vrot.slane %v7950_v48, %v8315_v57 }
 0x713   : > { %v3769_v4 = vpop.f32.mrb[40].mxu0 }
 0x714   : > { %v5659_v58 = vadd.f32 %v3769_v4, %v7954_v55  ;;  %v3771_v38 = vpop.f32.mrb[41].mxu0 }
 0x715   : > { %v3915_v29 = vpop.f32.mrb[32].mxu1  ;;  %v5660_v61 = vadd.f32 %v3771_v38, %v7958_v15  ;;  %v3773_v12 = vpop.f32.mrb[42].mxu0 }
 0x716   : > { %v5675_v31 = vadd.f32 %v3915_v29, %v7963_v53  ;;  %v3917_v40 = vpop.f32.mrb[33].mxu1  ;;  %v5661_v62 = vadd.f32 %v3773_v12, %v7954_v55  ;;  %v3775_v41 = vpop.f32.mrb[43].mxu0  ;;  %v4246_v46 = vmax.f32 %v5659_v58, 0.0 }
 0x717   : > { %v5676_v43 = vadd.f32 %v3917_v40, %v7968_v54  ;;  %v3919_v42 = vpop.f32.mrb[34].mxu1  ;;  %v5662_v10 = vadd.f32 %v3775_v41, %v7958_v15  ;;  %v4247_v60 = vmax.f32 %v5660_v61, 0.0 }
 0x718   : > { %v4254_v47 = vmax.f32 %v5661_v62, 0.0  ;;  %v5677_v0 = vadd.f32 %v3919_v42, %v7963_v53  ;;  %v3921_v1 = vpop.f32.mrb[35].mxu1  ;;  %v4248_v23 = vmax.f32 %v5675_v31, 0.0 }
 0x719   : > { %v4255_v34 = vmax.f32 %v5662_v10, 0.0  ;;  %v5678_v11 = vadd.f32 %v3921_v1, %v7968_v54  ;;  %v4249_v52 = vmax.f32 %v5676_v43, 0.0 }
 0x71a   : > { %v4310_v24 = vmax.f32 %v4246_v46, %v4254_v47  ;;  %v4256_v19 = vmax.f32 %v5677_v0, 0.0 }
 0x71b   : > { %v4319_v8 = vmax.f32 %v4247_v60, %v4255_v34  ;;  %v4257_v9 = vmax.f32 %v5678_v11, 0.0  ;;  %v3779_v26 = vpop.f32.mrb[44].mxu0 }
 0x71c   : > { %v4328_v7 = vmax.f32 %v4248_v23, %v4256_v19  ;;  %v5663_v63 = vadd.f32 %v3779_v26, %v7954_v55  ;;  %v3781_v33 = vpop.f32.mrb[45].mxu0 }
 0x71d   : > { %v4337_v21 = vmax.f32 %v4249_v52, %v4257_v9  ;;  %v3925_v59 = vpop.f32.mrb[36].mxu1  ;;  %v5664_v30 = vadd.f32 %v3781_v33, %v7958_v15  ;;  %v3783_v37 = vpop.f32.mrb[46].mxu0 }
 0x71e   : > { %v4262_v32 = vmax.f32 %v5663_v63, 0.0  ;;  %v5679_v51 = vadd.f32 %v3925_v59, %v7963_v53  ;;  %v3927_v18 = vpop.f32.mrb[37].mxu1  ;;  %v5665_v2 = vadd.f32 %v3783_v37, %v7954_v55  ;;  %v3785_v16 = vpop.f32.mrb[47].mxu0 }
 0x71f   : > { %v4263_v3 = vmax.f32 %v5664_v30, 0.0  ;;  %v5680_v5 = vadd.f32 %v3927_v18, %v7968_v54  ;;  %v3929_v49 = vpop.f32.mrb[38].mxu1  ;;  %v5666_v50 = vadd.f32 %v3785_v16, %v7958_v15 }
 0x720   : > { %v4311_v36 = vmax.f32 %v4310_v24, %v4262_v32  ;;  %v4264_v56 = vmax.f32 %v5679_v51, 0.0  ;;  %v4270_v17 = vmax.f32 %v5665_v2, 0.0  ;;  %v5681_v4 = vadd.f32 %v3929_v49, %v7963_v53  ;;  %v3931_v57 = vpop.f32.mrb[39].mxu1 }
 0x721   : > { %v4320_v58 = vmax.f32 %v4319_v8, %v4263_v3  ;;  %v4265_v38 = vmax.f32 %v5680_v5, 0.0  ;;  %v4271_v29 = vmax.f32 %v5666_v50, 0.0  ;;  %v5682_v61 = vadd.f32 %v3931_v57, %v7968_v54 }
 0x722   : > { %v4329_v12 = vmax.f32 %v4328_v7, %v4264_v56  ;;  %v4312_v31 = vmax.f32 %v4311_v36, %v4270_v17  ;;  %v4272_v40 = vmax.f32 %v5681_v4, 0.0 }
 0x723   : > { %v4338_v62 = vmax.f32 %v4337_v21, %v4265_v38  ;;  %v4321_v41 = vmax.f32 %v4320_v58, %v4271_v29  ;;  %v4273_v43 = vmax.f32 %v5682_v61, 0.0  ;;  %v3789_v42 = vpop.f32.mrb[48].mxu0 }
 0x724   : > { %v4313_v10 = vrot.slane %v4312_v31, 4  ;;  %v4330_v46 = vmax.f32 %v4329_v12, %v4272_v40  ;;  %v5667_v47 = vadd.f32 %v3789_v42, %v7954_v55  ;;  %v3791_v0 = vpop.f32.mrb[49].mxu0 }
 0x725   : > { %v4322_v1 = vrot.slane %v4321_v41, 4  ;;  %v4339_v60 = vmax.f32 %v4338_v62, %v4273_v43  ;;  %v3935_v34 = vpop.f32.mrb[40].mxu1  ;;  %v5668_v11 = vadd.f32 %v3791_v0, %v7958_v15  ;;  %v3793_v23 = vpop.f32.mrb[50].mxu0 }
 0x726   : > { %v4314_v24 = vmax.f32 %v4312_v31, %v4313_v10  ;;  %v4331_v19 = vrot.slane %v4330_v46, 4  ;;  %v4278_v52 = vmax.f32 %v5667_v47, 0.0  ;;  %v5683_v8 = vadd.f32 %v3935_v34, %v7963_v53  ;;  %v3937_v9 = vpop.f32.mrb[41].mxu1  ;;  %v3795_v26 = vpop.f32.mrb[51].mxu0 }
 0x727   : > { %v4323_v7 = vmax.f32 %v4321_v41, %v4322_v1  ;;  %v4340_v63 = vrot.slane %v4339_v60, 4  ;;  %v4279_v33 = vmax.f32 %v5668_v11, 0.0  ;;  %v5684_v21 = vadd.f32 %v3937_v9, %v7968_v54  ;;  %v3939_v59 = vpop.f32.mrb[42].mxu1 }
 0x728   : > { %v4315_v30 = vrot.slane %v4314_v24, 2  ;;  %v4332_v37 = vmax.f32 %v4330_v46, %v4331_v19  ;;  %v4280_v32 = vmax.f32 %v5683_v8, 0.0  ;;  %v5669_v51 = vadd.f32 %v3793_v23, %v7954_v55  ;;  %v3941_v18 = vpop.f32.mrb[43].mxu1 }
 0x729   : > { %v4324_v2 = vrot.slane %v4323_v7, 2  ;;  %v4341_v16 = vmax.f32 %v4339_v60, %v4340_v63  ;;  %v4281_v3 = vmax.f32 %v5684_v21, 0.0  ;;  %v5685_v5 = vadd.f32 %v3939_v59, %v7963_v53 }
 0x72a   : > { %v4316_v49 = vmax.f32 %v4314_v24, %v4315_v30  ;;  %v4333_v50 = vrot.slane %v4332_v37, 2  ;;  %v4286_v36 = vmax.f32 %v5669_v51, 0.0  ;;  %v5670_v56 = vadd.f32 %v3795_v26, %v7958_v15 }
 0x72b   : > { %v4325_v17 = vmax.f32 %v4323_v7, %v4324_v2  ;;  %v4342_v4 = vrot.slane %v4341_v16, 2  ;;  %v4288_v57 = vmax.f32 %v5685_v5, 0.0  ;;  %v5686_v58 = vadd.f32 %v3941_v18, %v7968_v54  ;;  %v3799_v38 = vpop.f32.mrb[52].mxu0 }
 0x72c   : > { %v4317_v29 = vrot.slane %v4316_v49, 1  ;;  %v4334_v61 = vmax.f32 %v4332_v37, %v4333_v50  ;;  %v4382_v12 = vmax.f32 %v4278_v52, %v4286_v36  ;;  %v4287_v31 = vmax.f32 %v5670_v56, 0.0  ;;  %v3801_v40 = vpop.f32.mrb[53].mxu0 }
 0x72d   : > { %v4326_v62 = vrot.slane %v4325_v17, 1  ;;  %v4343_v41 = vmax.f32 %v4341_v16, %v4342_v4  ;;  %v4400_v43 = vmax.f32 %v4280_v32, %v4288_v57  ;;  %v4289_v42 = vmax.f32 %v5686_v58, 0.0  ;;  %v3945_v10 = vpop.f32.mrb[44].mxu1  ;;  %v3803_v46 = vpop.f32.mrb[54].mxu0 }
 0x72e   : > { %v7994_v47 = vmax.f32 %v4316_v49, %v4317_v29  ;;  %v4335_v0 = vrot.slane %v4334_v61, 1  ;;  %v4391_v1 = vmax.f32 %v4279_v33, %v4287_v31  ;;  %v5671_v60 = vadd.f32 %v3799_v38, %v7954_v55  ;;  %v3947_v34 = vpop.f32.mrb[45].mxu1  ;;  %v3805_v11 = vpop.f32.mrb[55].mxu0 }
 0x72f   : > { %v7997_v23 = vmax.f32 %v4325_v17, %v4326_v62  ;;  %v4344_v24 = vrot.slane %v4343_v41, 1  ;;  %v4409_v19 = vmax.f32 %v4281_v3, %v4289_v42  ;;  %v5687_v52 = vadd.f32 %v3945_v10, %v7963_v53  ;;  %v3949_v8 = vpop.f32.mrb[46].mxu1 }
 0x730   : > { %v8000_v9 = vmax.f32 %v4334_v61, %v4335_v0  ;;  %v4294_v26 = vmax.f32 %v5671_v60, 0.0  ;;  %v5672_v7 = vadd.f32 %v3801_v40, %v7958_v15  ;;  %v5688_v63 = vadd.f32 %v3947_v34, %v7968_v54  ;;  %v3951_v21 = vpop.f32.mrb[47].mxu1 }
 0x731   : > { %v8004_v33 = vmax.f32 %v4343_v41, %v4344_v24  ;;  %v4296_v59 = vmax.f32 %v5687_v52, 0.0  ;;  %v5673_v30 = vadd.f32 %v3803_v46, %v7954_v55  ;;  %v5689_v37 = vadd.f32 %v3949_v8, %v7963_v53 }
 0x732   : > { %v4383_v32 = vmax.f32 %v4382_v12, %v4294_v26  ;;  %v4295_v51 = vmax.f32 %v5672_v7, 0.0  ;;  %v4297_v18 = vmax.f32 %v5688_v63, 0.0  ;;  %v5674_v2 = vadd.f32 %v3805_v11, %v7958_v15 }
 0x733   : > { %v4401_v16 = vmax.f32 %v4400_v43, %v4296_v59  ;;  %v4302_v3 = vmax.f32 %v5673_v30, 0.0  ;;  %v4304_v5 = vmax.f32 %v5689_v37, 0.0  ;;  %v5690_v49 = vadd.f32 %v3951_v21, %v7968_v54 }
 0x734   : > { %v4392_v50 = vmax.f32 %v4391_v1, %v4295_v51  ;;  %v4410_v36 = vmax.f32 %v4409_v19, %v4297_v18  ;;  %v4303_v56 = vmax.f32 %v5674_v2, 0.0  ;;  %v2360_v26 = vsub.s32 4, %v7279_v28 }
 0x735   : > { %v4384_v17 = vmax.f32 %v4383_v32, %v4302_v3  ;;  %v4402_v4 = vmax.f32 %v4401_v16, %v4304_v5  ;;  %v4305_v57 = vmax.f32 %v5690_v49, 0.0  ;;  %v2364_v7 = vsub.s32 5, %v7279_v28 }
 0x736   : > { %v4393_v58 = vmax.f32 %v4392_v50, %v4303_v56  ;;  %v2368_v63 = vsub.s32 6, %v7279_v28  ;;  %v2372_v21 = vsub.s32 7, %v7279_v28  ;;  %v8026_v59 = vrot.slane %v7950_v48, %v2360_v26 }
 0x737   : > { %v4385_v55 = vrot.slane %v4384_v17, 4  ;;  %v4403_v38 = vrot.slane %v4402_v4, 4  ;;  %v4411_v53 = vmax.f32 %v4410_v36, %v4305_v57  ;;  %v8029_v30 = vrot.slane %v7950_v48, %v2364_v7 }
 0x738   : > { %v4394_v29 = vrot.slane %v4393_v58, 4  ;;  %v8032_v37 = vrot.slane %v7950_v48, %v2368_v63  ;;  %v8035_v51 = vrot.slane %v7950_v48, %v2372_v21 }
 0x739   : > { %v4386_v61 = vmax.f32 %v4384_v17, %v4385_v55  ;;  %v4404_v12 = vmax.f32 %v4402_v4, %v4403_v38  ;;  %v4412_v31 = vrot.slane %v4411_v53, 4 }
 0x73a   : > { %v4395_v15 = vmax.f32 %v4393_v58, %v4394_v29 }
 0x73b   : > { %v4387_v40 = vrot.slane %v4386_v61, 2  ;;  %v4405_v62 = vrot.slane %v4404_v12, 2  ;;  %v4413_v41 = vmax.f32 %v4411_v53, %v4412_v31 }
 0x73c   : > { %v4396_v54 = vrot.slane %v4395_v15, 2 }
 0x73d   : > { %v4388_v43 = vmax.f32 %v4386_v61, %v4387_v40  ;;  %v4406_v42 = vmax.f32 %v4404_v12, %v4405_v62  ;;  %v4414_v10 = vrot.slane %v4413_v41, 2 }
 0x73e   : > { %v4397_v46 = vmax.f32 %v4395_v15, %v4396_v54 }
 0x73f   : > { %v4389_v0 = vrot.slane %v4388_v43, 1  ;;  %v4407_v1 = vrot.slane %v4406_v42, 1  ;;  %v4415_v60 = vmax.f32 %v4413_v41, %v4414_v10 }
 0x740   : > { %v4398_v34 = vrot.slane %v4397_v46, 1 }
 0x741   : > { %v8010_v11 = vmax.f32 %v4388_v43, %v4389_v0  ;;  %v8012_v24 = vmax.f32 %v4406_v42, %v4407_v1  ;;  %v4416_v19 = vrot.slane %v4415_v60, 1 }
 0x742   : > { %v8014_v52 = vmax.f32 %v4397_v46, %v4398_v34 }
 0x743   : > { %v8016_v8 = vmax.f32 %v4415_v60, %v4416_v19 }
 0x793   : > { %v4061_v32 = vpop.f32.mrb[56].mxu0 }
 0x794   : > { %v5691_v18 = vadd.f32 %v4061_v32, %v8026_v59  ;;  %v4063_v2 = vpop.f32.mrb[57].mxu0 }
 0x795   : > { %v4207_v16 = vpop.f32.mrb[48].mxu1  ;;  %v5692_v3 = vadd.f32 %v4063_v2, %v8029_v30  ;;  %v4065_v5 = vpop.f32.mrb[58].mxu0 }
 0x796   : > { %v5707_v49 = vadd.f32 %v4207_v16, %v8032_v37  ;;  %v4209_v50 = vpop.f32.mrb[49].mxu1  ;;  %v5693_v36 = vadd.f32 %v4065_v5, %v8026_v59  ;;  %v4067_v56 = vpop.f32.mrb[59].mxu0  ;;  %v4250_v48 = vmax.f32 %v5691_v18, 0.0 }
 0x797   : > { %v5708_v17 = vadd.f32 %v4209_v50, %v8035_v51  ;;  %v4211_v4 = vpop.f32.mrb[50].mxu1  ;;  %v5694_v57 = vadd.f32 %v4067_v56, %v8029_v30  ;;  %v4251_v53 = vmax.f32 %v5692_v3, 0.0 }
 0x798   : > { %v4258_v58 = vmax.f32 %v5693_v36, 0.0  ;;  %v5709_v55 = vadd.f32 %v4211_v4, %v8032_v37  ;;  %v4213_v38 = vpop.f32.mrb[51].mxu1  ;;  %v4252_v12 = vmax.f32 %v5707_v49, 0.0 }
 0x799   : > { %v4259_v29 = vmax.f32 %v5694_v57, 0.0  ;;  %v5710_v61 = vadd.f32 %v4213_v38, %v8035_v51  ;;  %v4253_v40 = vmax.f32 %v5708_v17, 0.0 }
 0x79a   : > { %v4346_v31 = vmax.f32 %v4250_v48, %v4258_v58  ;;  %v4260_v15 = vmax.f32 %v5709_v55, 0.0 }
 0x79b   : > { %v4355_v62 = vmax.f32 %v4251_v53, %v4259_v29  ;;  %v4261_v41 = vmax.f32 %v5710_v61, 0.0  ;;  %v4071_v54 = vpop.f32.mrb[60].mxu0 }
 0x79c   : > { %v4364_v43 = vmax.f32 %v4252_v12, %v4260_v15  ;;  %v5695_v42 = vadd.f32 %v4071_v54, %v8026_v59  ;;  %v4073_v10 = vpop.f32.mrb[61].mxu0 }
 0x79d   : > { %v4373_v46 = vmax.f32 %v4253_v40, %v4261_v41  ;;  %v4217_v0 = vpop.f32.mrb[52].mxu1  ;;  %v5696_v1 = vadd.f32 %v4073_v10, %v8029_v30  ;;  %v4075_v60 = vpop.f32.mrb[62].mxu0 }
 0x79e   : > { %v4266_v34 = vmax.f32 %v5695_v42, 0.0  ;;  %v5711_v19 = vadd.f32 %v4217_v0, %v8032_v37  ;;  %v4219_v26 = vpop.f32.mrb[53].mxu1  ;;  %v5697_v7 = vadd.f32 %v4075_v60, %v8026_v59  ;;  %v4077_v63 = vpop.f32.mrb[63].mxu0 }
 0x79f   : > { %v4267_v21 = vmax.f32 %v5696_v1, 0.0  ;;  %v5712_v32 = vadd.f32 %v4219_v26, %v8035_v51  ;;  %v4221_v18 = vpop.f32.mrb[54].mxu1  ;;  %v5698_v2 = vadd.f32 %v4077_v63, %v8029_v30 }
 0x7a0   : > { %v4347_v16 = vmax.f32 %v4346_v31, %v4266_v34  ;;  %v4268_v3 = vmax.f32 %v5711_v19, 0.0  ;;  %v4274_v5 = vmax.f32 %v5697_v7, 0.0  ;;  %v5713_v49 = vadd.f32 %v4221_v18, %v8032_v37  ;;  %v4223_v50 = vpop.f32.mrb[55].mxu1 }
 0x7a1   : > { %v4356_v36 = vmax.f32 %v4355_v62, %v4267_v21  ;;  %v4269_v56 = vmax.f32 %v5712_v32, 0.0  ;;  %v4275_v17 = vmax.f32 %v5698_v2, 0.0  ;;  %v5714_v4 = vadd.f32 %v4223_v50, %v8035_v51 }
 0x7a2   : > { %v4365_v57 = vmax.f32 %v4364_v43, %v4268_v3  ;;  %v4348_v48 = vmax.f32 %v4347_v16, %v4274_v5  ;;  %v4276_v58 = vmax.f32 %v5713_v49, 0.0 }
 0x7a3   : > { %v4374_v55 = vmax.f32 %v4373_v46, %v4269_v56  ;;  %v4357_v38 = vmax.f32 %v4356_v36, %v4275_v17  ;;  %v4277_v53 = vmax.f32 %v5714_v4, 0.0  ;;  %v4081_v29 = vpop.f32.mrb[64].mxu0 }
 0x7a4   : > { %v4349_v61 = vrot.slane %v4348_v48, 4  ;;  %v4366_v12 = vmax.f32 %v4365_v57, %v4276_v58  ;;  %v5699_v31 = vadd.f32 %v4081_v29, %v8026_v59  ;;  %v4083_v15 = vpop.f32.mrb[65].mxu0 }
 0x7a5   : > { %v4358_v40 = vrot.slane %v4357_v38, 4  ;;  %v4375_v41 = vmax.f32 %v4374_v55, %v4277_v53  ;;  %v4227_v54 = vpop.f32.mrb[56].mxu1  ;;  %v5700_v62 = vadd.f32 %v4083_v15, %v8029_v30  ;;  %v4085_v42 = vpop.f32.mrb[66].mxu0 }
 0x7a6   : > { %v4350_v10 = vmax.f32 %v4348_v48, %v4349_v61  ;;  %v4367_v0 = vrot.slane %v4366_v12, 4  ;;  %v4282_v43 = vmax.f32 %v5699_v31, 0.0  ;;  %v5715_v1 = vadd.f32 %v4227_v54, %v8032_v37  ;;  %v4229_v46 = vpop.f32.mrb[57].mxu1  ;;  %v4087_v60 = vpop.f32.mrb[67].mxu0 }
 0x7a7   : > { %v4359_v34 = vmax.f32 %v4357_v38, %v4358_v40  ;;  %v4376_v19 = vrot.slane %v4375_v41, 4  ;;  %v4283_v26 = vmax.f32 %v5700_v62, 0.0  ;;  %v5716_v7 = vadd.f32 %v4229_v46, %v8035_v51  ;;  %v4231_v63 = vpop.f32.mrb[58].mxu1 }
 0x7a8   : > { %v4351_v21 = vrot.slane %v4350_v10, 2  ;;  %v4368_v32 = vmax.f32 %v4366_v12, %v4367_v0  ;;  %v4284_v18 = vmax.f32 %v5715_v1, 0.0  ;;  %v5701_v2 = vadd.f32 %v4085_v42, %v8026_v59  ;;  %v4233_v16 = vpop.f32.mrb[59].mxu1 }
 0x7a9   : > { %v4360_v3 = vrot.slane %v4359_v34, 2  ;;  %v4377_v5 = vmax.f32 %v4375_v41, %v4376_v19  ;;  %v4285_v49 = vmax.f32 %v5716_v7, 0.0  ;;  %v5717_v50 = vadd.f32 %v4231_v63, %v8032_v37 }
 0x7aa   : > { %v4352_v36 = vmax.f32 %v4350_v10, %v4351_v21  ;;  %v4369_v56 = vrot.slane %v4368_v32, 2  ;;  %v4290_v17 = vmax.f32 %v5701_v2, 0.0  ;;  %v5702_v4 = vadd.f32 %v4087_v60, %v8029_v30 }
 0x7ab   : > { %v4361_v57 = vmax.f32 %v4359_v34, %v4360_v3  ;;  %v4378_v48 = vrot.slane %v4377_v5, 2  ;;  %v4292_v58 = vmax.f32 %v5717_v50, 0.0  ;;  %v5718_v55 = vadd.f32 %v4233_v16, %v8035_v51  ;;  %v4091_v38 = vpop.f32.mrb[68].mxu0 }
 0x7ac   : > { %v4353_v53 = vrot.slane %v4352_v36, 1  ;;  %v4370_v29 = vmax.f32 %v4368_v32, %v4369_v56  ;;  %v4418_v61 = vmax.f32 %v4282_v43, %v4290_v17  ;;  %v4291_v12 = vmax.f32 %v5702_v4, 0.0  ;;  %v4093_v31 = vpop.f32.mrb[69].mxu0 }
 0x7ad   : > { %v4362_v15 = vrot.slane %v4361_v57, 1  ;;  %v4379_v40 = vmax.f32 %v4377_v5, %v4378_v48  ;;  %v4436_v41 = vmax.f32 %v4284_v18, %v4292_v58  ;;  %v4293_v54 = vmax.f32 %v5718_v55, 0.0  ;;  %v4237_v62 = vpop.f32.mrb[60].mxu1  ;;  %v4095_v42 = vpop.f32.mrb[70].mxu0 }
 0x7ae   : > { %v8061_v10 = vmax.f32 %v4352_v36, %v4353_v53  ;;  %v4371_v0 = vrot.slane %v4370_v29, 1  ;;  %v4427_v1 = vmax.f32 %v4283_v26, %v4291_v12  ;;  %v5703_v46 = vadd.f32 %v4091_v38, %v8026_v59  ;;  %v4239_v60 = vpop.f32.mrb[61].mxu1  ;;  %v4097_v34 = vpop.f32.mrb[71].mxu0 }
 0x7af   : > { %v8064_v19 = vmax.f32 %v4361_v57, %v4362_v15  ;;  %v4380_v7 = vrot.slane %v4379_v40, 1  ;;  %v4445_v43 = vmax.f32 %v4285_v49, %v4293_v54  ;;  %v5719_v63 = vadd.f32 %v4237_v62, %v8032_v37  ;;  %v4241_v21 = vpop.f32.mrb[62].mxu1 }
 0x7b0   : > { %v8067_v32 = vmax.f32 %v4370_v29, %v4371_v0  ;;  %v4298_v18 = vmax.f32 %v5703_v46, 0.0  ;;  %v5704_v2 = vadd.f32 %v4093_v31, %v8029_v30  ;;  %v5720_v16 = vadd.f32 %v4239_v60, %v8035_v51  ;;  %v4243_v3 = vpop.f32.mrb[63].mxu1 }
 0x7b1   : > { %v8071_v26 = vmax.f32 %v4379_v40, %v4380_v7  ;;  %v4300_v5 = vmax.f32 %v5719_v63, 0.0  ;;  %v5705_v50 = vadd.f32 %v4095_v42, %v8026_v59  ;;  %v5721_v36 = vadd.f32 %v4241_v21, %v8032_v37 }
 0x7b2   : > { %v4419_v56 = vmax.f32 %v4418_v61, %v4298_v18  ;;  %v4299_v49 = vmax.f32 %v5704_v2, 0.0  ;;  %v4301_v17 = vmax.f32 %v5720_v16, 0.0  ;;  %v5706_v4 = vadd.f32 %v4097_v34, %v8029_v30 }
 0x7b3   : > { %v4437_v57 = vmax.f32 %v4436_v41, %v4300_v5  ;;  %v4306_v48 = vmax.f32 %v5705_v50, 0.0  ;;  %v4308_v58 = vmax.f32 %v5721_v36, 0.0  ;;  %v5722_v55 = vadd.f32 %v4243_v3, %v8035_v51 }
 0x7b4   : > { %v4428_v38 = vmax.f32 %v4427_v1, %v4299_v49  ;;  %v4446_v53 = vmax.f32 %v4445_v43, %v4301_v17  ;;  %v4307_v29 = vmax.f32 %v5706_v4, 0.0 }
 0x7b5   : > { %v4420_v12 = vmax.f32 %v4419_v56, %v4306_v48  ;;  %v4438_v31 = vmax.f32 %v4437_v57, %v4308_v58  ;;  %v4309_v15 = vmax.f32 %v5722_v55, 0.0  ;;  %v6529_v56 = vmov (!%p8316_p8), 0.0  }
 0x7b6   : > { %v4429_v40 = vmax.f32 %v4428_v38, %v4307_v29  ;;  %4585 = vst [vmem:[#allocation2] sm:$0xff] (!%p8316_p8), %v6529_v56  ;;  %4586 = vst [vmem:[#allocation2 + $0x8] sm:$0xff] (!%p8316_p8), %v6529_v56 }
 0x7b7   : > { %v4421_v59 = vrot.slane %v4420_v12, 4  ;;  %v4439_v54 = vrot.slane %v4438_v31, 4  ;;  %v4447_v37 = vmax.f32 %v4446_v53, %v4309_v15  ;;  %4587 = vst [vmem:[#allocation2 + $0x10] sm:$0xff] (!%p8316_p8), %v6529_v56  ;;  %4588 = vst [vmem:[#allocation2 + $0x18] sm:$0x3f] (!%p8316_p8), %v6529_v56 }
 0x7b8   : > { %v4430_v61 = vrot.slane %v4429_v40, 4 }
 0x7b9   : > { %v4422_v62 = vmax.f32 %v4420_v12, %v4421_v59  ;;  %v4440_v42 = vmax.f32 %v4438_v31, %v4439_v54  ;;  %v4448_v0 = vrot.slane %v4447_v37, 4 }
 0x7ba   : > { %v4431_v30 = vmax.f32 %v4429_v40, %v4430_v61 }
 0x7bb   : > { %v4423_v41 = vrot.slane %v4422_v62, 2  ;;  %v4441_v46 = vrot.slane %v4440_v42, 2  ;;  %v4449_v60 = vmax.f32 %v4447_v37, %v4448_v0 }
 0x7bc   : > { %v4432_v34 = vrot.slane %v4431_v30, 2 }
 0x7bd   : > { %v4424_v51 = vmax.f32 %v4422_v62, %v4423_v41  ;;  %v4442_v1 = vmax.f32 %v4440_v42, %v4441_v46  ;;  %v4450_v7 = vrot.slane %v4449_v60, 2  ;;  %4584 = sbr.rel (%p8316_p8) target bundleno = 1988 (0x7c4), region = 132 }
 0x7be   : > { %v4433_v43 = vmax.f32 %v4431_v30, %v4432_v34 }
 0x7bf   : > { %v4425_v63 = vrot.slane %v4424_v51, 1  ;;  %v4443_v21 = vrot.slane %v4442_v1, 1  ;;  %v4451_v18 = vmax.f32 %v4449_v60, %v4450_v7 }
 0x7c0   : > { %v4434_v2 = vrot.slane %v4433_v43, 1 }
 0x7c1   : > { %v4426_v16 = vmax.f32 %v4424_v51, %v4425_v63  ;;  %v4444_v3 = vmax.f32 %v4442_v1, %v4443_v21  ;;  %v4452_v5 = vrot.slane %v4451_v18, 1 }
 0x7c2   : > { %v4435_v50 = vmax.f32 %v4433_v43, %v4434_v2 }
 0x7c3   : > { %v4453_v36 = vmax.f32 %v4451_v18, %v4452_v5 }
 0x7c4 PF: > { %v8080_v49 = vstv %s8019_s15  ;;  %vm4697_vm4 = vcmask 1041409   ;;  %vm4699_vm5 = vcmask 1043459   ;;  %vm4701_vm6 = vcmask 1045509   ;;  %p5581_p9 = scmp.ne.s32.totalorder %s6819_s28, 2 }
 0x7c5   : > { %v4592_v17 = vmul.f32 %v8080_v49, %v7994_v47  ;;  %v4593_v4 = vmul.f32 %v8080_v49, %v7997_v23  ;;  %v4594_v57 = vmul.f32 %v8080_v49, %v8000_v9  ;;  %v4595_v48 = vmul.f32 %v8080_v49, %v8004_v33  ;;  %s5582_s29 = sld [smem:[#allocation24 + $0x3]] (!%p5581_p9) }
 0x7c6   : > { %v4600_v58 = vmul.f32 %v8080_v49, %v8010_v11  ;;  %v4601_v55 = vmul.f32 %v8080_v49, %v8014_v52  ;;  %v4602_v38 = vmul.f32 %v8080_v49, %v8012_v24  ;;  %v4603_v47 = vmul.f32 %v8080_v49, %v8016_v8 }
 0x7c7   : > { %v4624_v53 = vcombine.low %v4592_v17, %v4593_v4  ;;  %v6530_v23 = vmov 1983009808   ;;  %v4625_v12 = vcombine.low %v4594_v57, %v4595_v48  ;;  %v4596_v33 = vmul.f32 %v8080_v49, %v8061_v10  ;;  %v4589_v17 = vld [vmem:[#allocation2] sm:$0xff] }
 0x7c8   : > { %v4627_v29 = vunpack.c.l.s4 %v6530_v23  ;;  %v4658_v9 = vcombine.low %v4600_v58, %v4601_v55  ;;  %v4659_v31 = vcombine.low %v4602_v38, %v4603_v47  ;;  %v4597_v52 = vmul.f32 %v8080_v49, %v8064_v19  ;;  %v8317_v23 = vld [vmem:[#allocation40_spill] sm:$0xff] }
 0x7c9   : > { %v4598_v24 = vmul.f32 %v8080_v49, %v8067_v32  ;;  %v4599_v8 = vmul.f32 %v8080_v49, %v8071_v26  ;;  %v4604_v15 = vmul.f32 %v8080_v49, %v4426_v16  ;;  %v4605_v40 = vmul.f32 %v8080_v49, %v4435_v50 }
 0x7ca   : > { %v4628_v11 = vunpack.c.0.s8 %v4627_v29  ;;  %v4606_v59 = vmul.f32 %v8080_v49, %v4444_v3  ;;  %v4607_v10 = vmul.f32 %v8080_v49, %v4453_v36  ;;  %vm4703_vm7 = vcmask 1047559  }
 0x7cb   : > { %v4641_v19 = vcombine.low %v4596_v33, %v4597_v52  ;;  %v4642_v37 = vcombine.low %v4598_v24, %v4599_v8  ;;  %v4719_v32 = vmul.f32 %v8080_v49, %v7666_v44  ;;  %v4675_v61 = vcombine.low %v4604_v15, %v4605_v40  ;;  %v8318_v33 = vld [vmem:[#allocation38_spill] sm:$0xff]  ;;  %v8319_v8 = vld [vmem:[#allocation39_spill] sm:$0xff] }
 0x7cc   : > { %v8111_v54 = vsub.s32 %v4628_v11, %v7279_v28  ;;  %v4676_v26 = vcombine.low %v4606_v59, %v4607_v10  ;;  %v4720_v62 = vmul.f32 %v8080_v49, %v7674_v13  ;;  %v4721_v42 = vmul.f32 %v8080_v49, %v7668_v45 }
 0x7cd   : > { %v4722_v45 = vmul.f32 %v8080_v49, %v7676_v14  ;;  %v4723_v1 = vmul.f32 %v8080_v49, %v7747_v35  ;;  %v4724_v63 = vmul.f32 %v8080_v49, %v7753_v39  ;;  %v4725_v21 = vmul.f32 %v8080_v49, %v7749_v6 }
 0x7ce   : > { %v4632_v0 = vrot.slane %v4624_v53, %v8111_v54  ;;  %v4639_v30 = vrot.slane %v4625_v12, %v8111_v54  ;;  %v4666_v28 = vrot.slane %v4658_v9, %v8111_v54  ;;  %v4673_v41 = vrot.slane %v4659_v31, %v8111_v54 }
 0x7cf   : > { %v4649_v46 = vrot.slane %v4641_v19, %v8111_v54  ;;  %v4656_v44 = vrot.slane %v4642_v37, %v8111_v54  ;;  %v4683_v60 = vrot.slane %v4675_v61, %v8111_v54  ;;  %v4690_v34 = vrot.slane %v4676_v26, %v8111_v54  ;;  %v4718_v61 = vld [vmem:[#allocation2 + $0x10] sm:$0xff] }
 0x7d0   : > { %v4640_v13 = vcombine.low %v4632_v0, %v4639_v30  ;;  %v4674_v51 = vcombine.low %v4666_v28, %v4673_v41  ;;  %v4726_v2 = vmul.f32 %v8080_v49, %v7755_v25  ;;  %v4735_v16 = vcombine.low %v4719_v32, %v4720_v62 }
 0x7d1   : > { %v4657_v7 = vcombine.low %v4649_v46, %v4656_v44  ;;  %v4691_v43 = vcombine.low %v4683_v60, %v4690_v34  ;;  %v4736_v3 = vcombine.low %v4721_v42, %v4722_v45  ;;  %v4752_v50 = vcombine.low %v4723_v1, %v4724_v63  ;;  %v4779_v46 = vld [vmem:[#allocation2 + $0x18] sm:$0xf] }
 0x7d2   : > { %v4696_v18 = vrot.slane %v4674_v51, 7  ;;  %v4780_v14 = vmul.f32 %v8080_v49, %v7359_v22  ;;  %v4781_v35 = vmul.f32 %v8080_v49, %v7363_v27  ;;  %v4743_v39 = vrot.slane %v4735_v16, %v8111_v54  ;;  %v4590_v27 = vld [vmem:[#allocation2 + $0x8] sm:$0xff] }
 0x7d3   : > { %v4707_v5 = vrot.slane %v4691_v43, 7  ;;  %v4750_v6 = vrot.slane %v4736_v3, %v8111_v54  ;;  %v4753_v56 = vcombine.low %v4725_v21, %v4726_v2  ;;  %v4760_v57 = vrot.slane %v4752_v50, %v8111_v54 }
 0x7d4   : > { %v4698_v36 = vsel %vm4697_vm4, %v4696_v18, %v4640_v13  ;;  %v4782_v22 = vmul.f32 %v8080_v49, %v7382_v20  ;;  %v4783_v29 = vmul.f32 %v8080_v49, %v8317_v23  ;;  %v4788_v12 = vcombine.low %v4780_v14, %v4781_v35 }
 0x7d5   : > { %v4700_v25 = vsel %vm4699_vm5, %v4696_v18, %v4698_v36  ;;  %v4708_v4 = vsel %vm4697_vm4, %v4707_v5, %v4657_v7  ;;  %v4751_v55 = vcombine.low %v4743_v39, %v4750_v6  ;;  %v4767_v38 = vrot.slane %v4753_v56, %v8111_v54 }
 0x7d6   : > { %v4702_v48 = vsel %vm4701_vm6, %v4696_v18, %v4700_v25  ;;  %v4709_v58 = vsel %vm4699_vm5, %v4707_v5, %v4708_v4  ;;  %v4815_v11 = vmul.f32 %v8080_v49, %v8318_v33  ;;  %v4796_v24 = vcombine.low %v4782_v22, %v4783_v29 }
 0x7d7   : > { %v4704_v47 = vsel %vm4703_vm7, %v4696_v18, %v4702_v48  ;;  %v4710_v53 = vsel %vm4701_vm6, %v4707_v5, %v4709_v58  ;;  %v4768_v20 = vcombine.low %v4760_v57, %v4767_v38  ;;  %v4816_v15 = vmul.f32 %v8080_v49, %v8319_v8 }
 0x7d8   : > { %v4714_v9 = vadd.f32 %v4704_v47, %v4589_v17  ;;  %v4711_v31 = vsel %vm4703_vm7, %v4707_v5, %v4710_v53  ;;  %v4795_v59 = vrot.slane %v4788_v12, %v8111_v54  ;;  %v4803_v10 = vrot.slane %v4796_v24, %v8111_v54 }
 0x7d9   : > { %v4715_v52 = vadd.f32 %v4711_v31, %v4590_v27  ;;  %v4771_v40 = vrot.slane %v4768_v20, 7  ;;  %v4825_v19 = vrot.slane %v4815_v11, %v8111_v54  ;;  %v4832_v37 = vrot.slane %v4816_v15, %v8111_v54  ;;  %v4814_v54 = vld [vmem:[#allocation2 + $0x1c] sm:$0x3] }
 0x7da   : > { %4716 = vst [vmem:[#allocation2] sm:$0xff] %v4714_v9  ;;  %v4806_v62 = vrot.slane %v4803_v10, 7  ;;  %v4852_v2 = vstv (!%p5581_p9), %s5582_s29 }
 0x7db   : > { %4717 = vst [vmem:[#allocation2 + $0x8] sm:$0xff] %v4715_v52  ;;  %v4772_v32 = vsel %vm4697_vm4, %v4771_v40, %v4751_v55  ;;  %v4835_v42 = vrot.slane %v4832_v37, 7 }
 0x7dc   : > { %v4773_v26 = vsel %vm4699_vm5, %v4771_v40, %v4772_v32  ;;  %v4807_v30 = vsel %vm4697_vm4, %v4806_v62, %v4795_v59 }
 0x7dd   : > { %v4774_v49 = vsel %vm4701_vm6, %v4771_v40, %v4773_v26  ;;  %v4836_v28 = vsel %vm4697_vm4, %v4835_v42, %v4825_v19  ;;  %v4808_v44 = vsel %vm4699_vm5, %v4806_v62, %v4807_v30  ;;  %4846 = sbr.rel (%p5581_p9) target bundleno = 2032 (0x7f0), region = 136 }
 0x7de   : > { %v4775_v0 = vsel %vm4703_vm7, %v4771_v40, %v4774_v49  ;;  %v4837_v60 = vsel %vm4699_vm5, %v4835_v42, %v4836_v28  ;;  %v4809_v34 = vsel %vm4701_vm6, %v4806_v62, %v4808_v44 }
 0x7df   : > { %v4777_v41 = vadd.f32 %v4775_v0, %v4718_v61  ;;  %v4838_v13 = vsel %vm4701_vm6, %v4835_v42, %v4837_v60  ;;  %v4810_v51 = vsel %vm4703_vm7, %v4806_v62, %v4809_v34 }
 0x7e0   : > { %v4839_v45 = vsel %vm4703_vm7, %v4835_v42, %v4838_v13  ;;  %v4812_v1 = vadd.f32 %v4810_v51, %v4779_v46 }
 0x7e1   : > { %4778 = vst [vmem:[#allocation2 + $0x10] sm:$0xff] %v4777_v41  ;;  %v4841_v7 = vadd.f32 %v4839_v45, %v4814_v54  ;;  %v4847_v43 = vld [vmem:[#allocation2] sm:$0xff] (!%p5581_p9) }
 0x7e2   : > { %4813 = vst [vmem:[#allocation2 + $0x18] sm:$0xf] %v4812_v1  ;;  %v4848_v63 = vld [vmem:[#allocation2 + $0x8] sm:$0xff] (!%p5581_p9)  ;;  %v4853_v16 = vadd.f32 (!%p5581_p9), %v4852_v2, %v4847_v43 }
 0x7e3   : > { %4842 = vst [vmem:[#allocation2 + $0x1c] sm:$0x3] %v4841_v7  ;;  %v4854_v3 = vadd.f32 (!%p5581_p9), %v4852_v2, %v4848_v63 }
 0x7e4   : > { %v4857_v14 = vmax.f32 %v4853_v16, 0.0 }
 0x7e5   : > { %v4858_v35 = vmax.f32 %v4854_v3, 0.0 }
 0x7e6   : > { %4861 = vst [vmem:[#allocation25] sm:$0xff] %v4857_v14 }
 0x7e7   : > { %4862 = vst [vmem:[#allocation25 + $0x8] sm:$0xff] %v4858_v35 }
 0x7e8   : > { %v4849_v21 = vld [vmem:[#allocation2 + $0x10] sm:$0xff] }
 0x7e9   : > { %v4855_v5 = vadd.f32 %v4852_v2, %v4849_v21 }
 0x7ea   : > { %v4850_v18 = vld [vmem:[#allocation2 + $0x18] sm:$0x3f] }
 0x7eb   : > { %v4856_v50 = vadd.f32 %v4852_v2, %v4850_v18  ;;  %v4859_v36 = vmax.f32 %v4855_v5, 0.0 }
 0x7ed   : > { %v4860_v39 = vmax.f32 %v4856_v50, 0.0  ;;  %4863 = vst [vmem:[#allocation25 + $0x10] sm:$0xff] %v4859_v36 }
 0x7ef   : > { %4864 = vst [vmem:[#allocation25 + $0x18] sm:$0x3f] %v4860_v39 }
 0x7f0 PF: > { %p5863_p12 = scmp.eq.s32.totalorder %s6819_s28, 2  ;;  %s6531_s19 = smov [#allocation25]  }
 0x7f1   : > { %s4872_s25 = sshll.u32 %s6531_s19, 4  ;;  %s4873_s25 = int_to_ptr.vmem [resolvable:$true] %s4872_s25 }
 0x7f2   : > { %s6412_s26 = scalar_lea.vmem %s4873_s25, 480  ;;  %p6419_p3 = scmp.lt.s32.totalorder %s4873_s25, %s4873_s25 }
 0x7f3   : > { %p6413_p0 = scmp.ne.s32.totalorder %s4873_s25, %s6412_s26  ;;  %p6420_p5 = scmp.lt.s32.totalorder %s6412_s26, %s6412_s26 }
 0x7f5   : > { %p6414_p4 = pnand %p6413_p0, %p5863_p12  ;;  %p6421_p11 = por %p6420_p5, %p6419_p3 }
 0x7f7   : > { %p6415_p2 = pneg %p6414_p4 }
 0x7f9   : > { %p6422_p6 = pnand %p6421_p11, %p6415_p2 }
 0x7fb   : > { %6425 = shalt.err (!%p6422_p6)
}
 0x7fc   : > { %s8320_s4 = sld [smem:[#allocation47_spill]] }
 0x802   : > { %s6426_s6 = scalar_lea.hbm %s8320_s4, 480 }
 0x803   : > { %p6427_p7 = scmp.ne.s32.totalorder %s8320_s4, %s6426_s6  ;;  %p6432_p1 = scmp.lt.u32.totalorder %s6426_s6, %s8320_s4 }
 0x805   : > { %p6428_p13 = pnand %p6427_p7, %p5863_p12 }
 0x807   : > { %p6429_p10 = pneg %p6428_p13 }
 0x809   : > { %p6434_p8 = pnand %p6432_p1, %p6429_p10 }
 0x80b   : > { %6437 = shalt.err (!%p6434_p8)
}
 0x80c   : > { %5816 = dma.vmem_to_hbm [thread:$0]  (%p5863_p12), %s4873_s25, 480, %s8320_s4, [#allocation5]  }
 0x80d   : > { %6487 = dma.done.wait (%p5863_p12), [#allocation5], 480  }
 0x80e   : > { %6489 = vsyncadd (%p5863_p12), [#allocation5], 4294966816 }
 0x80f PF: > { %s8321_s16 = sld [smem:[#allocation36_spill]]  ;;  %s8322_s27 = sld [smem:[#allocation35_spill]] }
 0x810   : > { %s8323_s15 = sld [smem:[#allocation37_spill]]  ;;  %s8324_s29 = smov %s6496_s30 }
 0x815   : > { %p44_p9 = scmp.ge.s32.totalorder %s8321_s16, 5   ;;  %s8325_s30 = smov %s8322_s27 }
 0x817   :  { %46 = sbr.rel (!%p44_p9) target bundleno = 25 (0x19), region = 262 }
 0x81e   :  { %4885 = vsyncpa [#allocation4], 1 }
 0x81f   :  { %4887 = vsyncpa [#allocation4 + $0x1], 1 }
 0x820   :  { %4888 = vsyncpa [#allocation8], 1 }
 0x821   :  { %4890 = vsyncpa [#allocation8 + $0x1], 1 }
 0x822   :  { %4891 = vsyncpa [#allocation11], 1 }
 0x823   :  { %4893 = vsyncpa [#allocation11 + $0x1], 1 }
 0x824   :  { %4894 = vsyncpa [#allocation14], 1 }
 0x825   :  { %4896 = vsyncpa [#allocation14 + $0x1], 1 }
 0x826   :  { %4897 = vsyncpa [#allocation17], 1 }
 0x827   :  { %4899 = vsyncpa [#allocation17 + $0x1], 1 }
 0x828   :  { %4900 = vsyncpa [#allocation20], 1 }
 0x829   :  { %4902 = vsyncpa [#allocation20 + $0x1], 1 }
 0x82a   :  { %4903 = vsyncpa [#allocation23], 1 }
 0x82b   :  { %4905 = vsyncpa [#allocation23 + $0x1], 1 }
 0x82c   :  { %4906 = vsyncpa [#allocation5], 1 }
 0x82d   :  { %4908 = vsyncpa [#allocation5 + $0x1], 1 }
 0x82e   :  { %4909 = vsyncpa [#allocation6], 1 }
 0x82f   :  { %4911 = vsyncpa [#allocation6 + $0x1], 1 }

</bundles_post_ra>
